<compile_context>
chip_gen: v5e
topology: v5e:2x2
jax: 0.10.0
libtpu: 0.0.40
codegen_flags: <defaults>
</compile_context>

<pallas_src>
from collections import OrderedDict

import jax
import jax.numpy as jnp
from jax.experimental import pallas as pl
from jax.experimental.pallas import tpu as pltpu

NEG = -1e9  # finite "minus infinity": exp(NEG - max) == 0 exactly, no NaNs from inf-inf


def _round_up(n, m):
    return ((n + m - 1) // m) * m


def make_fused_crf_kernel(TCH, BB, NT, Ttot, blocks, n_tc):
    """Fused kernel: per-step projection + all tasks' CRF NLL, time pipelined over the grid."""

    def kernel(x_ref, wt_ref, b_ref, tags_ref, mask_ref, lastidx_ref,
               tnumt_ref, tden_ref, start_ref, end_ref, o_ref,
               alpha_ref, ohprev_ref, num_ref, endacc_ref):
        # x_ref:       (BB, TCH, E)  native dtype (batch block, time chunk)
        # wt_ref:      (Ttot, E)     fused projection weights, transposed (pad rows = 0)
        # b_ref:       (Ttot, 1)     fused bias (pad = NEG)
        # tags_ref:    (TCH, NT, BB) int32, per-task sublane offsets pre-added
        # mask_ref:    (TCH, BB)     f32
        # lastidx_ref: (1, BB)       int32, sum(mask)-1 per row
        # tnumt_ref:   (Ttot, Ttot)  transitions^T for the numerator (cross/pad = 0)
        # tden_ref:    (Ttot, Ttot)  transitions for the denominator (cross/pad = NEG)
        # start_ref/end_ref: (Ttot, 1)  (pad = NEG)
        # o_ref:       (1, 1, BB)    per-row (logZ - score) for this batch block
        # scratches: alpha (Ttot,BB), prev one-hot (Ttot,BB), numerator (1,BB), end acc (1,BB)
        t = pl.program_id(1)
        f32 = jnp.float32

        @pl.when(t == 0)
        def _init():
            alpha_ref[...] = jnp.zeros_like(alpha_ref)
            ohprev_ref[...] = jnp.zeros_like(ohprev_ref)
            num_ref[...] = jnp.zeros_like(num_ref)
            endacc_ref[...] = jnp.zeros_like(endacc_ref)

        wt = wt_ref[...]                                           # (Ttot, E)
        bias_b = jnp.broadcast_to(b_ref[...], (Ttot, BB))          # hoisted broadcasts
        start_b = jnp.broadcast_to(start_ref[...], (Ttot, BB))
        end_b = jnp.broadcast_to(end_ref[...], (Ttot, BB))
        tnum_t = tnumt_ref[...]                                    # (Ttot, Ttot)
        tden = tden_ref[...]
        tden_bt = [jnp.broadcast_to(tden[off:off + tp, off:off + tp][:, :, None],
                                    (tp, tp, BB)) for off, tp in blocks]
        last_idx = lastidx_ref[...]                                # (1, BB) int32
        iota_tag = jax.lax.broadcasted_iota(jnp.int32, (Ttot, BB), 0)

        def multi_hot(tg):                                         # tg: (NT, BB) int32
            oh = jnp.zeros((Ttot, BB), f32)
            for ti in range(NT):                                   # NT is tiny & static
                oh = oh + (iota_tag == tg[ti][None, :]).astype(f32)
            return oh

        dn = (((1,), (1,)), ((), ()))                              # contract E with E -> (Ttot, BB)

        alpha = alpha_ref[...]
        ohprev = ohprev_ref[...]
        num = num_ref[...]
        endacc = endacc_ref[...]

        # statically unrolled time steps within the chunk (all ref indices static)
        for sl in range(TCH):
            gstep = t * TCH + sl
            x_s = x_ref[:, sl, :]                                  # (BB, E)
            emit = jax.lax.dot_general(wt, x_s, dn,
                                       preferred_element_type=f32) + bias_b   # (Ttot, BB)
            oh = multi_hot(tags_ref[sl])                           # (Ttot, BB)
            m_s = mask_ref[sl:sl + 1, :]                           # (1, BB)

            # ---- numerator: emission + transition-from-previous-tag, masked ----
            trans_prev = jnp.dot(tnum_t, ohprev, preferred_element_type=f32)  # (Ttot, BB)
            num = num + m_s * jnp.sum(oh * (emit + trans_prev), axis=0, keepdims=True)
            if sl == 0:
                # start transition only at the very first (global) step
                num = num + jnp.where(
                    t == 0, jnp.sum(oh * start_b, axis=0, keepdims=True), 0.0)
            endacc = jnp.where(gstep == last_idx,
                               jnp.sum(oh * end_b, axis=0, keepdims=True), endacc)

            # ---- denominator: per-task block-diagonal forward recursion ----
            parts = []
            for bi, (off, tp) in enumerate(blocks):
                a_t = alpha[off:off + tp]                          # (tp, BB)
                e_t = emit[off:off + tp]                           # (tp, BB)
                inner = a_t[:, None, :] + tden_bt[bi] + e_t[None, :, :]   # (tp, tp, BB)
                mx = jnp.max(inner, axis=0)                        # (tp, BB)
                lse = jnp.log(jnp.sum(jnp.exp(inner - mx[None]), axis=0)) + mx
                parts.append(lse)
            new_alpha = parts[0] if len(parts) == 1 else jnp.concatenate(parts, axis=0)
            stepped = jnp.where(m_s > 0.0, new_alpha, alpha)
            if sl == 0:
                alpha = jnp.where(t == 0, emit + start_b, stepped)  # global step 0 init
            else:
                alpha = stepped
            ohprev = oh

        alpha_ref[...] = alpha
        ohprev_ref[...] = ohprev
        num_ref[...] = num
        endacc_ref[...] = endacc

        @pl.when(t == n_tc - 1)
        def _fin():
            stops = alpha + end_b
            logz = jnp.zeros((1, BB), f32)
            for off, tp in blocks:                                 # per-task logsumexp
                st = stops[off:off + tp]
                mt = jnp.max(st, axis=0, keepdims=True)
                logz = logz + jnp.log(jnp.sum(jnp.exp(st - mt), axis=0,
                                              keepdims=True)) + mt
            score = num + endacc
            o_ref[...] = (logz - score).reshape(1, 1, BB)

    return kernel


def fuse_crf_params(params, event_types, x_dtype):
    """Concatenate/pad every task's CRF head along the fused tag (sublane) axis."""
    E = params[event_types[0]]["w"].shape[0]
    sizes = [params[t]["w"].shape[1] for t in event_types]
    pads = [_round_up(s, 8) for s in sizes]
    offs, acc = [], 0
    for p in pads:
        offs.append(acc)
        acc += p
    Ttot = acc

    wt = jnp.zeros((Ttot, E), x_dtype)
    bias = jnp.full((Ttot, 1), NEG, jnp.float32)
    tnum_t = jnp.zeros((Ttot, Ttot), jnp.float32)       # numerator:   cross/pad = 0
    tden = jnp.full((Ttot, Ttot), NEG, jnp.float32)      # denominator: cross/pad = NEG
    start = jnp.full((Ttot, 1), NEG, jnp.float32)
    end = jnp.full((Ttot, 1), NEG, jnp.float32)
    for t, T_t, off in zip(event_types, sizes, offs):
        p = params[t]
        wt = wt.at[off:off + T_t, :].set(p["w"].T.astype(x_dtype))
        bias = bias.at[off:off + T_t, 0].set(p["b"].reshape(-1).astype(jnp.float32))
        tnum_t = tnum_t.at[off:off + T_t, off:off + T_t].set(p["trans"].T.astype(jnp.float32))
        tden = tden.at[off:off + T_t, off:off + T_t].set(p["trans"].astype(jnp.float32))
        start = start.at[off:off + T_t, 0].set(p["start"].reshape(-1).astype(jnp.float32))
        end = end.at[off:off + T_t, 0].set(p["end"].reshape(-1).astype(jnp.float32))
    return dict(wt=wt, bias=bias, tnum_t=tnum_t, tden=tden, start=start, end=end,
                offs=offs, pads=pads, Ttot=Ttot)


def multitask_crf_loss(X, y, mask, params, event_types):
    """Total CRF NLL over all event types, one fused Pallas call."""
    B, S, E = X.shape
    NT = len(event_types)
    fused = fuse_crf_params(params, event_types, X.dtype)
    Ttot = fused["Ttot"]
    itemsize = jnp.dtype(X.dtype).itemsize

    # batch block = lane width of the recursion (<=128); batch padded to a multiple of it
    B8 = _round_up(B, 8)
    BB = B8 if B8 <= 128 else 128
    Bp = _round_up(B, BB)
    nb = Bp // BB

    # time chunk (pipelined grid axis); prefer a divisor of S so X needs no time padding.
    # TODO(synk): for extremely large E even TCH=8 may exceed the VMEM budget; would need
    #             a feature-chunked emission matmul in that regime.
    TCH = 8
    for c in (32, 16, 8):
        if S % c == 0 and 2 * BB * c * E * itemsize <= 24 * 1024 * 1024:
            TCH = c
            break
    S_pad = _round_up(S, TCH)
    ntc = S_pad // TCH

    mask_f = mask.astype(jnp.float32)
    last_idx = jnp.sum(mask_f, axis=1).astype(jnp.int32) - 1        # (B,)

    # pad batch / time (padded rows & steps are masked; rows gated by mask[:,0] below)
    pb, ps = Bp - B, S_pad - S
    Xp = jnp.pad(X, ((0, pb), (0, ps), (0, 0))) if (pb or ps) else X
    mp = jnp.pad(mask_f, ((0, pb), (0, ps))) if (pb or ps) else mask_f
    if pb:
        last_idx = jnp.pad(last_idx, ((0, pb),), constant_values=-1)
    last_idx = last_idx.reshape(1, Bp)

    tags = []
    for t, off in zip(event_types, fused["offs"]):
        yt = y[t].astype(jnp.int32) + off
        if pb or ps:
            yt = jnp.pad(yt, ((0, pb), (0, ps)), constant_values=off)
        tags.append(yt)
    tags = jnp.stack(tags, axis=0).transpose(2, 0, 1)                # (S_pad, NT, Bp)
    maskT = mp.T                                                     # (S_pad, Bp)

    blocks = tuple(zip(fused["offs"], fused["pads"]))
    kernel = make_fused_crf_kernel(TCH, BB, NT, Ttot, blocks, ntc)

    out = pl.pallas_call(
        kernel,
        out_shape=jax.ShapeDtypeStruct((nb, 1, BB), jnp.float32),
        grid_spec=pltpu.PrefetchScalarGridSpec(
            num_scalar_prefetch=0,
            grid=(nb, ntc),
            in_specs=[
                pl.BlockSpec((BB, TCH, E), lambda i, t: (i, t, 0)),    # X, native layout
                pl.BlockSpec((Ttot, E), lambda i, t: (0, 0)),          # W^T (fused heads)
                pl.BlockSpec((Ttot, 1), lambda i, t: (0, 0)),          # bias
                pl.BlockSpec((TCH, NT, BB), lambda i, t: (t, 0, i)),   # tags (time-major)
                pl.BlockSpec((TCH, BB), lambda i, t: (t, i)),          # mask (time-major)
                pl.BlockSpec((1, BB), lambda i, t: (0, i)),            # last unmasked index
                pl.BlockSpec((Ttot, Ttot), lambda i, t: (0, 0)),       # transitions^T (num.)
                pl.BlockSpec((Ttot, Ttot), lambda i, t: (0, 0)),       # transitions (den.)
                pl.BlockSpec((Ttot, 1), lambda i, t: (0, 0)),          # start
                pl.BlockSpec((Ttot, 1), lambda i, t: (0, 0)),          # end
            ],
            out_specs=pl.BlockSpec((1, 1, BB), lambda i, t: (i, 0, 0)),
            scratch_shapes=[
                pltpu.VMEM((Ttot, BB), jnp.float32),   # alpha (forward state)
                pltpu.VMEM((Ttot, BB), jnp.float32),   # previous-step multi-hot tags
                pltpu.VMEM((1, BB), jnp.float32),      # numerator accumulator
                pltpu.VMEM((1, BB), jnp.float32),      # end-transition accumulator
            ],
        ),
        compiler_params=pltpu.CompilerParams(
            dimension_semantics=("parallel", "arbitrary"),   # batch sharded across TCs
            vmem_limit_bytes=48 * 1024 * 1024,               # headroom under v7x's 64 MiB
        ),
    )(Xp, fused["wt"], fused["bias"], tags, maskT, last_idx,
      fused["tnum_t"], fused["tden"], fused["start"], fused["end"])

    # gate padded / fully-masked rows (AllenNLP assumes mask[:, 0] == 1 for real rows)
    return jnp.sum(out.reshape(Bp) * maskT[0])


def multitask_crf_forward(X, y, mask, params, event_types, seq_feats=None):
    """Training-mode forward of MultitaskCRF (reduction='sum')."""
    B, S, _ = X.shape
    if seq_feats is not None:
        sf = jnp.broadcast_to(seq_feats[:, None, :], (B, S, seq_feats.shape[-1]))
        X = jnp.concatenate([X, sf], axis=2)
    if mask is None:
        mask = jnp.ones((B, S), jnp.float32)
    pred = OrderedDict()
    for t in event_types:
        pred[t] = jnp.array([0.0], dtype=jnp.float32)
    total_loss = multitask_crf_loss(X, y, mask, params, event_types)
    return pred, None, total_loss


def init_params(key, event_types, num_tags, embed_size):
    params = OrderedDict()
    for t in event_types:
        T = num_tags[t]
        key, k1, k2, k3, k4 = jax.random.split(key, 5)
        params[t] = {
            "w": jax.random.normal(k1, (embed_size, T), jnp.float32) * 0.1,
            "b": jnp.zeros((1, T), jnp.float32),
            "trans": jax.random.normal(k2, (T, T), jnp.float32) * 0.1,
            "start": jax.random.normal(k3, (1, T), jnp.float32) * 0.1,
            "end": jax.random.normal(k4, (1, T), jnp.float32) * 0.1,
        }
    return params


def _crf_nll_ref(logits, tags, mask, trans, start, end):
    """Pure-JAX reference: per-row CRF NLL (AllenNLP semantics), gated by mask[:, 0]."""
    B, S, T = logits.shape
    emit = jnp.take_along_axis(logits, tags[..., None], axis=2)[..., 0]     # (B, S)
    score = start[tags[:, 0]] + jnp.sum(emit * mask, axis=1)
    if S > 1:
        pair = trans[tags[:, :-1], tags[:, 1:]]                             # (B, S-1)
        score = score + jnp.sum(pair * mask[:, 1:], axis=1)
    last_idx = jnp.clip(jnp.sum(mask, axis=1).astype(jnp.int32) - 1, 0, S - 1)
    last_tag = jnp.take_along_axis(tags, last_idx[:, None], axis=1)[:, 0]
    score = score + end[last_tag]

    alpha = start[None, :] + logits[:, 0]

    def body(s, alpha):
        inner = alpha[:, :, None] + trans[None, :, :] + logits[:, s][:, None, :]
        new = jax.nn.logsumexp(inner, axis=1)
        m = mask[:, s][:, None]
        return new * m + alpha * (1.0 - m)

    alpha = jax.lax.fori_loop(1, S, body, alpha)
    logz = jax.nn.logsumexp(alpha + end[None, :], axis=1)
    return mask[:, 0] * (logz - score)


if __name__ == "__main__":
    B, S, E = 6, 24, 32
    event_types = ["trigger", "status"]
    num_tags = {"trigger": 5, "status": 7}

    key = jax.random.PRNGKey(0)
    key, kx, kp = jax.random.split(key, 3)
    X = jax.random.normal(kx, (B, S, E), jnp.float32)

    y = OrderedDict()
    for t in event_types:
        key, kt = jax.random.split(key)
        y[t] = jax.random.randint(kt, (B, S), 0, num_tags[t], dtype=jnp.int32)

    # variable-length sequences (mask[:, 0] == 1 for all real rows)
    lengths = jnp.array([S, S - 4, 13, S, 1, 7], dtype=jnp.int32)
    mask = (jnp.arange(S)[None, :] < lengths[:, None]).astype(jnp.float32)

    params = init_params(kp, event_types, num_tags, E)

    pred, _, loss = multitask_crf_forward(X, y, mask, params, event_types, seq_feats=None)
    loss = jax.block_until_ready(loss)
    for t in event_types:
        jax.block_until_ready(pred[t])

    # pure-JAX reference (same AllenNLP semantics)
    total_ref = jnp.zeros((), jnp.float32)
    for t in event_types:
        p = params[t]
        logits = X @ p["w"] + p["b"].reshape(1, 1, -1)
        total_ref = total_ref + jnp.sum(
            _crf_nll_ref(logits, y[t], mask, p["trans"],
                         p["start"].reshape(-1), p["end"].reshape(-1)))
    total_ref = jax.block_until_ready(total_ref)

    assert jnp.isfinite(loss), "loss is not finite"
    assert jnp.allclose(loss, total_ref, rtol=1e-3, atol=1e-2), (float(loss), float(total_ref))
    print("KERNEL_OK")
</pallas_src>

<mosaic_0001>
module attributes {stable_mosaic.version = 11 : i64} {
  func.func @kernel(%arg0: i32, %arg1: i32, %arg2: memref<8x8x32xf32, #tpu.memory_space<vmem>>, %arg3: memref<16x32xf32, #tpu.memory_space<vmem>>, %arg4: memref<16x1xf32, #tpu.memory_space<vmem>>, %arg5: memref<8x2x8xi32, #tpu.memory_space<vmem>>, %arg6: memref<8x8xf32, #tpu.memory_space<vmem>>, %arg7: memref<1x8xi32, #tpu.memory_space<vmem>>, %arg8: memref<16x16xf32, #tpu.memory_space<vmem>>, %arg9: memref<16x16xf32, #tpu.memory_space<vmem>>, %arg10: memref<16x1xf32, #tpu.memory_space<vmem>>, %arg11: memref<16x1xf32, #tpu.memory_space<vmem>>, %arg12: memref<1x1x8xf32, #tpu.memory_space<vmem>>, %arg13: memref<16x8xf32, #tpu.memory_space<vmem>>, %arg14: memref<16x8xf32, #tpu.memory_space<vmem>>, %arg15: memref<1x8xf32, #tpu.memory_space<vmem>>, %arg16: memref<1x8xf32, #tpu.memory_space<vmem>>) attributes {dimension_semantics = [#tpu.dimension_semantics<parallel>, #tpu.dimension_semantics<arbitrary>], iteration_bounds = array<i64: 1, 3>, scalar_prefetch = 0 : i64, scratch_operands = 4 : i64, tpu.core_type = #tpu.core_type<tc>, window_params = [{transform_indices = @transform_0, window_bounds = array<i64: 8, 8, 32>}, {pipeline_mode = #tpu.pipeline_mode<synchronous>, transform_indices = @transform_1, window_bounds = array<i64: 16, 32>}, {pipeline_mode = #tpu.pipeline_mode<synchronous>, transform_indices = @transform_2, window_bounds = array<i64: 16, 1>}, {transform_indices = @transform_3, window_bounds = array<i64: 8, 2, 8>}, {transform_indices = @transform_4, window_bounds = array<i64: 8, 8>}, {transform_indices = @transform_5, window_bounds = array<i64: 1, 8>}, {pipeline_mode = #tpu.pipeline_mode<synchronous>, transform_indices = @transform_6, window_bounds = array<i64: 16, 16>}, {pipeline_mode = #tpu.pipeline_mode<synchronous>, transform_indices = @transform_7, window_bounds = array<i64: 16, 16>}, {pipeline_mode = #tpu.pipeline_mode<synchronous>, transform_indices = @transform_8, window_bounds = array<i64: 16, 1>}, {pipeline_mode = #tpu.pipeline_mode<synchronous>, transform_indices = @transform_9, window_bounds = array<i64: 16, 1>}, {transform_indices = @transform_10, window_bounds = array<i64: 1, 1, 8>}]} {
    %c0_i32 = arith.constant 0 : i32
    %0 = arith.cmpi eq, %arg1, %c0_i32 : i32
    %1 = arith.extui %0 : i1 to i32
    %c0_i32_0 = arith.constant 0 : i32
    %2 = arith.cmpi ne, %1, %c0_i32_0 : i32
    scf.if %2 {
      %cst_180 = arith.constant 0.000000e+00 : f32
      %662 = vector.broadcast %cst_180 : f32 to vector<16x8xf32>
      %c0_181 = arith.constant 0 : index
      %c0_182 = arith.constant 0 : index
      %663 = vector.load %arg13[%c0_181, %c0_182] : memref<16x8xf32, #tpu.memory_space<vmem>>, vector<16x8xf32>
      tpu.vector_store %arg13[%c0_181, %c0_182], %662 {strides = array<i32>} : memref<16x8xf32, #tpu.memory_space<vmem>>, vector<16x8xf32>,
      %cst_183 = arith.constant 0.000000e+00 : f32
      %664 = vector.broadcast %cst_183 : f32 to vector<16x8xf32>
      %c0_184 = arith.constant 0 : index
      %c0_185 = arith.constant 0 : index
      %665 = vector.load %arg14[%c0_184, %c0_185] : memref<16x8xf32, #tpu.memory_space<vmem>>, vector<16x8xf32>
      tpu.vector_store %arg14[%c0_184, %c0_185], %664 {strides = array<i32>} : memref<16x8xf32, #tpu.memory_space<vmem>>, vector<16x8xf32>,
      %cst_186 = arith.constant 0.000000e+00 : f32
      %666 = vector.broadcast %cst_186 : f32 to vector<1x8xf32>
      %c0_187 = arith.constant 0 : index
      %c0_188 = arith.constant 0 : index
      %667 = vector.load %arg15[%c0_187, %c0_188] : memref<1x8xf32, #tpu.memory_space<vmem>>, vector<1x8xf32>
      tpu.vector_store %arg15[%c0_187, %c0_188], %666 {strides = array<i32>} : memref<1x8xf32, #tpu.memory_space<vmem>>, vector<1x8xf32>,
      %cst_189 = arith.constant 0.000000e+00 : f32
      %668 = vector.broadcast %cst_189 : f32 to vector<1x8xf32>
      %c0_190 = arith.constant 0 : index
      %c0_191 = arith.constant 0 : index
      %669 = vector.load %arg16[%c0_190, %c0_191] : memref<1x8xf32, #tpu.memory_space<vmem>>, vector<1x8xf32>
      tpu.vector_store %arg16[%c0_190, %c0_191], %668 {strides = array<i32>} : memref<1x8xf32, #tpu.memory_space<vmem>>, vector<1x8xf32>,
    } else {
    }
    %c0 = arith.constant 0 : index
    %c0_1 = arith.constant 0 : index
    %3 = vector.load %arg3[%c0, %c0_1] : memref<16x32xf32, #tpu.memory_space<vmem>>, vector<16x32xf32>
    %c0_2 = arith.constant 0 : index
    %c0_3 = arith.constant 0 : index
    %4 = vector.load %arg4[%c0_2, %c0_3] : memref<16x1xf32, #tpu.memory_space<vmem>>, vector<16x1xf32>
    %5 = vector.shape_cast %4 : vector<16x1xf32> to vector<16x1xf32>
    %6 = vector.broadcast %5 : vector<16x1xf32> to vector<16x8xf32>
    %c0_4 = arith.constant 0 : index
    %c0_5 = arith.constant 0 : index
    %7 = vector.load %arg10[%c0_4, %c0_5] : memref<16x1xf32, #tpu.memory_space<vmem>>, vector<16x1xf32>
    %8 = vector.shape_cast %7 : vector<16x1xf32> to vector<16x1xf32>
    %9 = vector.broadcast %8 : vector<16x1xf32> to vector<16x8xf32>
    %c0_6 = arith.constant 0 : index
    %c0_7 = arith.constant 0 : index
    %10 = vector.load %arg11[%c0_6, %c0_7] : memref<16x1xf32, #tpu.memory_space<vmem>>, vector<16x1xf32>
    %11 = vector.shape_cast %10 : vector<16x1xf32> to vector<16x1xf32>
    %12 = vector.broadcast %11 : vector<16x1xf32> to vector<16x8xf32>
    %c0_8 = arith.constant 0 : index
    %c0_9 = arith.constant 0 : index
    %13 = vector.load %arg8[%c0_8, %c0_9] : memref<16x16xf32, #tpu.memory_space<vmem>>, vector<16x16xf32>
    %c0_10 = arith.constant 0 : index
    %c0_11 = arith.constant 0 : index
    %14 = vector.load %arg9[%c0_10, %c0_11] : memref<16x16xf32, #tpu.memory_space<vmem>>, vector<16x16xf32>
    %15 = vector.extract_strided_slice %14 {offsets = [0, 0], sizes = [8, 8], strides = [1, 1]} : vector<16x16xf32> to vector<8x8xf32>
    %16 = vector.shape_cast %15 : vector<8x8xf32> to vector<8x8x1xf32>
    %17 = vector.shape_cast %16 : vector<8x8x1xf32> to vector<8x8x1xf32>
    %18 = vector.broadcast %17 : vector<8x8x1xf32> to vector<8x8x8xf32>
    %19 = vector.extract_strided_slice %14 {offsets = [8, 8], sizes = [8, 8], strides = [1, 1]} : vector<16x16xf32> to vector<8x8xf32>
    %20 = vector.shape_cast %19 : vector<8x8xf32> to vector<8x8x1xf32>
    %21 = vector.shape_cast %20 : vector<8x8x1xf32> to vector<8x8x1xf32>
    %22 = vector.broadcast %21 : vector<8x8x1xf32> to vector<8x8x8xf32>
    %c0_12 = arith.constant 0 : index
    %c0_13 = arith.constant 0 : index
    %23 = vector.load %arg7[%c0_12, %c0_13] : memref<1x8xi32, #tpu.memory_space<vmem>>, vector<1x8xi32>
    %24 = tpu.iota {dimensions = array<i32: 0>} : vector<16x8xi32>
    %c0_14 = arith.constant 0 : index
    %c0_15 = arith.constant 0 : index
    %25 = vector.load %arg13[%c0_14, %c0_15] : memref<16x8xf32, #tpu.memory_space<vmem>>, vector<16x8xf32>
    %c0_16 = arith.constant 0 : index
    %c0_17 = arith.constant 0 : index
    %26 = vector.load %arg14[%c0_16, %c0_17] : memref<16x8xf32, #tpu.memory_space<vmem>>, vector<16x8xf32>
    %c0_18 = arith.constant 0 : index
    %c0_19 = arith.constant 0 : index
    %27 = vector.load %arg15[%c0_18, %c0_19] : memref<1x8xf32, #tpu.memory_space<vmem>>, vector<1x8xf32>
    %c0_20 = arith.constant 0 : index
    %c0_21 = arith.constant 0 : index
    %28 = vector.load %arg16[%c0_20, %c0_21] : memref<1x8xf32, #tpu.memory_space<vmem>>, vector<1x8xf32>
    %c8_i32 = arith.constant 8 : i32
    %29 = arith.muli %arg1, %c8_i32 : i32
    %c0_i32_22 = arith.constant 0 : i32
    %30 = arith.addi %29, %c0_i32_22 : i32
    %c0_23 = arith.constant 0 : index
    %c0_24 = arith.constant 0 : index
    %c0_25 = arith.constant 0 : index
    %31 = vector.load %arg2[%c0_23, %c0_24, %c0_25] : memref<8x8x32xf32, #tpu.memory_space<vmem>>, vector<8x1x32xf32>
    %32 = vector.shape_cast %31 : vector<8x1x32xf32> to vector<8x32xf32>
    %cst = arith.constant dense<0.000000e+00> : vector<16x8xf32>
    %33 = tpu.matmul %3, %32, %cst {dimension_numbers = #tpu.dot_dimension_numbers<[1], [1], [0], [0], [0, 0, 1, 0], [], []>} : vector<16x32xf32>, vector<8x32xf32>, vector<16x8xf32> -> vector<16x8xf32>
    %34 = arith.addf %33, %6 : vector<16x8xf32>
    %c0_26 = arith.constant 0 : index
    %c0_27 = arith.constant 0 : index
    %c0_28 = arith.constant 0 : index
    %35 = vector.load %arg5[%c0_26, %c0_27, %c0_28] : memref<8x2x8xi32, #tpu.memory_space<vmem>>, vector<1x2x8xi32>
    %36 = vector.shape_cast %35 : vector<1x2x8xi32> to vector<2x8xi32>
    %cst_29 = arith.constant 0.000000e+00 : f32
    %37 = vector.broadcast %cst_29 : f32 to vector<16x8xf32>
    %38 = vector.extract_strided_slice %36 {offsets = [0, 0], sizes = [1, 8], strides = [1, 1]} : vector<2x8xi32> to vector<1x8xi32>
    %39 = vector.shape_cast %38 : vector<1x8xi32> to vector<8xi32>
    %40 = vector.shape_cast %39 : vector<8xi32> to vector<1x8xi32>
    %41 = vector.broadcast %40 : vector<1x8xi32> to vector<16x8xi32>
    %42 = arith.cmpi eq, %24, %41 : vector<16x8xi32>
    %43 = arith.extui %42 : vector<16x8xi1> to vector<16x8xi32>
    %44 = arith.sitofp %43 : vector<16x8xi32> to vector<16x8xf32>
    %45 = arith.addf %37, %44 : vector<16x8xf32>
    %46 = vector.extract_strided_slice %36 {offsets = [1, 0], sizes = [1, 8], strides = [1, 1]} : vector<2x8xi32> to vector<1x8xi32>
    %47 = vector.shape_cast %46 : vector<1x8xi32> to vector<8xi32>
    %48 = vector.shape_cast %47 : vector<8xi32> to vector<1x8xi32>
    %49 = vector.broadcast %48 : vector<1x8xi32> to vector<16x8xi32>
    %50 = arith.cmpi eq, %24, %49 : vector<16x8xi32>
    %51 = arith.extui %50 : vector<16x8xi1> to vector<16x8xi32>
    %52 = arith.sitofp %51 : vector<16x8xi32> to vector<16x8xf32>
    %53 = arith.addf %45, %52 : vector<16x8xf32>
    %c0_30 = arith.constant 0 : index
    %c0_31 = arith.constant 0 : index
    %54 = vector.load %arg6[%c0_30, %c0_31] : memref<8x8xf32, #tpu.memory_space<vmem>>, vector<1x8xf32>
    %cst_32 = arith.constant dense<0.000000e+00> : vector<16x8xf32>
    %55 = tpu.matmul %13, %26, %cst_32 {dimension_numbers = #tpu.dot_dimension_numbers<[1], [0], [0], [1], [0, 0, 1, 1], [], []>} : vector<16x16xf32>, vector<16x8xf32>, vector<16x8xf32> -> vector<16x8xf32>
    %56 = arith.addf %34, %55 : vector<16x8xf32>
    %57 = arith.mulf %53, %56 : vector<16x8xf32>
    %cst_33 = arith.constant dense<0.000000e+00> : vector<8xf32>
    %58 = vector.multi_reduction <add>, %57, %cst_33 [0] : vector<16x8xf32> to vector<8xf32>
    %59 = vector.shape_cast %58 : vector<8xf32> to vector<1x8xf32>
    %60 = arith.mulf %54, %59 : vector<1x8xf32>
    %61 = arith.addf %27, %60 : vector<1x8xf32>
    %c0_i32_34 = arith.constant 0 : i32
    %62 = arith.cmpi eq, %arg1, %c0_i32_34 : i32
    %63 = arith.mulf %53, %9 : vector<16x8xf32>
    %cst_35 = arith.constant dense<0.000000e+00> : vector<8xf32>
    %64 = vector.multi_reduction <add>, %63, %cst_35 [0] : vector<16x8xf32> to vector<8xf32>
    %65 = vector.shape_cast %64 : vector<8xf32> to vector<1x8xf32>
    %cst_36 = arith.constant 0.000000e+00 : f32
    %66 = vector.broadcast %cst_36 : f32 to vector<1x8xf32>
    %67 = arith.select %62, %65, %66 : vector<1x8xf32>
    %68 = arith.addf %61, %67 : vector<1x8xf32>
    %69 = vector.broadcast %30 : i32 to vector<1x8xi32>
    %70 = arith.cmpi eq, %69, %23 : vector<1x8xi32>
    %71 = arith.mulf %53, %12 : vector<16x8xf32>
    %cst_37 = arith.constant dense<0.000000e+00> : vector<8xf32>
    %72 = vector.multi_reduction <add>, %71, %cst_37 [0] : vector<16x8xf32> to vector<8xf32>
    %73 = vector.shape_cast %72 : vector<8xf32> to vector<1x8xf32>
    %74 = arith.select %70, %73, %28 : vector<1x8xi1>, vector<1x8xf32>
    %75 = vector.extract_strided_slice %25 {offsets = [0, 0], sizes = [8, 8], strides = [1, 1]} : vector<16x8xf32> to vector<8x8xf32>
    %76 = vector.extract_strided_slice %34 {offsets = [0, 0], sizes = [8, 8], strides = [1, 1]} : vector<16x8xf32> to vector<8x8xf32>
    %77 = vector.shape_cast %75 : vector<8x8xf32> to vector<8x1x8xf32>
    %78 = vector.broadcast %77 : vector<8x1x8xf32> to vector<8x8x8xf32>
    %79 = arith.addf %78, %18 : vector<8x8x8xf32>
    %80 = vector.shape_cast %76 : vector<8x8xf32> to vector<1x8x8xf32>
    %81 = vector.broadcast %80 : vector<1x8x8xf32> to vector<8x8x8xf32>
    %82 = arith.addf %79, %81 : vector<8x8x8xf32>
    %cst_38 = arith.constant dense<0xFF800000> : vector<8x8xf32>
    %83 = vector.multi_reduction <maximumf>, %82, %cst_38 [0] : vector<8x8x8xf32> to vector<8x8xf32>
    %84 = vector.shape_cast %83 : vector<8x8xf32> to vector<1x8x8xf32>
    %85 = vector.broadcast %84 : vector<1x8x8xf32> to vector<8x8x8xf32>
    %86 = arith.subf %82, %85 : vector<8x8x8xf32>
    %87 = math.exp %86 : vector<8x8x8xf32>
    %cst_39 = arith.constant dense<0.000000e+00> : vector<8x8xf32>
    %88 = vector.multi_reduction <add>, %87, %cst_39 [0] : vector<8x8x8xf32> to vector<8x8xf32>
    %89 = math.log %88 : vector<8x8xf32>
    %90 = arith.addf %89, %83 : vector<8x8xf32>
    %91 = vector.extract_strided_slice %25 {offsets = [8, 0], sizes = [8, 8], strides = [1, 1]} : vector<16x8xf32> to vector<8x8xf32>
    %92 = vector.extract_strided_slice %34 {offsets = [8, 0], sizes = [8, 8], strides = [1, 1]} : vector<16x8xf32> to vector<8x8xf32>
    %93 = vector.shape_cast %91 : vector<8x8xf32> to vector<8x1x8xf32>
    %94 = vector.broadcast %93 : vector<8x1x8xf32> to vector<8x8x8xf32>
    %95 = arith.addf %94, %22 : vector<8x8x8xf32>
    %96 = vector.shape_cast %92 : vector<8x8xf32> to vector<1x8x8xf32>
    %97 = vector.broadcast %96 : vector<1x8x8xf32> to vector<8x8x8xf32>
    %98 = arith.addf %95, %97 : vector<8x8x8xf32>
    %cst_40 = arith.constant dense<0xFF800000> : vector<8x8xf32>
    %99 = vector.multi_reduction <maximumf>, %98, %cst_40 [0] : vector<8x8x8xf32> to vector<8x8xf32>
    %100 = vector.shape_cast %99 : vector<8x8xf32> to vector<1x8x8xf32>
    %101 = vector.broadcast %100 : vector<1x8x8xf32> to vector<8x8x8xf32>
    %102 = arith.subf %98, %101 : vector<8x8x8xf32>
    %103 = math.exp %102 : vector<8x8x8xf32>
    %cst_41 = arith.constant dense<0.000000e+00> : vector<8x8xf32>
    %104 = vector.multi_reduction <add>, %103, %cst_41 [0] : vector<8x8x8xf32> to vector<8x8xf32>
    %105 = math.log %104 : vector<8x8xf32>
    %106 = arith.addf %105, %99 : vector<8x8xf32>
    %107 = tpu.concatenate %90, %106 in 0 : vector<8x8xf32>, vector<8x8xf32> -> vector<16x8xf32>
    %cst_42 = arith.constant 0.000000e+00 : f32
    %108 = vector.broadcast %cst_42 : f32 to vector<1x8xf32>
    %109 = arith.cmpf ogt, %54, %108 : vector<1x8xf32>
    %110 = vector.shape_cast %109 : vector<1x8xi1> to vector<1x8xi1>
    %111 = vector.broadcast %110 : vector<1x8xi1> to vector<16x8xi1>
    %112 = arith.select %111, %107, %25 : vector<16x8xi1>, vector<16x8xf32>
    %c0_i32_43 = arith.constant 0 : i32
    %113 = arith.cmpi eq, %arg1, %c0_i32_43 : i32
    %114 = arith.addf %34, %9 : vector<16x8xf32>
    %115 = arith.select %113, %114, %112 : vector<16x8xf32>
    %c8_i32_44 = arith.constant 8 : i32
    %116 = arith.muli %arg1, %c8_i32_44 : i32
    %c1_i32 = arith.constant 1 : i32
    %117 = arith.addi %116, %c1_i32 : i32
    %c0_45 = arith.constant 0 : index
    %c1 = arith.constant 1 : index
    %c0_46 = arith.constant 0 : index
    %118 = vector.load %arg2[%c0_45, %c1, %c0_46] : memref<8x8x32xf32, #tpu.memory_space<vmem>>, vector<8x1x32xf32>
    %119 = vector.shape_cast %118 : vector<8x1x32xf32> to vector<8x32xf32>
    %cst_47 = arith.constant dense<0.000000e+00> : vector<16x8xf32>
    %120 = tpu.matmul %3, %119, %cst_47 {dimension_numbers = #tpu.dot_dimension_numbers<[1], [1], [0], [0], [0, 0, 1, 0], [], []>} : vector<16x32xf32>, vector<8x32xf32>, vector<16x8xf32> -> vector<16x8xf32>
    %121 = arith.addf %120, %6 : vector<16x8xf32>
    %c1_48 = arith.constant 1 : index
    %c0_49 = arith.constant 0 : index
    %c0_50 = arith.constant 0 : index
    %122 = vector.load %arg5[%c1_48, %c0_49, %c0_50] : memref<8x2x8xi32, #tpu.memory_space<vmem>>, vector<1x2x8xi32>
    %123 = vector.shape_cast %122 : vector<1x2x8xi32> to vector<2x8xi32>
    %cst_51 = arith.constant 0.000000e+00 : f32
    %124 = vector.broadcast %cst_51 : f32 to vector<16x8xf32>
    %125 = vector.extract_strided_slice %123 {offsets = [0, 0], sizes = [1, 8], strides = [1, 1]} : vector<2x8xi32> to vector<1x8xi32>
    %126 = vector.shape_cast %125 : vector<1x8xi32> to vector<8xi32>
    %127 = vector.shape_cast %126 : vector<8xi32> to vector<1x8xi32>
    %128 = vector.broadcast %127 : vector<1x8xi32> to vector<16x8xi32>
    %129 = arith.cmpi eq, %24, %128 : vector<16x8xi32>
    %130 = arith.extui %129 : vector<16x8xi1> to vector<16x8xi32>
    %131 = arith.sitofp %130 : vector<16x8xi32> to vector<16x8xf32>
    %132 = arith.addf %124, %131 : vector<16x8xf32>
    %133 = vector.extract_strided_slice %123 {offsets = [1, 0], sizes = [1, 8], strides = [1, 1]} : vector<2x8xi32> to vector<1x8xi32>
    %134 = vector.shape_cast %133 : vector<1x8xi32> to vector<8xi32>
    %135 = vector.shape_cast %134 : vector<8xi32> to vector<1x8xi32>
    %136 = vector.broadcast %135 : vector<1x8xi32> to vector<16x8xi32>
    %137 = arith.cmpi eq, %24, %136 : vector<16x8xi32>
    %138 = arith.extui %137 : vector<16x8xi1> to vector<16x8xi32>
    %139 = arith.sitofp %138 : vector<16x8xi32> to vector<16x8xf32>
    %140 = arith.addf %132, %139 : vector<16x8xf32>
    %c1_52 = arith.constant 1 : index
    %c0_53 = arith.constant 0 : index
    %141 = vector.load %arg6[%c1_52, %c0_53] : memref<8x8xf32, #tpu.memory_space<vmem>>, vector<1x8xf32>
    %cst_54 = arith.constant dense<0.000000e+00> : vector<16x8xf32>
    %142 = tpu.matmul %13, %53, %cst_54 {dimension_numbers = #tpu.dot_dimension_numbers<[1], [0], [0], [1], [0, 0, 1, 1], [], []>} : vector<16x16xf32>, vector<16x8xf32>, vector<16x8xf32> -> vector<16x8xf32>
    %143 = arith.addf %121, %142 : vector<16x8xf32>
    %144 = arith.mulf %140, %143 : vector<16x8xf32>
    %cst_55 = arith.constant dense<0.000000e+00> : vector<8xf32>
    %145 = vector.multi_reduction <add>, %144, %cst_55 [0] : vector<16x8xf32> to vector<8xf32>
    %146 = vector.shape_cast %145 : vector<8xf32> to vector<1x8xf32>
    %147 = arith.mulf %141, %146 : vector<1x8xf32>
    %148 = arith.addf %68, %147 : vector<1x8xf32>
    %149 = vector.broadcast %117 : i32 to vector<1x8xi32>
    %150 = arith.cmpi eq, %149, %23 : vector<1x8xi32>
    %151 = arith.mulf %140, %12 : vector<16x8xf32>
    %cst_56 = arith.constant dense<0.000000e+00> : vector<8xf32>
    %152 = vector.multi_reduction <add>, %151, %cst_56 [0] : vector<16x8xf32> to vector<8xf32>
    %153 = vector.shape_cast %152 : vector<8xf32> to vector<1x8xf32>
    %154 = arith.select %150, %153, %74 : vector<1x8xi1>, vector<1x8xf32>
    %155 = vector.extract_strided_slice %115 {offsets = [0, 0], sizes = [8, 8], strides = [1, 1]} : vector<16x8xf32> to vector<8x8xf32>
    %156 = vector.extract_strided_slice %121 {offsets = [0, 0], sizes = [8, 8], strides = [1, 1]} : vector<16x8xf32> to vector<8x8xf32>
    %157 = vector.shape_cast %155 : vector<8x8xf32> to vector<8x1x8xf32>
    %158 = vector.broadcast %157 : vector<8x1x8xf32> to vector<8x8x8xf32>
    %159 = arith.addf %158, %18 : vector<8x8x8xf32>
    %160 = vector.shape_cast %156 : vector<8x8xf32> to vector<1x8x8xf32>
    %161 = vector.broadcast %160 : vector<1x8x8xf32> to vector<8x8x8xf32>
    %162 = arith.addf %159, %161 : vector<8x8x8xf32>
    %cst_57 = arith.constant dense<0xFF800000> : vector<8x8xf32>
    %163 = vector.multi_reduction <maximumf>, %162, %cst_57 [0] : vector<8x8x8xf32> to vector<8x8xf32>
    %164 = vector.shape_cast %163 : vector<8x8xf32> to vector<1x8x8xf32>
    %165 = vector.broadcast %164 : vector<1x8x8xf32> to vector<8x8x8xf32>
    %166 = arith.subf %162, %165 : vector<8x8x8xf32>
    %167 = math.exp %166 : vector<8x8x8xf32>
    %cst_58 = arith.constant dense<0.000000e+00> : vector<8x8xf32>
    %168 = vector.multi_reduction <add>, %167, %cst_58 [0] : vector<8x8x8xf32> to vector<8x8xf32>
    %169 = math.log %168 : vector<8x8xf32>
    %170 = arith.addf %169, %163 : vector<8x8xf32>
    %171 = vector.extract_strided_slice %115 {offsets = [8, 0], sizes = [8, 8], strides = [1, 1]} : vector<16x8xf32> to vector<8x8xf32>
    %172 = vector.extract_strided_slice %121 {offsets = [8, 0], sizes = [8, 8], strides = [1, 1]} : vector<16x8xf32> to vector<8x8xf32>
    %173 = vector.shape_cast %171 : vector<8x8xf32> to vector<8x1x8xf32>
    %174 = vector.broadcast %173 : vector<8x1x8xf32> to vector<8x8x8xf32>
    %175 = arith.addf %174, %22 : vector<8x8x8xf32>
    %176 = vector.shape_cast %172 : vector<8x8xf32> to vector<1x8x8xf32>
    %177 = vector.broadcast %176 : vector<1x8x8xf32> to vector<8x8x8xf32>
    %178 = arith.addf %175, %177 : vector<8x8x8xf32>
    %cst_59 = arith.constant dense<0xFF800000> : vector<8x8xf32>
    %179 = vector.multi_reduction <maximumf>, %178, %cst_59 [0] : vector<8x8x8xf32> to vector<8x8xf32>
    %180 = vector.shape_cast %179 : vector<8x8xf32> to vector<1x8x8xf32>
    %181 = vector.broadcast %180 : vector<1x8x8xf32> to vector<8x8x8xf32>
    %182 = arith.subf %178, %181 : vector<8x8x8xf32>
    %183 = math.exp %182 : vector<8x8x8xf32>
    %cst_60 = arith.constant dense<0.000000e+00> : vector<8x8xf32>
    %184 = vector.multi_reduction <add>, %183, %cst_60 [0] : vector<8x8x8xf32> to vector<8x8xf32>
    %185 = math.log %184 : vector<8x8xf32>
    %186 = arith.addf %185, %179 : vector<8x8xf32>
    %187 = tpu.concatenate %170, %186 in 0 : vector<8x8xf32>, vector<8x8xf32> -> vector<16x8xf32>
    %cst_61 = arith.constant 0.000000e+00 : f32
    %188 = vector.broadcast %cst_61 : f32 to vector<1x8xf32>
    %189 = arith.cmpf ogt, %141, %188 : vector<1x8xf32>
    %190 = vector.shape_cast %189 : vector<1x8xi1> to vector<1x8xi1>
    %191 = vector.broadcast %190 : vector<1x8xi1> to vector<16x8xi1>
    %192 = arith.select %191, %187, %115 : vector<16x8xi1>, vector<16x8xf32>
    %c8_i32_62 = arith.constant 8 : i32
    %193 = arith.muli %arg1, %c8_i32_62 : i32
    %c2_i32 = arith.constant 2 : i32
    %194 = arith.addi %193, %c2_i32 : i32
    %c0_63 = arith.constant 0 : index
    %c2 = arith.constant 2 : index
    %c0_64 = arith.constant 0 : index
    %195 = vector.load %arg2[%c0_63, %c2, %c0_64] : memref<8x8x32xf32, #tpu.memory_space<vmem>>, vector<8x1x32xf32>
    %196 = vector.shape_cast %195 : vector<8x1x32xf32> to vector<8x32xf32>
    %cst_65 = arith.constant dense<0.000000e+00> : vector<16x8xf32>
    %197 = tpu.matmul %3, %196, %cst_65 {dimension_numbers = #tpu.dot_dimension_numbers<[1], [1], [0], [0], [0, 0, 1, 0], [], []>} : vector<16x32xf32>, vector<8x32xf32>, vector<16x8xf32> -> vector<16x8xf32>
    %198 = arith.addf %197, %6 : vector<16x8xf32>
    %c2_66 = arith.constant 2 : index
    %c0_67 = arith.constant 0 : index
    %c0_68 = arith.constant 0 : index
    %199 = vector.load %arg5[%c2_66, %c0_67, %c0_68] : memref<8x2x8xi32, #tpu.memory_space<vmem>>, vector<1x2x8xi32>
    %200 = vector.shape_cast %199 : vector<1x2x8xi32> to vector<2x8xi32>
    %cst_69 = arith.constant 0.000000e+00 : f32
    %201 = vector.broadcast %cst_69 : f32 to vector<16x8xf32>
    %202 = vector.extract_strided_slice %200 {offsets = [0, 0], sizes = [1, 8], strides = [1, 1]} : vector<2x8xi32> to vector<1x8xi32>
    %203 = vector.shape_cast %202 : vector<1x8xi32> to vector<8xi32>
    %204 = vector.shape_cast %203 : vector<8xi32> to vector<1x8xi32>
    %205 = vector.broadcast %204 : vector<1x8xi32> to vector<16x8xi32>
    %206 = arith.cmpi eq, %24, %205 : vector<16x8xi32>
    %207 = arith.extui %206 : vector<16x8xi1> to vector<16x8xi32>
    %208 = arith.sitofp %207 : vector<16x8xi32> to vector<16x8xf32>
    %209 = arith.addf %201, %208 : vector<16x8xf32>
    %210 = vector.extract_strided_slice %200 {offsets = [1, 0], sizes = [1, 8], strides = [1, 1]} : vector<2x8xi32> to vector<1x8xi32>
    %211 = vector.shape_cast %210 : vector<1x8xi32> to vector<8xi32>
    %212 = vector.shape_cast %211 : vector<8xi32> to vector<1x8xi32>
    %213 = vector.broadcast %212 : vector<1x8xi32> to vector<16x8xi32>
    %214 = arith.cmpi eq, %24, %213 : vector<16x8xi32>
    %215 = arith.extui %214 : vector<16x8xi1> to vector<16x8xi32>
    %216 = arith.sitofp %215 : vector<16x8xi32> to vector<16x8xf32>
    %217 = arith.addf %209, %216 : vector<16x8xf32>
    %c2_70 = arith.constant 2 : index
    %c0_71 = arith.constant 0 : index
    %218 = vector.load %arg6[%c2_70, %c0_71] : memref<8x8xf32, #tpu.memory_space<vmem>>, vector<1x8xf32>
    %cst_72 = arith.constant dense<0.000000e+00> : vector<16x8xf32>
    %219 = tpu.matmul %13, %140, %cst_72 {dimension_numbers = #tpu.dot_dimension_numbers<[1], [0], [0], [1], [0, 0, 1, 1], [], []>} : vector<16x16xf32>, vector<16x8xf32>, vector<16x8xf32> -> vector<16x8xf32>
    %220 = arith.addf %198, %219 : vector<16x8xf32>
    %221 = arith.mulf %217, %220 : vector<16x8xf32>
    %cst_73 = arith.constant dense<0.000000e+00> : vector<8xf32>
    %222 = vector.multi_reduction <add>, %221, %cst_73 [0] : vector<16x8xf32> to vector<8xf32>
    %223 = vector.shape_cast %222 : vector<8xf32> to vector<1x8xf32>
    %224 = arith.mulf %218, %223 : vector<1x8xf32>
    %225 = arith.addf %148, %224 : vector<1x8xf32>
    %226 = vector.broadcast %194 : i32 to vector<1x8xi32>
    %227 = arith.cmpi eq, %226, %23 : vector<1x8xi32>
    %228 = arith.mulf %217, %12 : vector<16x8xf32>
    %cst_74 = arith.constant dense<0.000000e+00> : vector<8xf32>
    %229 = vector.multi_reduction <add>, %228, %cst_74 [0] : vector<16x8xf32> to vector<8xf32>
    %230 = vector.shape_cast %229 : vector<8xf32> to vector<1x8xf32>
    %231 = arith.select %227, %230, %154 : vector<1x8xi1>, vector<1x8xf32>
    %232 = vector.extract_strided_slice %192 {offsets = [0, 0], sizes = [8, 8], strides = [1, 1]} : vector<16x8xf32> to vector<8x8xf32>
    %233 = vector.extract_strided_slice %198 {offsets = [0, 0], sizes = [8, 8], strides = [1, 1]} : vector<16x8xf32> to vector<8x8xf32>
    %234 = vector.shape_cast %232 : vector<8x8xf32> to vector<8x1x8xf32>
    %235 = vector.broadcast %234 : vector<8x1x8xf32> to vector<8x8x8xf32>
    %236 = arith.addf %235, %18 : vector<8x8x8xf32>
    %237 = vector.shape_cast %233 : vector<8x8xf32> to vector<1x8x8xf32>
    %238 = vector.broadcast %237 : vector<1x8x8xf32> to vector<8x8x8xf32>
    %239 = arith.addf %236, %238 : vector<8x8x8xf32>
    %cst_75 = arith.constant dense<0xFF800000> : vector<8x8xf32>
    %240 = vector.multi_reduction <maximumf>, %239, %cst_75 [0] : vector<8x8x8xf32> to vector<8x8xf32>
    %241 = vector.shape_cast %240 : vector<8x8xf32> to vector<1x8x8xf32>
    %242 = vector.broadcast %241 : vector<1x8x8xf32> to vector<8x8x8xf32>
    %243 = arith.subf %239, %242 : vector<8x8x8xf32>
    %244 = math.exp %243 : vector<8x8x8xf32>
    %cst_76 = arith.constant dense<0.000000e+00> : vector<8x8xf32>
    %245 = vector.multi_reduction <add>, %244, %cst_76 [0] : vector<8x8x8xf32> to vector<8x8xf32>
    %246 = math.log %245 : vector<8x8xf32>
    %247 = arith.addf %246, %240 : vector<8x8xf32>
    %248 = vector.extract_strided_slice %192 {offsets = [8, 0], sizes = [8, 8], strides = [1, 1]} : vector<16x8xf32> to vector<8x8xf32>
    %249 = vector.extract_strided_slice %198 {offsets = [8, 0], sizes = [8, 8], strides = [1, 1]} : vector<16x8xf32> to vector<8x8xf32>
    %250 = vector.shape_cast %248 : vector<8x8xf32> to vector<8x1x8xf32>
    %251 = vector.broadcast %250 : vector<8x1x8xf32> to vector<8x8x8xf32>
    %252 = arith.addf %251, %22 : vector<8x8x8xf32>
    %253 = vector.shape_cast %249 : vector<8x8xf32> to vector<1x8x8xf32>
    %254 = vector.broadcast %253 : vector<1x8x8xf32> to vector<8x8x8xf32>
    %255 = arith.addf %252, %254 : vector<8x8x8xf32>
    %cst_77 = arith.constant dense<0xFF800000> : vector<8x8xf32>
    %256 = vector.multi_reduction <maximumf>, %255, %cst_77 [0] : vector<8x8x8xf32> to vector<8x8xf32>
    %257 = vector.shape_cast %256 : vector<8x8xf32> to vector<1x8x8xf32>
    %258 = vector.broadcast %257 : vector<1x8x8xf32> to vector<8x8x8xf32>
    %259 = arith.subf %255, %258 : vector<8x8x8xf32>
    %260 = math.exp %259 : vector<8x8x8xf32>
    %cst_78 = arith.constant dense<0.000000e+00> : vector<8x8xf32>
    %261 = vector.multi_reduction <add>, %260, %cst_78 [0] : vector<8x8x8xf32> to vector<8x8xf32>
    %262 = math.log %261 : vector<8x8xf32>
    %263 = arith.addf %262, %256 : vector<8x8xf32>
    %264 = tpu.concatenate %247, %263 in 0 : vector<8x8xf32>, vector<8x8xf32> -> vector<16x8xf32>
    %cst_79 = arith.constant 0.000000e+00 : f32
    %265 = vector.broadcast %cst_79 : f32 to vector<1x8xf32>
    %266 = arith.cmpf ogt, %218, %265 : vector<1x8xf32>
    %267 = vector.shape_cast %266 : vector<1x8xi1> to vector<1x8xi1>
    %268 = vector.broadcast %267 : vector<1x8xi1> to vector<16x8xi1>
    %269 = arith.select %268, %264, %192 : vector<16x8xi1>, vector<16x8xf32>
    %c8_i32_80 = arith.constant 8 : i32
    %270 = arith.muli %arg1, %c8_i32_80 : i32
    %c3_i32 = arith.constant 3 : i32
    %271 = arith.addi %270, %c3_i32 : i32
    %c0_81 = arith.constant 0 : index
    %c3 = arith.constant 3 : index
    %c0_82 = arith.constant 0 : index
    %272 = vector.load %arg2[%c0_81, %c3, %c0_82] : memref<8x8x32xf32, #tpu.memory_space<vmem>>, vector<8x1x32xf32>
    %273 = vector.shape_cast %272 : vector<8x1x32xf32> to vector<8x32xf32>
    %cst_83 = arith.constant dense<0.000000e+00> : vector<16x8xf32>
    %274 = tpu.matmul %3, %273, %cst_83 {dimension_numbers = #tpu.dot_dimension_numbers<[1], [1], [0], [0], [0, 0, 1, 0], [], []>} : vector<16x32xf32>, vector<8x32xf32>, vector<16x8xf32> -> vector<16x8xf32>
    %275 = arith.addf %274, %6 : vector<16x8xf32>
    %c3_84 = arith.constant 3 : index
    %c0_85 = arith.constant 0 : index
    %c0_86 = arith.constant 0 : index
    %276 = vector.load %arg5[%c3_84, %c0_85, %c0_86] : memref<8x2x8xi32, #tpu.memory_space<vmem>>, vector<1x2x8xi32>
    %277 = vector.shape_cast %276 : vector<1x2x8xi32> to vector<2x8xi32>
    %cst_87 = arith.constant 0.000000e+00 : f32
    %278 = vector.broadcast %cst_87 : f32 to vector<16x8xf32>
    %279 = vector.extract_strided_slice %277 {offsets = [0, 0], sizes = [1, 8], strides = [1, 1]} : vector<2x8xi32> to vector<1x8xi32>
    %280 = vector.shape_cast %279 : vector<1x8xi32> to vector<8xi32>
    %281 = vector.shape_cast %280 : vector<8xi32> to vector<1x8xi32>
    %282 = vector.broadcast %281 : vector<1x8xi32> to vector<16x8xi32>
    %283 = arith.cmpi eq, %24, %282 : vector<16x8xi32>
    %284 = arith.extui %283 : vector<16x8xi1> to vector<16x8xi32>
    %285 = arith.sitofp %284 : vector<16x8xi32> to vector<16x8xf32>
    %286 = arith.addf %278, %285 : vector<16x8xf32>
    %287 = vector.extract_strided_slice %277 {offsets = [1, 0], sizes = [1, 8], strides = [1, 1]} : vector<2x8xi32> to vector<1x8xi32>
    %288 = vector.shape_cast %287 : vector<1x8xi32> to vector<8xi32>
    %289 = vector.shape_cast %288 : vector<8xi32> to vector<1x8xi32>
    %290 = vector.broadcast %289 : vector<1x8xi32> to vector<16x8xi32>
    %291 = arith.cmpi eq, %24, %290 : vector<16x8xi32>
    %292 = arith.extui %291 : vector<16x8xi1> to vector<16x8xi32>
    %293 = arith.sitofp %292 : vector<16x8xi32> to vector<16x8xf32>
    %294 = arith.addf %286, %293 : vector<16x8xf32>
    %c3_88 = arith.constant 3 : index
    %c0_89 = arith.constant 0 : index
    %295 = vector.load %arg6[%c3_88, %c0_89] : memref<8x8xf32, #tpu.memory_space<vmem>>, vector<1x8xf32>
    %cst_90 = arith.constant dense<0.000000e+00> : vector<16x8xf32>
    %296 = tpu.matmul %13, %217, %cst_90 {dimension_numbers = #tpu.dot_dimension_numbers<[1], [0], [0], [1], [0, 0, 1, 1], [], []>} : vector<16x16xf32>, vector<16x8xf32>, vector<16x8xf32> -> vector<16x8xf32>
    %297 = arith.addf %275, %296 : vector<16x8xf32>
    %298 = arith.mulf %294, %297 : vector<16x8xf32>
    %cst_91 = arith.constant dense<0.000000e+00> : vector<8xf32>
    %299 = vector.multi_reduction <add>, %298, %cst_91 [0] : vector<16x8xf32> to vector<8xf32>
    %300 = vector.shape_cast %299 : vector<8xf32> to vector<1x8xf32>
    %301 = arith.mulf %295, %300 : vector<1x8xf32>
    %302 = arith.addf %225, %301 : vector<1x8xf32>
    %303 = vector.broadcast %271 : i32 to vector<1x8xi32>
    %304 = arith.cmpi eq, %303, %23 : vector<1x8xi32>
    %305 = arith.mulf %294, %12 : vector<16x8xf32>
    %cst_92 = arith.constant dense<0.000000e+00> : vector<8xf32>
    %306 = vector.multi_reduction <add>, %305, %cst_92 [0] : vector<16x8xf32> to vector<8xf32>
    %307 = vector.shape_cast %306 : vector<8xf32> to vector<1x8xf32>
    %308 = arith.select %304, %307, %231 : vector<1x8xi1>, vector<1x8xf32>
    %309 = vector.extract_strided_slice %269 {offsets = [0, 0], sizes = [8, 8], strides = [1, 1]} : vector<16x8xf32> to vector<8x8xf32>
    %310 = vector.extract_strided_slice %275 {offsets = [0, 0], sizes = [8, 8], strides = [1, 1]} : vector<16x8xf32> to vector<8x8xf32>
    %311 = vector.shape_cast %309 : vector<8x8xf32> to vector<8x1x8xf32>
    %312 = vector.broadcast %311 : vector<8x1x8xf32> to vector<8x8x8xf32>
    %313 = arith.addf %312, %18 : vector<8x8x8xf32>
    %314 = vector.shape_cast %310 : vector<8x8xf32> to vector<1x8x8xf32>
    %315 = vector.broadcast %314 : vector<1x8x8xf32> to vector<8x8x8xf32>
    %316 = arith.addf %313, %315 : vector<8x8x8xf32>
    %cst_93 = arith.constant dense<0xFF800000> : vector<8x8xf32>
    %317 = vector.multi_reduction <maximumf>, %316, %cst_93 [0] : vector<8x8x8xf32> to vector<8x8xf32>
    %318 = vector.shape_cast %317 : vector<8x8xf32> to vector<1x8x8xf32>
    %319 = vector.broadcast %318 : vector<1x8x8xf32> to vector<8x8x8xf32>
    %320 = arith.subf %316, %319 : vector<8x8x8xf32>
    %321 = math.exp %320 : vector<8x8x8xf32>
    %cst_94 = arith.constant dense<0.000000e+00> : vector<8x8xf32>
    %322 = vector.multi_reduction <add>, %321, %cst_94 [0] : vector<8x8x8xf32> to vector<8x8xf32>
    %323 = math.log %322 : vector<8x8xf32>
    %324 = arith.addf %323, %317 : vector<8x8xf32>
    %325 = vector.extract_strided_slice %269 {offsets = [8, 0], sizes = [8, 8], strides = [1, 1]} : vector<16x8xf32> to vector<8x8xf32>
    %326 = vector.extract_strided_slice %275 {offsets = [8, 0], sizes = [8, 8], strides = [1, 1]} : vector<16x8xf32> to vector<8x8xf32>
    %327 = vector.shape_cast %325 : vector<8x8xf32> to vector<8x1x8xf32>
    %328 = vector.broadcast %327 : vector<8x1x8xf32> to vector<8x8x8xf32>
    %329 = arith.addf %328, %22 : vector<8x8x8xf32>
    %330 = vector.shape_cast %326 : vector<8x8xf32> to vector<1x8x8xf32>
    %331 = vector.broadcast %330 : vector<1x8x8xf32> to vector<8x8x8xf32>
    %332 = arith.addf %329, %331 : vector<8x8x8xf32>
    %cst_95 = arith.constant dense<0xFF800000> : vector<8x8xf32>
    %333 = vector.multi_reduction <maximumf>, %332, %cst_95 [0] : vector<8x8x8xf32> to vector<8x8xf32>
    %334 = vector.shape_cast %333 : vector<8x8xf32> to vector<1x8x8xf32>
    %335 = vector.broadcast %334 : vector<1x8x8xf32> to vector<8x8x8xf32>
    %336 = arith.subf %332, %335 : vector<8x8x8xf32>
    %337 = math.exp %336 : vector<8x8x8xf32>
    %cst_96 = arith.constant dense<0.000000e+00> : vector<8x8xf32>
    %338 = vector.multi_reduction <add>, %337, %cst_96 [0] : vector<8x8x8xf32> to vector<8x8xf32>
    %339 = math.log %338 : vector<8x8xf32>
    %340 = arith.addf %339, %333 : vector<8x8xf32>
    %341 = tpu.concatenate %324, %340 in 0 : vector<8x8xf32>, vector<8x8xf32> -> vector<16x8xf32>
    %cst_97 = arith.constant 0.000000e+00 : f32
    %342 = vector.broadcast %cst_97 : f32 to vector<1x8xf32>
    %343 = arith.cmpf ogt, %295, %342 : vector<1x8xf32>
    %344 = vector.shape_cast %343 : vector<1x8xi1> to vector<1x8xi1>
    %345 = vector.broadcast %344 : vector<1x8xi1> to vector<16x8xi1>
    %346 = arith.select %345, %341, %269 : vector<16x8xi1>, vector<16x8xf32>
    %c8_i32_98 = arith.constant 8 : i32
    %347 = arith.muli %arg1, %c8_i32_98 : i32
    %c4_i32 = arith.constant 4 : i32
    %348 = arith.addi %347, %c4_i32 : i32
    %c0_99 = arith.constant 0 : index
    %c4 = arith.constant 4 : index
    %c0_100 = arith.constant 0 : index
    %349 = vector.load %arg2[%c0_99, %c4, %c0_100] : memref<8x8x32xf32, #tpu.memory_space<vmem>>, vector<8x1x32xf32>
    %350 = vector.shape_cast %349 : vector<8x1x32xf32> to vector<8x32xf32>
    %cst_101 = arith.constant dense<0.000000e+00> : vector<16x8xf32>
    %351 = tpu.matmul %3, %350, %cst_101 {dimension_numbers = #tpu.dot_dimension_numbers<[1], [1], [0], [0], [0, 0, 1, 0], [], []>} : vector<16x32xf32>, vector<8x32xf32>, vector<16x8xf32> -> vector<16x8xf32>
    %352 = arith.addf %351, %6 : vector<16x8xf32>
    %c4_102 = arith.constant 4 : index
    %c0_103 = arith.constant 0 : index
    %c0_104 = arith.constant 0 : index
    %353 = vector.load %arg5[%c4_102, %c0_103, %c0_104] : memref<8x2x8xi32, #tpu.memory_space<vmem>>, vector<1x2x8xi32>
    %354 = vector.shape_cast %353 : vector<1x2x8xi32> to vector<2x8xi32>
    %cst_105 = arith.constant 0.000000e+00 : f32
    %355 = vector.broadcast %cst_105 : f32 to vector<16x8xf32>
    %356 = vector.extract_strided_slice %354 {offsets = [0, 0], sizes = [1, 8], strides = [1, 1]} : vector<2x8xi32> to vector<1x8xi32>
    %357 = vector.shape_cast %356 : vector<1x8xi32> to vector<8xi32>
    %358 = vector.shape_cast %357 : vector<8xi32> to vector<1x8xi32>
    %359 = vector.broadcast %358 : vector<1x8xi32> to vector<16x8xi32>
    %360 = arith.cmpi eq, %24, %359 : vector<16x8xi32>
    %361 = arith.extui %360 : vector<16x8xi1> to vector<16x8xi32>
    %362 = arith.sitofp %361 : vector<16x8xi32> to vector<16x8xf32>
    %363 = arith.addf %355, %362 : vector<16x8xf32>
    %364 = vector.extract_strided_slice %354 {offsets = [1, 0], sizes = [1, 8], strides = [1, 1]} : vector<2x8xi32> to vector<1x8xi32>
    %365 = vector.shape_cast %364 : vector<1x8xi32> to vector<8xi32>
    %366 = vector.shape_cast %365 : vector<8xi32> to vector<1x8xi32>
    %367 = vector.broadcast %366 : vector<1x8xi32> to vector<16x8xi32>
    %368 = arith.cmpi eq, %24, %367 : vector<16x8xi32>
    %369 = arith.extui %368 : vector<16x8xi1> to vector<16x8xi32>
    %370 = arith.sitofp %369 : vector<16x8xi32> to vector<16x8xf32>
    %371 = arith.addf %363, %370 : vector<16x8xf32>
    %c4_106 = arith.constant 4 : index
    %c0_107 = arith.constant 0 : index
    %372 = vector.load %arg6[%c4_106, %c0_107] : memref<8x8xf32, #tpu.memory_space<vmem>>, vector<1x8xf32>
    %cst_108 = arith.constant dense<0.000000e+00> : vector<16x8xf32>
    %373 = tpu.matmul %13, %294, %cst_108 {dimension_numbers = #tpu.dot_dimension_numbers<[1], [0], [0], [1], [0, 0, 1, 1], [], []>} : vector<16x16xf32>, vector<16x8xf32>, vector<16x8xf32> -> vector<16x8xf32>
    %374 = arith.addf %352, %373 : vector<16x8xf32>
    %375 = arith.mulf %371, %374 : vector<16x8xf32>
    %cst_109 = arith.constant dense<0.000000e+00> : vector<8xf32>
    %376 = vector.multi_reduction <add>, %375, %cst_109 [0] : vector<16x8xf32> to vector<8xf32>
    %377 = vector.shape_cast %376 : vector<8xf32> to vector<1x8xf32>
    %378 = arith.mulf %372, %377 : vector<1x8xf32>
    %379 = arith.addf %302, %378 : vector<1x8xf32>
    %380 = vector.broadcast %348 : i32 to vector<1x8xi32>
    %381 = arith.cmpi eq, %380, %23 : vector<1x8xi32>
    %382 = arith.mulf %371, %12 : vector<16x8xf32>
    %cst_110 = arith.constant dense<0.000000e+00> : vector<8xf32>
    %383 = vector.multi_reduction <add>, %382, %cst_110 [0] : vector<16x8xf32> to vector<8xf32>
    %384 = vector.shape_cast %383 : vector<8xf32> to vector<1x8xf32>
    %385 = arith.select %381, %384, %308 : vector<1x8xi1>, vector<1x8xf32>
    %386 = vector.extract_strided_slice %346 {offsets = [0, 0], sizes = [8, 8], strides = [1, 1]} : vector<16x8xf32> to vector<8x8xf32>
    %387 = vector.extract_strided_slice %352 {offsets = [0, 0], sizes = [8, 8], strides = [1, 1]} : vector<16x8xf32> to vector<8x8xf32>
    %388 = vector.shape_cast %386 : vector<8x8xf32> to vector<8x1x8xf32>
    %389 = vector.broadcast %388 : vector<8x1x8xf32> to vector<8x8x8xf32>
    %390 = arith.addf %389, %18 : vector<8x8x8xf32>
    %391 = vector.shape_cast %387 : vector<8x8xf32> to vector<1x8x8xf32>
    %392 = vector.broadcast %391 : vector<1x8x8xf32> to vector<8x8x8xf32>
    %393 = arith.addf %390, %392 : vector<8x8x8xf32>
    %cst_111 = arith.constant dense<0xFF800000> : vector<8x8xf32>
    %394 = vector.multi_reduction <maximumf>, %393, %cst_111 [0] : vector<8x8x8xf32> to vector<8x8xf32>
    %395 = vector.shape_cast %394 : vector<8x8xf32> to vector<1x8x8xf32>
    %396 = vector.broadcast %395 : vector<1x8x8xf32> to vector<8x8x8xf32>
    %397 = arith.subf %393, %396 : vector<8x8x8xf32>
    %398 = math.exp %397 : vector<8x8x8xf32>
    %cst_112 = arith.constant dense<0.000000e+00> : vector<8x8xf32>
    %399 = vector.multi_reduction <add>, %398, %cst_112 [0] : vector<8x8x8xf32> to vector<8x8xf32>
    %400 = math.log %399 : vector<8x8xf32>
    %401 = arith.addf %400, %394 : vector<8x8xf32>
    %402 = vector.extract_strided_slice %346 {offsets = [8, 0], sizes = [8, 8], strides = [1, 1]} : vector<16x8xf32> to vector<8x8xf32>
    %403 = vector.extract_strided_slice %352 {offsets = [8, 0], sizes = [8, 8], strides = [1, 1]} : vector<16x8xf32> to vector<8x8xf32>
    %404 = vector.shape_cast %402 : vector<8x8xf32> to vector<8x1x8xf32>
    %405 = vector.broadcast %404 : vector<8x1x8xf32> to vector<8x8x8xf32>
    %406 = arith.addf %405, %22 : vector<8x8x8xf32>
    %407 = vector.shape_cast %403 : vector<8x8xf32> to vector<1x8x8xf32>
    %408 = vector.broadcast %407 : vector<1x8x8xf32> to vector<8x8x8xf32>
    %409 = arith.addf %406, %408 : vector<8x8x8xf32>
    %cst_113 = arith.constant dense<0xFF800000> : vector<8x8xf32>
    %410 = vector.multi_reduction <maximumf>, %409, %cst_113 [0] : vector<8x8x8xf32> to vector<8x8xf32>
    %411 = vector.shape_cast %410 : vector<8x8xf32> to vector<1x8x8xf32>
    %412 = vector.broadcast %411 : vector<1x8x8xf32> to vector<8x8x8xf32>
    %413 = arith.subf %409, %412 : vector<8x8x8xf32>
    %414 = math.exp %413 : vector<8x8x8xf32>
    %cst_114 = arith.constant dense<0.000000e+00> : vector<8x8xf32>
    %415 = vector.multi_reduction <add>, %414, %cst_114 [0] : vector<8x8x8xf32> to vector<8x8xf32>
    %416 = math.log %415 : vector<8x8xf32>
    %417 = arith.addf %416, %410 : vector<8x8xf32>
    %418 = tpu.concatenate %401, %417 in 0 : vector<8x8xf32>, vector<8x8xf32> -> vector<16x8xf32>
    %cst_115 = arith.constant 0.000000e+00 : f32
    %419 = vector.broadcast %cst_115 : f32 to vector<1x8xf32>
    %420 = arith.cmpf ogt, %372, %419 : vector<1x8xf32>
    %421 = vector.shape_cast %420 : vector<1x8xi1> to vector<1x8xi1>
    %422 = vector.broadcast %421 : vector<1x8xi1> to vector<16x8xi1>
    %423 = arith.select %422, %418, %346 : vector<16x8xi1>, vector<16x8xf32>
    %c8_i32_116 = arith.constant 8 : i32
    %424 = arith.muli %arg1, %c8_i32_116 : i32
    %c5_i32 = arith.constant 5 : i32
    %425 = arith.addi %424, %c5_i32 : i32
    %c0_117 = arith.constant 0 : index
    %c5 = arith.constant 5 : index
    %c0_118 = arith.constant 0 : index
    %426 = vector.load %arg2[%c0_117, %c5, %c0_118] : memref<8x8x32xf32, #tpu.memory_space<vmem>>, vector<8x1x32xf32>
    %427 = vector.shape_cast %426 : vector<8x1x32xf32> to vector<8x32xf32>
    %cst_119 = arith.constant dense<0.000000e+00> : vector<16x8xf32>
    %428 = tpu.matmul %3, %427, %cst_119 {dimension_numbers = #tpu.dot_dimension_numbers<[1], [1], [0], [0], [0, 0, 1, 0], [], []>} : vector<16x32xf32>, vector<8x32xf32>, vector<16x8xf32> -> vector<16x8xf32>
    %429 = arith.addf %428, %6 : vector<16x8xf32>
    %c5_120 = arith.constant 5 : index
    %c0_121 = arith.constant 0 : index
    %c0_122 = arith.constant 0 : index
    %430 = vector.load %arg5[%c5_120, %c0_121, %c0_122] : memref<8x2x8xi32, #tpu.memory_space<vmem>>, vector<1x2x8xi32>
    %431 = vector.shape_cast %430 : vector<1x2x8xi32> to vector<2x8xi32>
    %cst_123 = arith.constant 0.000000e+00 : f32
    %432 = vector.broadcast %cst_123 : f32 to vector<16x8xf32>
    %433 = vector.extract_strided_slice %431 {offsets = [0, 0], sizes = [1, 8], strides = [1, 1]} : vector<2x8xi32> to vector<1x8xi32>
    %434 = vector.shape_cast %433 : vector<1x8xi32> to vector<8xi32>
    %435 = vector.shape_cast %434 : vector<8xi32> to vector<1x8xi32>
    %436 = vector.broadcast %435 : vector<1x8xi32> to vector<16x8xi32>
    %437 = arith.cmpi eq, %24, %436 : vector<16x8xi32>
    %438 = arith.extui %437 : vector<16x8xi1> to vector<16x8xi32>
    %439 = arith.sitofp %438 : vector<16x8xi32> to vector<16x8xf32>
    %440 = arith.addf %432, %439 : vector<16x8xf32>
    %441 = vector.extract_strided_slice %431 {offsets = [1, 0], sizes = [1, 8], strides = [1, 1]} : vector<2x8xi32> to vector<1x8xi32>
    %442 = vector.shape_cast %441 : vector<1x8xi32> to vector<8xi32>
    %443 = vector.shape_cast %442 : vector<8xi32> to vector<1x8xi32>
    %444 = vector.broadcast %443 : vector<1x8xi32> to vector<16x8xi32>
    %445 = arith.cmpi eq, %24, %444 : vector<16x8xi32>
    %446 = arith.extui %445 : vector<16x8xi1> to vector<16x8xi32>
    %447 = arith.sitofp %446 : vector<16x8xi32> to vector<16x8xf32>
    %448 = arith.addf %440, %447 : vector<16x8xf32>
    %c5_124 = arith.constant 5 : index
    %c0_125 = arith.constant 0 : index
    %449 = vector.load %arg6[%c5_124, %c0_125] : memref<8x8xf32, #tpu.memory_space<vmem>>, vector<1x8xf32>
    %cst_126 = arith.constant dense<0.000000e+00> : vector<16x8xf32>
    %450 = tpu.matmul %13, %371, %cst_126 {dimension_numbers = #tpu.dot_dimension_numbers<[1], [0], [0], [1], [0, 0, 1, 1], [], []>} : vector<16x16xf32>, vector<16x8xf32>, vector<16x8xf32> -> vector<16x8xf32>
    %451 = arith.addf %429, %450 : vector<16x8xf32>
    %452 = arith.mulf %448, %451 : vector<16x8xf32>
    %cst_127 = arith.constant dense<0.000000e+00> : vector<8xf32>
    %453 = vector.multi_reduction <add>, %452, %cst_127 [0] : vector<16x8xf32> to vector<8xf32>
    %454 = vector.shape_cast %453 : vector<8xf32> to vector<1x8xf32>
    %455 = arith.mulf %449, %454 : vector<1x8xf32>
    %456 = arith.addf %379, %455 : vector<1x8xf32>
    %457 = vector.broadcast %425 : i32 to vector<1x8xi32>
    %458 = arith.cmpi eq, %457, %23 : vector<1x8xi32>
    %459 = arith.mulf %448, %12 : vector<16x8xf32>
    %cst_128 = arith.constant dense<0.000000e+00> : vector<8xf32>
    %460 = vector.multi_reduction <add>, %459, %cst_128 [0] : vector<16x8xf32> to vector<8xf32>
    %461 = vector.shape_cast %460 : vector<8xf32> to vector<1x8xf32>
    %462 = arith.select %458, %461, %385 : vector<1x8xi1>, vector<1x8xf32>
    %463 = vector.extract_strided_slice %423 {offsets = [0, 0], sizes = [8, 8], strides = [1, 1]} : vector<16x8xf32> to vector<8x8xf32>
    %464 = vector.extract_strided_slice %429 {offsets = [0, 0], sizes = [8, 8], strides = [1, 1]} : vector<16x8xf32> to vector<8x8xf32>
    %465 = vector.shape_cast %463 : vector<8x8xf32> to vector<8x1x8xf32>
    %466 = vector.broadcast %465 : vector<8x1x8xf32> to vector<8x8x8xf32>
    %467 = arith.addf %466, %18 : vector<8x8x8xf32>
    %468 = vector.shape_cast %464 : vector<8x8xf32> to vector<1x8x8xf32>
    %469 = vector.broadcast %468 : vector<1x8x8xf32> to vector<8x8x8xf32>
    %470 = arith.addf %467, %469 : vector<8x8x8xf32>
    %cst_129 = arith.constant dense<0xFF800000> : vector<8x8xf32>
    %471 = vector.multi_reduction <maximumf>, %470, %cst_129 [0] : vector<8x8x8xf32> to vector<8x8xf32>
    %472 = vector.shape_cast %471 : vector<8x8xf32> to vector<1x8x8xf32>
    %473 = vector.broadcast %472 : vector<1x8x8xf32> to vector<8x8x8xf32>
    %474 = arith.subf %470, %473 : vector<8x8x8xf32>
    %475 = math.exp %474 : vector<8x8x8xf32>
    %cst_130 = arith.constant dense<0.000000e+00> : vector<8x8xf32>
    %476 = vector.multi_reduction <add>, %475, %cst_130 [0] : vector<8x8x8xf32> to vector<8x8xf32>
    %477 = math.log %476 : vector<8x8xf32>
    %478 = arith.addf %477, %471 : vector<8x8xf32>
    %479 = vector.extract_strided_slice %423 {offsets = [8, 0], sizes = [8, 8], strides = [1, 1]} : vector<16x8xf32> to vector<8x8xf32>
    %480 = vector.extract_strided_slice %429 {offsets = [8, 0], sizes = [8, 8], strides = [1, 1]} : vector<16x8xf32> to vector<8x8xf32>
    %481 = vector.shape_cast %479 : vector<8x8xf32> to vector<8x1x8xf32>
    %482 = vector.broadcast %481 : vector<8x1x8xf32> to vector<8x8x8xf32>
    %483 = arith.addf %482, %22 : vector<8x8x8xf32>
    %484 = vector.shape_cast %480 : vector<8x8xf32> to vector<1x8x8xf32>
    %485 = vector.broadcast %484 : vector<1x8x8xf32> to vector<8x8x8xf32>
    %486 = arith.addf %483, %485 : vector<8x8x8xf32>
    %cst_131 = arith.constant dense<0xFF800000> : vector<8x8xf32>
    %487 = vector.multi_reduction <maximumf>, %486, %cst_131 [0] : vector<8x8x8xf32> to vector<8x8xf32>
    %488 = vector.shape_cast %487 : vector<8x8xf32> to vector<1x8x8xf32>
    %489 = vector.broadcast %488 : vector<1x8x8xf32> to vector<8x8x8xf32>
    %490 = arith.subf %486, %489 : vector<8x8x8xf32>
    %491 = math.exp %490 : vector<8x8x8xf32>
    %cst_132 = arith.constant dense<0.000000e+00> : vector<8x8xf32>
    %492 = vector.multi_reduction <add>, %491, %cst_132 [0] : vector<8x8x8xf32> to vector<8x8xf32>
    %493 = math.log %492 : vector<8x8xf32>
    %494 = arith.addf %493, %487 : vector<8x8xf32>
    %495 = tpu.concatenate %478, %494 in 0 : vector<8x8xf32>, vector<8x8xf32> -> vector<16x8xf32>
    %cst_133 = arith.constant 0.000000e+00 : f32
    %496 = vector.broadcast %cst_133 : f32 to vector<1x8xf32>
    %497 = arith.cmpf ogt, %449, %496 : vector<1x8xf32>
    %498 = vector.shape_cast %497 : vector<1x8xi1> to vector<1x8xi1>
    %499 = vector.broadcast %498 : vector<1x8xi1> to vector<16x8xi1>
    %500 = arith.select %499, %495, %423 : vector<16x8xi1>, vector<16x8xf32>
    %c8_i32_134 = arith.constant 8 : i32
    %501 = arith.muli %arg1, %c8_i32_134 : i32
    %c6_i32 = arith.constant 6 : i32
    %502 = arith.addi %501, %c6_i32 : i32
    %c0_135 = arith.constant 0 : index
    %c6 = arith.constant 6 : index
    %c0_136 = arith.constant 0 : index
    %503 = vector.load %arg2[%c0_135, %c6, %c0_136] : memref<8x8x32xf32, #tpu.memory_space<vmem>>, vector<8x1x32xf32>
    %504 = vector.shape_cast %503 : vector<8x1x32xf32> to vector<8x32xf32>
    %cst_137 = arith.constant dense<0.000000e+00> : vector<16x8xf32>
    %505 = tpu.matmul %3, %504, %cst_137 {dimension_numbers = #tpu.dot_dimension_numbers<[1], [1], [0], [0], [0, 0, 1, 0], [], []>} : vector<16x32xf32>, vector<8x32xf32>, vector<16x8xf32> -> vector<16x8xf32>
    %506 = arith.addf %505, %6 : vector<16x8xf32>
    %c6_138 = arith.constant 6 : index
    %c0_139 = arith.constant 0 : index
    %c0_140 = arith.constant 0 : index
    %507 = vector.load %arg5[%c6_138, %c0_139, %c0_140] : memref<8x2x8xi32, #tpu.memory_space<vmem>>, vector<1x2x8xi32>
    %508 = vector.shape_cast %507 : vector<1x2x8xi32> to vector<2x8xi32>
    %cst_141 = arith.constant 0.000000e+00 : f32
    %509 = vector.broadcast %cst_141 : f32 to vector<16x8xf32>
    %510 = vector.extract_strided_slice %508 {offsets = [0, 0], sizes = [1, 8], strides = [1, 1]} : vector<2x8xi32> to vector<1x8xi32>
    %511 = vector.shape_cast %510 : vector<1x8xi32> to vector<8xi32>
    %512 = vector.shape_cast %511 : vector<8xi32> to vector<1x8xi32>
    %513 = vector.broadcast %512 : vector<1x8xi32> to vector<16x8xi32>
    %514 = arith.cmpi eq, %24, %513 : vector<16x8xi32>
    %515 = arith.extui %514 : vector<16x8xi1> to vector<16x8xi32>
    %516 = arith.sitofp %515 : vector<16x8xi32> to vector<16x8xf32>
    %517 = arith.addf %509, %516 : vector<16x8xf32>
    %518 = vector.extract_strided_slice %508 {offsets = [1, 0], sizes = [1, 8], strides = [1, 1]} : vector<2x8xi32> to vector<1x8xi32>
    %519 = vector.shape_cast %518 : vector<1x8xi32> to vector<8xi32>
    %520 = vector.shape_cast %519 : vector<8xi32> to vector<1x8xi32>
    %521 = vector.broadcast %520 : vector<1x8xi32> to vector<16x8xi32>
    %522 = arith.cmpi eq, %24, %521 : vector<16x8xi32>
    %523 = arith.extui %522 : vector<16x8xi1> to vector<16x8xi32>
    %524 = arith.sitofp %523 : vector<16x8xi32> to vector<16x8xf32>
    %525 = arith.addf %517, %524 : vector<16x8xf32>
    %c6_142 = arith.constant 6 : index
    %c0_143 = arith.constant 0 : index
    %526 = vector.load %arg6[%c6_142, %c0_143] : memref<8x8xf32, #tpu.memory_space<vmem>>, vector<1x8xf32>
    %cst_144 = arith.constant dense<0.000000e+00> : vector<16x8xf32>
    %527 = tpu.matmul %13, %448, %cst_144 {dimension_numbers = #tpu.dot_dimension_numbers<[1], [0], [0], [1], [0, 0, 1, 1], [], []>} : vector<16x16xf32>, vector<16x8xf32>, vector<16x8xf32> -> vector<16x8xf32>
    %528 = arith.addf %506, %527 : vector<16x8xf32>
    %529 = arith.mulf %525, %528 : vector<16x8xf32>
    %cst_145 = arith.constant dense<0.000000e+00> : vector<8xf32>
    %530 = vector.multi_reduction <add>, %529, %cst_145 [0] : vector<16x8xf32> to vector<8xf32>
    %531 = vector.shape_cast %530 : vector<8xf32> to vector<1x8xf32>
    %532 = arith.mulf %526, %531 : vector<1x8xf32>
    %533 = arith.addf %456, %532 : vector<1x8xf32>
    %534 = vector.broadcast %502 : i32 to vector<1x8xi32>
    %535 = arith.cmpi eq, %534, %23 : vector<1x8xi32>
    %536 = arith.mulf %525, %12 : vector<16x8xf32>
    %cst_146 = arith.constant dense<0.000000e+00> : vector<8xf32>
    %537 = vector.multi_reduction <add>, %536, %cst_146 [0] : vector<16x8xf32> to vector<8xf32>
    %538 = vector.shape_cast %537 : vector<8xf32> to vector<1x8xf32>
    %539 = arith.select %535, %538, %462 : vector<1x8xi1>, vector<1x8xf32>
    %540 = vector.extract_strided_slice %500 {offsets = [0, 0], sizes = [8, 8], strides = [1, 1]} : vector<16x8xf32> to vector<8x8xf32>
    %541 = vector.extract_strided_slice %506 {offsets = [0, 0], sizes = [8, 8], strides = [1, 1]} : vector<16x8xf32> to vector<8x8xf32>
    %542 = vector.shape_cast %540 : vector<8x8xf32> to vector<8x1x8xf32>
    %543 = vector.broadcast %542 : vector<8x1x8xf32> to vector<8x8x8xf32>
    %544 = arith.addf %543, %18 : vector<8x8x8xf32>
    %545 = vector.shape_cast %541 : vector<8x8xf32> to vector<1x8x8xf32>
    %546 = vector.broadcast %545 : vector<1x8x8xf32> to vector<8x8x8xf32>
    %547 = arith.addf %544, %546 : vector<8x8x8xf32>
    %cst_147 = arith.constant dense<0xFF800000> : vector<8x8xf32>
    %548 = vector.multi_reduction <maximumf>, %547, %cst_147 [0] : vector<8x8x8xf32> to vector<8x8xf32>
    %549 = vector.shape_cast %548 : vector<8x8xf32> to vector<1x8x8xf32>
    %550 = vector.broadcast %549 : vector<1x8x8xf32> to vector<8x8x8xf32>
    %551 = arith.subf %547, %550 : vector<8x8x8xf32>
    %552 = math.exp %551 : vector<8x8x8xf32>
    %cst_148 = arith.constant dense<0.000000e+00> : vector<8x8xf32>
    %553 = vector.multi_reduction <add>, %552, %cst_148 [0] : vector<8x8x8xf32> to vector<8x8xf32>
    %554 = math.log %553 : vector<8x8xf32>
    %555 = arith.addf %554, %548 : vector<8x8xf32>
    %556 = vector.extract_strided_slice %500 {offsets = [8, 0], sizes = [8, 8], strides = [1, 1]} : vector<16x8xf32> to vector<8x8xf32>
    %557 = vector.extract_strided_slice %506 {offsets = [8, 0], sizes = [8, 8], strides = [1, 1]} : vector<16x8xf32> to vector<8x8xf32>
    %558 = vector.shape_cast %556 : vector<8x8xf32> to vector<8x1x8xf32>
    %559 = vector.broadcast %558 : vector<8x1x8xf32> to vector<8x8x8xf32>
    %560 = arith.addf %559, %22 : vector<8x8x8xf32>
    %561 = vector.shape_cast %557 : vector<8x8xf32> to vector<1x8x8xf32>
    %562 = vector.broadcast %561 : vector<1x8x8xf32> to vector<8x8x8xf32>
    %563 = arith.addf %560, %562 : vector<8x8x8xf32>
    %cst_149 = arith.constant dense<0xFF800000> : vector<8x8xf32>
    %564 = vector.multi_reduction <maximumf>, %563, %cst_149 [0] : vector<8x8x8xf32> to vector<8x8xf32>
    %565 = vector.shape_cast %564 : vector<8x8xf32> to vector<1x8x8xf32>
    %566 = vector.broadcast %565 : vector<1x8x8xf32> to vector<8x8x8xf32>
    %567 = arith.subf %563, %566 : vector<8x8x8xf32>
    %568 = math.exp %567 : vector<8x8x8xf32>
    %cst_150 = arith.constant dense<0.000000e+00> : vector<8x8xf32>
    %569 = vector.multi_reduction <add>, %568, %cst_150 [0] : vector<8x8x8xf32> to vector<8x8xf32>
    %570 = math.log %569 : vector<8x8xf32>
    %571 = arith.addf %570, %564 : vector<8x8xf32>
    %572 = tpu.concatenate %555, %571 in 0 : vector<8x8xf32>, vector<8x8xf32> -> vector<16x8xf32>
    %cst_151 = arith.constant 0.000000e+00 : f32
    %573 = vector.broadcast %cst_151 : f32 to vector<1x8xf32>
    %574 = arith.cmpf ogt, %526, %573 : vector<1x8xf32>
    %575 = vector.shape_cast %574 : vector<1x8xi1> to vector<1x8xi1>
    %576 = vector.broadcast %575 : vector<1x8xi1> to vector<16x8xi1>
    %577 = arith.select %576, %572, %500 : vector<16x8xi1>, vector<16x8xf32>
    %c8_i32_152 = arith.constant 8 : i32
    %578 = arith.muli %arg1, %c8_i32_152 : i32
    %c7_i32 = arith.constant 7 : i32
    %579 = arith.addi %578, %c7_i32 : i32
    %c0_153 = arith.constant 0 : index
    %c7 = arith.constant 7 : index
    %c0_154 = arith.constant 0 : index
    %580 = vector.load %arg2[%c0_153, %c7, %c0_154] : memref<8x8x32xf32, #tpu.memory_space<vmem>>, vector<8x1x32xf32>
    %581 = vector.shape_cast %580 : vector<8x1x32xf32> to vector<8x32xf32>
    %cst_155 = arith.constant dense<0.000000e+00> : vector<16x8xf32>
    %582 = tpu.matmul %3, %581, %cst_155 {dimension_numbers = #tpu.dot_dimension_numbers<[1], [1], [0], [0], [0, 0, 1, 0], [], []>} : vector<16x32xf32>, vector<8x32xf32>, vector<16x8xf32> -> vector<16x8xf32>
    %583 = arith.addf %582, %6 : vector<16x8xf32>
    %c7_156 = arith.constant 7 : index
    %c0_157 = arith.constant 0 : index
    %c0_158 = arith.constant 0 : index
    %584 = vector.load %arg5[%c7_156, %c0_157, %c0_158] : memref<8x2x8xi32, #tpu.memory_space<vmem>>, vector<1x2x8xi32>
    %585 = vector.shape_cast %584 : vector<1x2x8xi32> to vector<2x8xi32>
    %cst_159 = arith.constant 0.000000e+00 : f32
    %586 = vector.broadcast %cst_159 : f32 to vector<16x8xf32>
    %587 = vector.extract_strided_slice %585 {offsets = [0, 0], sizes = [1, 8], strides = [1, 1]} : vector<2x8xi32> to vector<1x8xi32>
    %588 = vector.shape_cast %587 : vector<1x8xi32> to vector<8xi32>
    %589 = vector.shape_cast %588 : vector<8xi32> to vector<1x8xi32>
    %590 = vector.broadcast %589 : vector<1x8xi32> to vector<16x8xi32>
    %591 = arith.cmpi eq, %24, %590 : vector<16x8xi32>
    %592 = arith.extui %591 : vector<16x8xi1> to vector<16x8xi32>
    %593 = arith.sitofp %592 : vector<16x8xi32> to vector<16x8xf32>
    %594 = arith.addf %586, %593 : vector<16x8xf32>
    %595 = vector.extract_strided_slice %585 {offsets = [1, 0], sizes = [1, 8], strides = [1, 1]} : vector<2x8xi32> to vector<1x8xi32>
    %596 = vector.shape_cast %595 : vector<1x8xi32> to vector<8xi32>
    %597 = vector.shape_cast %596 : vector<8xi32> to vector<1x8xi32>
    %598 = vector.broadcast %597 : vector<1x8xi32> to vector<16x8xi32>
    %599 = arith.cmpi eq, %24, %598 : vector<16x8xi32>
    %600 = arith.extui %599 : vector<16x8xi1> to vector<16x8xi32>
    %601 = arith.sitofp %600 : vector<16x8xi32> to vector<16x8xf32>
    %602 = arith.addf %594, %601 : vector<16x8xf32>
    %c7_160 = arith.constant 7 : index
    %c0_161 = arith.constant 0 : index
    %603 = vector.load %arg6[%c7_160, %c0_161] : memref<8x8xf32, #tpu.memory_space<vmem>>, vector<1x8xf32>
    %cst_162 = arith.constant dense<0.000000e+00> : vector<16x8xf32>
    %604 = tpu.matmul %13, %525, %cst_162 {dimension_numbers = #tpu.dot_dimension_numbers<[1], [0], [0], [1], [0, 0, 1, 1], [], []>} : vector<16x16xf32>, vector<16x8xf32>, vector<16x8xf32> -> vector<16x8xf32>
    %605 = arith.addf %583, %604 : vector<16x8xf32>
    %606 = arith.mulf %602, %605 : vector<16x8xf32>
    %cst_163 = arith.constant dense<0.000000e+00> : vector<8xf32>
    %607 = vector.multi_reduction <add>, %606, %cst_163 [0] : vector<16x8xf32> to vector<8xf32>
    %608 = vector.shape_cast %607 : vector<8xf32> to vector<1x8xf32>
    %609 = arith.mulf %603, %608 : vector<1x8xf32>
    %610 = arith.addf %533, %609 : vector<1x8xf32>
    %611 = vector.broadcast %579 : i32 to vector<1x8xi32>
    %612 = arith.cmpi eq, %611, %23 : vector<1x8xi32>
    %613 = arith.mulf %602, %12 : vector<16x8xf32>
    %cst_164 = arith.constant dense<0.000000e+00> : vector<8xf32>
    %614 = vector.multi_reduction <add>, %613, %cst_164 [0] : vector<16x8xf32> to vector<8xf32>
    %615 = vector.shape_cast %614 : vector<8xf32> to vector<1x8xf32>
    %616 = arith.select %612, %615, %539 : vector<1x8xi1>, vector<1x8xf32>
    %617 = vector.extract_strided_slice %577 {offsets = [0, 0], sizes = [8, 8], strides = [1, 1]} : vector<16x8xf32> to vector<8x8xf32>
    %618 = vector.extract_strided_slice %583 {offsets = [0, 0], sizes = [8, 8], strides = [1, 1]} : vector<16x8xf32> to vector<8x8xf32>
    %619 = vector.shape_cast %617 : vector<8x8xf32> to vector<8x1x8xf32>
    %620 = vector.broadcast %619 : vector<8x1x8xf32> to vector<8x8x8xf32>
    %621 = arith.addf %620, %18 : vector<8x8x8xf32>
    %622 = vector.shape_cast %618 : vector<8x8xf32> to vector<1x8x8xf32>
    %623 = vector.broadcast %622 : vector<1x8x8xf32> to vector<8x8x8xf32>
    %624 = arith.addf %621, %623 : vector<8x8x8xf32>
    %cst_165 = arith.constant dense<0xFF800000> : vector<8x8xf32>
    %625 = vector.multi_reduction <maximumf>, %624, %cst_165 [0] : vector<8x8x8xf32> to vector<8x8xf32>
    %626 = vector.shape_cast %625 : vector<8x8xf32> to vector<1x8x8xf32>
    %627 = vector.broadcast %626 : vector<1x8x8xf32> to vector<8x8x8xf32>
    %628 = arith.subf %624, %627 : vector<8x8x8xf32>
    %629 = math.exp %628 : vector<8x8x8xf32>
    %cst_166 = arith.constant dense<0.000000e+00> : vector<8x8xf32>
    %630 = vector.multi_reduction <add>, %629, %cst_166 [0] : vector<8x8x8xf32> to vector<8x8xf32>
    %631 = math.log %630 : vector<8x8xf32>
    %632 = arith.addf %631, %625 : vector<8x8xf32>
    %633 = vector.extract_strided_slice %577 {offsets = [8, 0], sizes = [8, 8], strides = [1, 1]} : vector<16x8xf32> to vector<8x8xf32>
    %634 = vector.extract_strided_slice %583 {offsets = [8, 0], sizes = [8, 8], strides = [1, 1]} : vector<16x8xf32> to vector<8x8xf32>
    %635 = vector.shape_cast %633 : vector<8x8xf32> to vector<8x1x8xf32>
    %636 = vector.broadcast %635 : vector<8x1x8xf32> to vector<8x8x8xf32>
    %637 = arith.addf %636, %22 : vector<8x8x8xf32>
    %638 = vector.shape_cast %634 : vector<8x8xf32> to vector<1x8x8xf32>
    %639 = vector.broadcast %638 : vector<1x8x8xf32> to vector<8x8x8xf32>
    %640 = arith.addf %637, %639 : vector<8x8x8xf32>
    %cst_167 = arith.constant dense<0xFF800000> : vector<8x8xf32>
    %641 = vector.multi_reduction <maximumf>, %640, %cst_167 [0] : vector<8x8x8xf32> to vector<8x8xf32>
    %642 = vector.shape_cast %641 : vector<8x8xf32> to vector<1x8x8xf32>
    %643 = vector.broadcast %642 : vector<1x8x8xf32> to vector<8x8x8xf32>
    %644 = arith.subf %640, %643 : vector<8x8x8xf32>
    %645 = math.exp %644 : vector<8x8x8xf32>
    %cst_168 = arith.constant dense<0.000000e+00> : vector<8x8xf32>
    %646 = vector.multi_reduction <add>, %645, %cst_168 [0] : vector<8x8x8xf32> to vector<8x8xf32>
    %647 = math.log %646 : vector<8x8xf32>
    %648 = arith.addf %647, %641 : vector<8x8xf32>
    %649 = tpu.concatenate %632, %648 in 0 : vector<8x8xf32>, vector<8x8xf32> -> vector<16x8xf32>
    %cst_169 = arith.constant 0.000000e+00 : f32
    %650 = vector.broadcast %cst_169 : f32 to vector<1x8xf32>
    %651 = arith.cmpf ogt, %603, %650 : vector<1x8xf32>
    %652 = vector.shape_cast %651 : vector<1x8xi1> to vector<1x8xi1>
    %653 = vector.broadcast %652 : vector<1x8xi1> to vector<16x8xi1>
    %654 = arith.select %653, %649, %577 : vector<16x8xi1>, vector<16x8xf32>
    %c0_170 = arith.constant 0 : index
    %c0_171 = arith.constant 0 : index
    %655 = vector.load %arg13[%c0_170, %c0_171] : memref<16x8xf32, #tpu.memory_space<vmem>>, vector<16x8xf32>
    tpu.vector_store %arg13[%c0_170, %c0_171], %654 {strides = array<i32>} : memref<16x8xf32, #tpu.memory_space<vmem>>, vector<16x8xf32>,
    %c0_172 = arith.constant 0 : index
    %c0_173 = arith.constant 0 : index
    %656 = vector.load %arg14[%c0_172, %c0_173] : memref<16x8xf32, #tpu.memory_space<vmem>>, vector<16x8xf32>
    tpu.vector_store %arg14[%c0_172, %c0_173], %602 {strides = array<i32>} : memref<16x8xf32, #tpu.memory_space<vmem>>, vector<16x8xf32>,
    %c0_174 = arith.constant 0 : index
    %c0_175 = arith.constant 0 : index
    %657 = vector.load %arg15[%c0_174, %c0_175] : memref<1x8xf32, #tpu.memory_space<vmem>>, vector<1x8xf32>
    tpu.vector_store %arg15[%c0_174, %c0_175], %610 {strides = array<i32>} : memref<1x8xf32, #tpu.memory_space<vmem>>, vector<1x8xf32>,
    %c0_176 = arith.constant 0 : index
    %c0_177 = arith.constant 0 : index
    %658 = vector.load %arg16[%c0_176, %c0_177] : memref<1x8xf32, #tpu.memory_space<vmem>>, vector<1x8xf32>
    tpu.vector_store %arg16[%c0_176, %c0_177], %616 {strides = array<i32>} : memref<1x8xf32, #tpu.memory_space<vmem>>, vector<1x8xf32>,
    %c2_i32_178 = arith.constant 2 : i32
    %659 = arith.cmpi eq, %arg1, %c2_i32_178 : i32
    %660 = arith.extui %659 : i1 to i32
    %c0_i32_179 = arith.constant 0 : i32
    %661 = arith.cmpi ne, %660, %c0_i32_179 : i32
    scf.if %661 {
      %662 = arith.addf %654, %12 : vector<16x8xf32>
      %cst_180 = arith.constant 0.000000e+00 : f32
      %663 = vector.broadcast %cst_180 : f32 to vector<1x8xf32>
      %664 = vector.extract_strided_slice %662 {offsets = [0, 0], sizes = [8, 8], strides = [1, 1]} : vector<16x8xf32> to vector<8x8xf32>
      %cst_181 = arith.constant dense<0xFF800000> : vector<8xf32>
      %665 = vector.multi_reduction <maximumf>, %664, %cst_181 [0] : vector<8x8xf32> to vector<8xf32>
      %666 = vector.shape_cast %665 : vector<8xf32> to vector<1x8xf32>
      %667 = vector.broadcast %666 : vector<1x8xf32> to vector<8x8xf32>
      %668 = arith.subf %664, %667 : vector<8x8xf32>
      %669 = math.exp %668 : vector<8x8xf32>
      %cst_182 = arith.constant dense<0.000000e+00> : vector<8xf32>
      %670 = vector.multi_reduction <add>, %669, %cst_182 [0] : vector<8x8xf32> to vector<8xf32>
      %671 = vector.shape_cast %670 : vector<8xf32> to vector<1x8xf32>
      %672 = math.log %671 : vector<1x8xf32>
      %673 = arith.addf %663, %672 : vector<1x8xf32>
      %674 = arith.addf %673, %666 : vector<1x8xf32>
      %675 = vector.extract_strided_slice %662 {offsets = [8, 0], sizes = [8, 8], strides = [1, 1]} : vector<16x8xf32> to vector<8x8xf32>
      %cst_183 = arith.constant dense<0xFF800000> : vector<8xf32>
      %676 = vector.multi_reduction <maximumf>, %675, %cst_183 [0] : vector<8x8xf32> to vector<8xf32>
      %677 = vector.shape_cast %676 : vector<8xf32> to vector<1x8xf32>
      %678 = vector.broadcast %677 : vector<1x8xf32> to vector<8x8xf32>
      %679 = arith.subf %675, %678 : vector<8x8xf32>
      %680 = math.exp %679 : vector<8x8xf32>
      %cst_184 = arith.constant dense<0.000000e+00> : vector<8xf32>
      %681 = vector.multi_reduction <add>, %680, %cst_184 [0] : vector<8x8xf32> to vector<8xf32>
      %682 = vector.shape_cast %681 : vector<8xf32> to vector<1x8xf32>
      %683 = math.log %682 : vector<1x8xf32>
      %684 = arith.addf %674, %683 : vector<1x8xf32>
      %685 = arith.addf %684, %677 : vector<1x8xf32>
      %686 = arith.addf %610, %616 : vector<1x8xf32>
      %687 = arith.subf %685, %686 : vector<1x8xf32>
      %688 = vector.shape_cast %687 : vector<1x8xf32> to vector<1x1x8xf32>
      %c0_185 = arith.constant 0 : index
      %c0_186 = arith.constant 0 : index
      %c0_187 = arith.constant 0 : index
      %689 = vector.load %arg12[%c0_185, %c0_186, %c0_187] : memref<1x1x8xf32, #tpu.memory_space<vmem>>, vector<1x1x8xf32>
      tpu.vector_store %arg12[%c0_185, %c0_186, %c0_187], %688 {strides = array<i32>} : memref<1x1x8xf32, #tpu.memory_space<vmem>>, vector<1x1x8xf32>,
    } else {
    }
    return
  }
  func.func @transform_0(%arg0: i32, %arg1: i32) -> (i32, i32, i32) {
    %c0_i32 = arith.constant 0 : i32
    %c0_i32_0 = arith.constant 0 : i32
    return %arg0, %arg1, %c0_i32 : i32, i32, i32
  }
  func.func @transform_1(%arg0: i32, %arg1: i32) -> (i32, i32) {
    %c0_i32 = arith.constant 0 : i32
    %c0_i32_0 = arith.constant 0 : i32
    %c0_i32_1 = arith.constant 0 : i32
    return %c0_i32, %c0_i32_0 : i32, i32
  }
  func.func @transform_2(%arg0: i32, %arg1: i32) -> (i32, i32) {
    %c0_i32 = arith.constant 0 : i32
    %c0_i32_0 = arith.constant 0 : i32
    %c0_i32_1 = arith.constant 0 : i32
    return %c0_i32, %c0_i32_0 : i32, i32
  }
  func.func @transform_3(%arg0: i32, %arg1: i32) -> (i32, i32, i32) {
    %c0_i32 = arith.constant 0 : i32
    %c0_i32_0 = arith.constant 0 : i32
    return %arg1, %c0_i32, %arg0 : i32, i32, i32
  }
  func.func @transform_4(%arg0: i32, %arg1: i32) -> (i32, i32) {
    %c0_i32 = arith.constant 0 : i32
    return %arg1, %arg0 : i32, i32
  }
  func.func @transform_5(%arg0: i32, %arg1: i32) -> (i32, i32) {
    %c0_i32 = arith.constant 0 : i32
    %c0_i32_0 = arith.constant 0 : i32
    return %c0_i32, %arg0 : i32, i32
  }
  func.func @transform_6(%arg0: i32, %arg1: i32) -> (i32, i32) {
    %c0_i32 = arith.constant 0 : i32
    %c0_i32_0 = arith.constant 0 : i32
    %c0_i32_1 = arith.constant 0 : i32
    return %c0_i32, %c0_i32_0 : i32, i32
  }
  func.func @transform_7(%arg0: i32, %arg1: i32) -> (i32, i32) {
    %c0_i32 = arith.constant 0 : i32
    %c0_i32_0 = arith.constant 0 : i32
    %c0_i32_1 = arith.constant 0 : i32
    return %c0_i32, %c0_i32_0 : i32, i32
  }
  func.func @transform_8(%arg0: i32, %arg1: i32) -> (i32, i32) {
    %c0_i32 = arith.constant 0 : i32
    %c0_i32_0 = arith.constant 0 : i32
    %c0_i32_1 = arith.constant 0 : i32
    return %c0_i32, %c0_i32_0 : i32, i32
  }
  func.func @transform_9(%arg0: i32, %arg1: i32) -> (i32, i32) {
    %c0_i32 = arith.constant 0 : i32
    %c0_i32_0 = arith.constant 0 : i32
    %c0_i32_1 = arith.constant 0 : i32
    return %c0_i32, %c0_i32_0 : i32, i32
  }
  func.func @transform_10(%arg0: i32, %arg1: i32) -> (i32, i32, i32) {
    %c0_i32 = arith.constant 0 : i32
    %c0_i32_0 = arith.constant 0 : i32
    %c0_i32_1 = arith.constant 0 : i32
    return %arg0, %c0_i32, %c0_i32_0 : i32, i32, i32
  }
}

</mosaic_0001>

<bundles_post_ra>
// kernel: tpu_custom_call.1
= control target key start
LH: loop header
LB: loop body
LE: loop exit
PB: predicated region body
PF: predicated region fallthrough
CT: control target
= control target key end

     0   :  { %15 = vsyncpa [#allocation7], 0  ;;  %s6286_s0 = inlined_call_operand.hbm [shape: f32[8,24,32], index: 0, kind: input, shape index: {}]   ;;  %s6287_s1 = inlined_call_operand.vmem [shape: f32[16,32], index: 1, kind: input, shape index: {}]   ;;  %s6288_s2 = inlined_call_operand.vmem [shape: f32[16,1], index: 2, kind: input, shape index: {}]   ;;  %s6289_s3 = inlined_call_operand.vmem [shape: s32[24,2,8], index: 3, kind: input, shape index: {}]   ;;  %s6290_s4 = inlined_call_operand.vmem [shape: f32[24,8], index: 4, kind: input, shape index: {}]   ;;  %s6291_s5 = inlined_call_operand.vmem [shape: s32[1,8], index: 5, kind: input, shape index: {}]   ;;  %s6292_s6 = inlined_call_operand.vmem [shape: f32[16,16], index: 6, kind: input, shape index: {}]   ;;  %s6293_s7 = inlined_call_operand.vmem [shape: f32[16,16], index: 7, kind: input, shape index: {}]   ;;  %s6294_s8 = inlined_call_operand.vmem [shape: f32[16,1], index: 8, kind: input, shape index: {}]   ;;  %s6295_s9 = inlined_call_operand.vmem [shape: f32[16,1], index: 9, kind: input, shape index: {}]   ;;  %s6296_s10 = inlined_call_operand.hbm [shape: f32[1,1,8], index: 10, kind: output, shape index: {}]  }
   0x1   :  { %17 = vsyncpa [#allocation7 + $0x1], 0 }
   0x2   :  { %18 = vsyncpa [#allocation8], 0  ;;  %s4138_s13 = smov 0   ;;  %s4140_s14 = smov 0  }
   0x3   :  { %s4142_s15 = smov 0   ;;  %s4144_s16 = smov 0  }
   0x4   :  { %s4146_s17 = smov 0   ;;  %s4148_s18 = smov 0  }
   0x5 LB: > { %s6298_s19 = sadd.s32 4294967295, %s4074_s18   ;;  %s33_s20 = sadd.s32 1, %s4070_s17  ;;  %s4074_s18 = sphi %s4148_s18, %s24_s18   ;;  %s4070_s17 = sphi %s4146_s17, %s6516_s17   ;;  %s4066_s16 = sphi %s4144_s16, %s6515_s16   ;;  %s4062_s15 = sphi %s4142_s15, %s6514_s15   ;;  %s4058_s14 = sphi %s4140_s14, %s6513_s14   ;;  %s4054_s13 = sphi %s4138_s13, %s6512_s13  }
   0x6   : > { %p34_p0 = scmp.ge.s32.totalorder %s33_s20, 3  ;;  %s45_s21 = sadd.s32 1, %s4062_s15 }
   0x7   : > { %p52_p1 = scmp.ne.s32.totalorder %s4062_s15, %s4058_s14  ;;  %p53_p2 = scmp.eq.s32.totalorder %s4074_s18, 0 }
   0x8   : > { %s6518_s20 = smov (%p34_p0, %s33_s20), 0  ;;  %p58_p4 = scmp.ne.s32.totalorder %s4058_s14, %s4054_s13 }
   0x9   : > { %6378 = sst [smem:[#allocation12_spill]] %s6518_s20  ;;  %p4174_p3 = por %p53_p2, %p52_p1 }
   0xa   : > { %s41_s23 = ssub.s32 %s4070_s17, %s6518_s20  ;;  %p59_p5 = scmp.eq.s32.totalorder %s6298_s19, 0 }
   0xb   : > { %p43_p6 = scmp.eq.s32.totalorder %s41_s23, 0  ;;  %p3593_p8 = scmp.lt.s32.totalorder %s4074_s18, 3 }
   0xc   : > { %p4183_p7 = por %p59_p5, %p58_p4  ;;  %s340_s26 = sand.u32 1, %s4062_s15  }
   0xd   : > { %s4189_s25 = scalar_select %p43_p6, %s4062_s15, %s45_s21  }
   0xe   : > { %s3491_s27 = sshll.u32 %s4070_s17, 3  ;;  %s3490_s28 = sshll.u32 %s340_s26, 6 }
   0xf   : > { %6381 = sst [smem:[#allocation13_spill]] %s4189_s25  ;;  %s351_s11 = scalar_lea.hbm %s6286_s0, %s3491_s27 }
  0x10   : > { %s352_s12 = sshll.u32 %s351_s11, 4  ;;  %s344_s13 = scalar_lea.vmem [#allocation6], %s3490_s28  ;;  %s353_s12 = int_to_ptr.hbm [resolvable:$true] %s352_s12 }
  0x11   : > { %s354_s20 = sshll.u32 %s344_s13, 4  ;;  %p3590_p9 = pnand %p3593_p8, %p4174_p3  ;;  %s355_s20 = int_to_ptr.vmem [resolvable:$true] %s354_s20 }
  0x12   : > { %p3492_p10 = scmp.ge.s32.totalorder %s4074_s18, 1  ;;  %s341_s23 = scalar_lea.sflag [#allocation7], %s340_s26 }
  0x13   : > { %s4076_s19 = smov 384   ;;  %s4077_s21 = smov 128  }
  0x14   : > { %s4078_s25 = smov 8   ;;  %p384_p11 = scmp.lt.s32.totalorder %s4074_s18, 4 }
  0x15   : > { %3592 = dma.hbm_to_vmem [thread:$0]  (!%p3590_p9), %s353_s12, 1024, %s355_s20, %s341_s23, %s4076_s19, %s4077_s21, %s4078_s25  }
  0x16   : > { %p385_p12 = pnand %p3492_p10, %p384_p11 }
  0x18   : > { %388 = sbr.rel (%p385_p12) target bundleno = 815 (0x32f), region = 60 }
  0x1d   : > { %s390_s29 = sand.u32 1, %s4058_s14  }
  0x1e   : > { %s3493_s27 = sshll.u32 %s390_s29, 6  ;;  %s391_s30 = scalar_lea.sflag [#allocation7], %s390_s29 }
  0x1f   : > { %s4201_s28 = scalar_lea.vmem [#allocation6], %s3493_s27 }
  0x20   : > { %4045 = dma.done.wait (%p4183_p7), %s391_s30, 1024  }
  0x21   : > { %4047 = vsyncadd (%p4183_p7), %s391_s30, 4294966272  ;;  %s4208_s19 = sshll.u32 %s4066_s16, 3  ;;  %p455_p13 = scmp.lt.s32.totalorder %s4066_s16, 2 }
  0x22   : > { %p447_p0 = scmp.lt.s32.totalorder %s4208_s19, 23  ;;  %p465_p1 = scmp.eq.s32.totalorder %s4066_s16, 0 }
  0x23   : > { %s456_s20 = scalar_select %p455_p13, %s4066_s16, 2 }
  0x24   : > { %s448_s22 = scalar_select %p447_p0, %s4208_s19, 23 }
  0x25   : > { %s3496_s25 = sshll.u32 %s456_s20, 3  ;;  %p3497_p2 = scmp.ne.s32.totalorder %s4066_s16, 0 }
  0x26   : > { %s3495_s26 = sshll.u32 %s448_s22, 1  ;;  %s4218_s24 = scalar_lea.vmem %s6290_s4, %s3496_s25 }
  0x27   : > { %s4223_s21 = scalar_lea.vmem %s6289_s3, %s3495_s26  ;;  %468 = sbr.rel (%p3497_p2) target bundleno = 51 (0x33), region = 68 }
  0x2c   : > { %vm469_vm0 = vcmask 64512   ;;  %v4079_v0 = vmov 0.0   ;;  %vm474_vm1 = vcmask 57344  }
  0x2d   : > { %470 = vst.msk [vmem:[#allocation2] sm:$0xff] %vm469_vm0, %v4079_v0 }
  0x2e   : > { %471 = vst.msk [vmem:[#allocation2 + $0x8] sm:$0xff] %vm469_vm0, %v4079_v0 }
  0x2f   : > { %472 = vst.msk [vmem:[#allocation3] sm:$0xff] %vm469_vm0, %v4079_v0 }
  0x30   : > { %473 = vst.msk [vmem:[#allocation3 + $0x8] sm:$0xff] %vm469_vm0, %v4079_v0 }
  0x31   : > { %475 = vst.msk [vmem:[#allocation4] sm:$0x1] %vm474_vm1, %v4079_v0 }
  0x32   : > { %476 = vst.msk [vmem:[#allocation5] sm:$0x1] %vm474_vm1, %v4079_v0 }
  0x33 PF: > { %v479_v1 = vld [vmem:[%s6288_s2] sm:$0xff]  ;;  %v520_v2 = vlaneseq  ;;  %v643_v4 = vld [vmem:[%s4201_s28 + $0x8] sm:$0x1]  ;;  %v6299_v5 = vmov 0   ;;  %v644_v6 = vld [vmem:[%s4201_s28 + $0x10] sm:$0x1] }
  0x34   : > { %v642_v3 = vld [vmem:[%s4201_s28] sm:$0x1]  ;;  %3651 = vset.pattern.permute.xlu0 %v6299_v5  ;;  %v645_v7 = vld [vmem:[%s4201_s28 + $0x18] sm:$0x1]  ;;  %v647_v10 = vld [vmem:[%s4201_s28 + $0x28] sm:$0x1] }
  0x35   : > { %v646_v8 = vld [vmem:[%s4201_s28 + $0x20] sm:$0x1]  ;;  %483 = vperm.xlu0 %3651, %v479_v1   ;;  %v4235_v9 = vshrl.u32 %v520_v2, 7  ;;  %v648_v11 = vld [vmem:[%s4201_s28 + $0x30] sm:$0x1]  ;;  %v658_v12 = vrot.slane %v643_v4, 7 }
  0x36   : > { %v649_v13 = vld [vmem:[%s4201_s28 + $0x38] sm:$0x1]  ;;  %vm659_vm2 = vcmask 1041409   ;;  %v661_v14 = vrot.slane %v644_v6, 6  ;;  %vm662_vm3 = vcmask 1042434   ;;  %v664_v15 = vrot.slane %v645_v7, 5 }
  0x37   : > { %3653 = vset.pattern.permute.xlu2 %v4235_v9  ;;  %3652 = vset.pattern.permute.xlu1 %v4235_v9  ;;  %v660_v16 = vsel %vm659_vm2, %v658_v12, %v642_v3  ;;  %vm665_vm4 = vcmask 1043459   ;;  %v667_v17 = vrot.slane %v646_v8, 4  ;;  %vm668_vm5 = vcmask 1044484   ;;  %v1012_v18 = vld [vmem:[%s4201_s28 + $0x1] sm:$0x1]  ;;  %v638_v23 = vld [vmem:[#allocation3 + $0x8] sm:$0xff] }
  0x38   : > { %v663_v19 = vsel %vm662_vm3, %v661_v14, %v660_v16  ;;  %v670_v20 = vrot.slane %v647_v10, 3  ;;  %vm671_vm6 = vcmask 1045509   ;;  %v673_v21 = vrot.slane %v648_v11, 2  ;;  %v1013_v22 = vld [vmem:[%s4201_s28 + $0x9] sm:$0x1]  ;;  %752 = vmatpush.msra.mxu1 %v638_v23  ;;  %v4264_v41 = vld [vmem:[%s6293_s7] sm:$0xff] }
  0x39   : > { %v666_v24 = vsel %vm665_vm4, %v664_v15, %v663_v19  ;;  %vm674_vm7 = vcmask 1046534   ;;  %v676_v25 = vrot.slane %v649_v13, 1  ;;  %vm677_vm8 = vcmask 1047559   ;;  %v1014_v26 = vld [vmem:[%s4201_s28 + $0x11] sm:$0x1]  ;;  %v480_v27 = vld [vmem:[%s6288_s2 + $0x8] sm:$0xff] }
  0x3a   : > { %v669_v28 = vsel %vm668_vm5, %v667_v17, %v666_v24  ;;  %vm679_vm9 = vcmask 261120   ;;  %v1015_v29 = vld [vmem:[%s4201_s28 + $0x19] sm:$0x1]  ;;  %v1016_v30 = vld [vmem:[%s4201_s28 + $0x21] sm:$0x1]  ;;  %v1028_v31 = vrot.slane %v1013_v22, 7 }
  0x3b   : > { %v672_v32 = vsel %vm671_vm6, %v670_v20, %v669_v28  ;;  %v1017_v33 = vld [vmem:[%s4201_s28 + $0x29] sm:$0x1]  ;;  %v1018_v34 = vld [vmem:[%s4201_s28 + $0x31] sm:$0x1]  ;;  %v1019_v35 = vld [vmem:[%s4201_s28 + $0x39] sm:$0x1] }
  0x3c   : > { %v675_v36 = vsel %vm674_vm7, %v673_v21, %v672_v32  ;;  %v1029_v37 = vsel %vm659_vm2, %v1028_v31, %v1012_v18  ;;  %v1030_v38 = vrot.slane %v1014_v26, 6  ;;  %v1032_v39 = vrot.slane %v1015_v29, 5  ;;  %v3571_v40 = vld [vmem:[%s4223_s21 + $0xe] sm:$0x3]  ;;  %v711_v46 = vld [vmem:[%s4223_s21] sm:$0x3] }
  0x3d   : > { %v678_v42 = vsel %vm677_vm8, %v676_v25, %v675_v36  ;;  %v1034_v43 = vrot.slane %v1016_v30, 4  ;;  %v1036_v44 = vrot.slane %v1017_v33, 3  ;;  %v1038_v45 = vrot.slane %v1018_v34, 2  ;;  %488 = vperm.xlu0 %3651, %v480_v27   ;;  %v637_v47 = vld [vmem:[#allocation3] sm:$0xff]  ;;  %v4276_v51 = vld [vmem:[%s6287_s1] sm:$0xff]  ;;  %v4316_v13 = vld [vmem:[%s6287_s1 + $0x8] sm:$0xff] }
  0x3e   : > { %3499 = vmatpush.xpose.msk.msra.mxu0 %vm679_vm9, %v678_v42  ;;  %v1031_v48 = vsel %vm662_vm3, %v1030_v38, %v1029_v37  ;;  %v1040_v49 = vrot.slane %v1019_v35, 1  ;;  %v4271_v50 = vadd.s32 8, %v4235_v9  ;;  %753 = vmatpush.msra.mxu1 %v637_v47  ;;  %vm765_vm10 = vcmask 64512   ;;  %v1342_v1 = vld [vmem:[%s4201_s28 + $0xa] sm:$0x1]  ;;  %v4301_v7 = vld [vmem:[%s6292_s6] sm:$0xff] }
  0x3f   : > { %v1033_v52 = vsel %vm665_vm4, %v1032_v39, %v1031_v48  ;;  %v3043_v53 = vperm.slane %v3571_v40, 0  ;;  %v3052_v54 = vperm.slane %v3571_v40, 1  ;;  %v712_v56 = vperm.slane %v711_v46, 0  ;;  %v1343_v2 = vld [vmem:[%s4201_s28 + $0x12] sm:$0x1]  ;;  %s1011_s27 = sadd.s32 1, %s4208_s19 }
  0x40   : > { %v1035_v55 = vsel %vm668_vm5, %v1034_v43, %v1033_v52  ;;  %v721_v57 = vperm.slane %v711_v46, 1  ;;  %v533_v58 = vperm.slane %v4264_v41, 2  ;;  %v519_v60 = vperm.slane %v4264_v41, 0  ;;  %v1344_v8 = vld [vmem:[%s4201_s28 + $0x1a] sm:$0x1]  ;;  %s1340_s30 = sadd.s32 2, %s4208_s19 }
  0x41   : > { %v1037_v59 = vsel %vm671_vm6, %v1036_v44, %v1035_v55  ;;  %vm3045_vm11 = vcmp.eq.s32.totalorder %v4271_v50, %v3043_v53  ;;  %vm3054_vm12 = vcmp.eq.s32.totalorder %v4271_v50, %v3052_v54  ;;  %3500 = vmatmul.msk.f32.vlgmr.msra.gmra.mxu0 %vm679_vm9, %v4276_v51  ;;  %v4081_v62 = vmov 0.0   ;;  %v1345_v10 = vld [vmem:[%s4201_s28 + $0x22] sm:$0x1]  ;;  %v4306_v11 = vld [vmem:[%s4201_s28 + $0x2a] sm:$0x1]  ;;  %s2327_s25 = sadd.s32 5, %s4208_s19 }
  0x42   : > { %v1039_v61 = vsel %vm674_vm7, %v1038_v45, %v1037_v59  ;;  %v3573_v63 = vsel %vm3045_vm11, 1.0, %v4081_v62  ;;  %v3575_v0 = vsel %vm3054_vm12, 1.0, %v4081_v62  ;;  %vm714_vm13 = vcmp.eq.s32.totalorder %v4271_v50, %v712_v56  ;;  %538 = vperm.xlu2 %3653, %v533_v58   ;;  %524 = vperm.xlu1 %3652, %v519_v60   ;;  %v1341_v14 = vld [vmem:[%s4201_s28 + $0x2] sm:$0x1]  ;;  %v1347_v15 = vld [vmem:[%s4201_s28 + $0x32] sm:$0x1] }
  0x43   : > { %v1041_v3 = vsel %vm677_vm8, %v1040_v49, %v1039_v61  ;;  %v4294_v4 = vadd.f32 %v3575_v0, %v3573_v63  ;;  %v3503_v6 = vsel %vm714_vm13, 1.0, %v4081_v62  ;;  %vm723_vm14 = vcmp.eq.s32.totalorder %v4271_v50, %v721_v57  ;;  %v4321_v16 = vld [vmem:[%s4201_s28 + $0x3a] sm:$0x1]  ;;  %v1671_v17 = vld [vmem:[%s4201_s28 + $0xb] sm:$0x1]  ;;  %s2656_s26 = sadd.s32 6, %s4208_s19 }
  0x44   : > { %3508 = vmatpush.xpose.msk.msra.mxu2 %vm679_vm9, %v1041_v3  ;;  %v3505_v12 = vsel %vm723_vm14, 1.0, %v4081_v62  ;;  %vm3044_vm15 = vcmp.eq.s32.totalorder %v4235_v9, %v3043_v53  ;;  %vm3053_vm0 = vcmp.eq.s32.totalorder %v4235_v9, %v3052_v54  ;;  %vm713_vm1 = vcmp.eq.s32.totalorder %v4235_v9, %v712_v56  ;;  %v1672_v22 = vld [vmem:[%s4201_s28 + $0x13] sm:$0x1]  ;;  %v1670_v25 = vld [vmem:[%s4201_s28 + $0x3] sm:$0x1]  ;;  %v4373_v60 = vld [vmem:[%s6292_s6 + $0x8] sm:$0xff] }
  0x45   : > { %6382 = vst [vmem:[#allocation14_spill] sm:$0xff] %v4294_v4  ;;  %v4326_v18 = vadd.f32 %v3505_v12, %v3503_v6  ;;  %v3572_v19 = vsel %vm3044_vm15, 1.0, %v4081_v62  ;;  %v3574_v20 = vsel %vm3053_vm0, 1.0, %v4081_v62  ;;  %v3502_v21 = vsel %vm713_vm1, 1.0, %v4081_v62  ;;  %3654 = vset.pattern.permute.xlu0 %v4235_v9  ;;  %v1673_v26 = vld [vmem:[%s4201_s28 + $0x1b] sm:$0x1] }
  0x46   : > { %3317 = vst.msk [vmem:[#allocation3 + $0x8] sm:$0xff] %vm765_vm10, %v4294_v4  ;;  %v4333_v23 = vadd.f32 %v3574_v20, %v3572_v19  ;;  %vm722_vm11 = vcmp.eq.s32.totalorder %v4235_v9, %v721_v57  ;;  %vm731_vm12 = vcmask 130048   ;;  %v540_v24 = vperm.slane %v4264_v41, 3  ;;  %v1674_v27 = vld [vmem:[%s4201_s28 + $0x23] sm:$0x1]  ;;  %s2985_s11 = sadd.s32 7, %s4208_s19 }
  0x47   : > { %6383 = vst [vmem:[#allocation15_spill] sm:$0xff] %v4326_v18  ;;  %1102 = vmatpush.msra.mxu3 %v4326_v18  ;;  %3509 = vmatmul.msk.f32.vlgmr.msra.gmra.mxu2 %vm679_vm9, %v4276_v51  ;;  %v3504_v28 = vsel %vm722_vm11, 1.0, %v4081_v62  ;;  %v526_v29 = vperm.slane %v4264_v41, 1  ;;  %v1357_v30 = vrot.slane %v1342_v1, 7  ;;  %v1359_v31 = vrot.slane %v1343_v2, 6  ;;  %p3578_p3 = scmp.ne.s32.totalorder %s4066_s16, 2 }
  0x48   : > { %6384 = vst [vmem:[#allocation16_spill] sm:$0xff] %v4333_v23  ;;  %v1675_v32 = vld [vmem:[%s4201_s28 + $0x2b] sm:$0x1]  ;;  %v4348_v33 = vadd.f32 %v3504_v28, %v3502_v21  ;;  %3506 = vmatmul.msk.f32.vlgmr.msra.gmra.mxu1 %vm731_vm12, %v4301_v7  ;;  %v1361_v34 = vrot.slane %v1344_v8, 5  ;;  %v1363_v35 = vrot.slane %v1345_v10, 4  ;;  %v1365_v36 = vrot.slane %v4306_v11, 3 }
  0x49   : > { %3316 = vst.msk [vmem:[#allocation3] sm:$0xff] %vm765_vm10, %v4333_v23  ;;  %v1676_v37 = vld [vmem:[%s4201_s28 + $0x33] sm:$0x1]  ;;  %3501 = vmatmul.msk.f32.gmra.mxu0 %vm679_vm9, %v4316_v13  ;;  %v1358_v38 = vsel %vm659_vm2, %v1357_v30, %v1341_v14  ;;  %v1367_v39 = vrot.slane %v1347_v15, 2  ;;  %v1369_v40 = vrot.slane %v4321_v16, 1  ;;  %v1686_v43 = vrot.slane %v1671_v17, 7 }
  0x4a   : > { %6385 = vst [vmem:[#allocation17_spill] sm:$0xff] %v4348_v33  ;;  %v1677_v42 = vld [vmem:[%s4201_s28 + $0x3b] sm:$0x1]  ;;  %1103 = vmatpush.msra.mxu3 %v4348_v33  ;;  %545 = vperm.xlu2 %3653, %v540_v24   ;;  %v1360_v44 = vsel %vm662_vm3, %v1359_v31, %v1358_v38  ;;  %v1688_v45 = vrot.slane %v1672_v22, 6  ;;  %v1690_v46 = vrot.slane %v1673_v26, 5  ;;  %v1692_v47 = vrot.slane %v1674_v27, 4 }
  0x4b   : > { %v3511_v48 = vld [vmem:[%s4223_s21 + $0x2] sm:$0x3]  ;;  %3516 = vmatmul.msk.f32.vlgmr.msra.gmra.mxu3 %vm731_vm12, %v4301_v7  ;;  %531 = vperm.xlu1 %3652, %v526_v29   ;;  %v1362_v49 = vsel %vm665_vm4, %v1361_v34, %v1360_v44  ;;  %v1687_v52 = vsel %vm659_vm2, %v1686_v43, %v1670_v25  ;;  %v1694_v53 = vrot.slane %v1675_v32, 3  ;;  %v1696_v54 = vrot.slane %v1676_v37, 2  ;;  %v3521_v55 = vld [vmem:[%s4223_s21 + $0x4] sm:$0x3] }
  0x4c   : > { %v1364_v56 = vsel %vm668_vm5, %v1363_v35, %v1362_v49  ;;  %v1689_v57 = vsel %vm662_vm3, %v1688_v45, %v1687_v52  ;;  %v1698_v58 = vrot.slane %v1677_v42, 1  ;;  %v547_v59 = vperm.slane %v4264_v41, 4  ;;  %v2000_v16 = vld [vmem:[%s4201_s28 + $0xc] sm:$0x1]  ;;  %v2001_v21 = vld [vmem:[%s4201_s28 + $0x14] sm:$0x1] }
  0x4d   : > { %v1366_v61 = vsel %vm671_vm6, %v1365_v36, %v1364_v56  ;;  %v1691_v63 = vsel %vm665_vm4, %v1690_v46, %v1689_v57  ;;  %v1069_v0 = vperm.slane %v3511_v48, 0  ;;  %v1078_v1 = vperm.slane %v3511_v48, 1  ;;  %v2002_v22 = vld [vmem:[%s4201_s28 + $0x1c] sm:$0x1]  ;;  %v2003_v24 = vld [vmem:[%s4201_s28 + $0x24] sm:$0x1] }
  0x4e   : > { %v1368_v2 = vsel %vm674_vm7, %v1367_v39, %v1366_v61  ;;  %v1693_v3 = vsel %vm668_vm5, %v1692_v47, %v1691_v63  ;;  %552 = vperm.xlu0 %3654, %v547_v59   ;;  %v1398_v6 = vperm.slane %v3521_v55, 0  ;;  %v1407_v8 = vperm.slane %v3521_v55, 1  ;;  %v4409_v28 = vld [vmem:[%s6293_s7 + $0x8] sm:$0xff]  ;;  %v1999_v29 = vld [vmem:[%s4201_s28 + $0x4] sm:$0x1] }
  0x4f   : > { %3510 = vmatmul.msk.f32.gmra.mxu2 %vm679_vm9, %v4316_v13  ;;  %v1370_v10 = vsel %vm677_vm8, %v1369_v40, %v1368_v2  ;;  %v1695_v11 = vsel %vm671_vm6, %v1694_v53, %v1693_v3  ;;  %vm1071_vm13 = vcmp.eq.s32.totalorder %v4271_v50, %v1069_v0  ;;  %vm1080_vm14 = vcmp.eq.s32.totalorder %v4271_v50, %v1078_v1  ;;  %v2004_v30 = vld [vmem:[%s4201_s28 + $0x2c] sm:$0x1]  ;;  %v4414_v31 = vld [vmem:[%s4201_s28 + $0x34] sm:$0x1]  ;;  %v4417_v32 = vld [vmem:[%s4201_s28 + $0x3c] sm:$0x1] }
  0x50   : > { %3507 = vmatmul.msk.f32.gmra.mxu1 %vm731_vm12, %v4373_v60  ;;  %3518 = vmatpush.xpose.msk.msrb.mxu0 %vm679_vm9, %v1370_v10  ;;  %v1697_v12 = vsel %vm674_vm7, %v1696_v54, %v1695_v11  ;;  %v3513_v14 = vsel %vm1071_vm13, 1.0, %v4081_v62  ;;  %v3515_v15 = vsel %vm1080_vm14, 1.0, %v4081_v62  ;;  %vm1400_vm15 = vcmp.eq.s32.totalorder %v4271_v50, %v1398_v6  ;;  %v2329_v36 = vld [vmem:[%s4201_s28 + $0xd] sm:$0x1]  ;;  %v2330_v37 = vld [vmem:[%s4201_s28 + $0x15] sm:$0x1] }
  0x51   : > { %v1699_v17 = vsel %vm677_vm8, %v1698_v58, %v1697_v12  ;;  %v4394_v19 = vadd.f32 %v3515_v15, %v3513_v14  ;;  %v3523_v20 = vsel %vm1400_vm15, 1.0, %v4081_v62  ;;  %vm1409_vm0 = vcmp.eq.s32.totalorder %v4271_v50, %v1407_v8  ;;  %v2331_v38 = vld [vmem:[%s4201_s28 + $0x1d] sm:$0x1]  ;;  %v2332_v43 = vld [vmem:[%s4201_s28 + $0x25] sm:$0x1] }
  0x52   : > { %3528 = vmatpush.xpose.msk.msrb.mxu2 %vm679_vm9, %v1699_v17  ;;  %v3525_v25 = vsel %vm1409_vm0, 1.0, %v4081_v62  ;;  %v561_v26 = vperm.slane %v4264_v41, 6  ;;  %v554_v27 = vperm.slane %v4264_v41, 5  ;;  %vm1070_vm1 = vcmp.eq.s32.totalorder %v4235_v9, %v1069_v0  ;;  %v2328_v48 = vld [vmem:[%s4201_s28 + $0x5] sm:$0x1] }
  0x53   : > { %6386 = vst [vmem:[#allocation18_spill] sm:$0xff] %v4394_v19  ;;  %3517 = vmatmul.msk.f32.gmra.mxu3 %vm731_vm12, %v4373_v60  ;;  %1431 = vmatpush.msrb.mxu1 %v4394_v19  ;;  %v4422_v34 = vadd.f32 %v3525_v25, %v3523_v20  ;;  %v3512_v35 = vsel %vm1070_vm1, 1.0, %v4081_v62  ;;  %vm1079_vm11 = vcmp.eq.s32.totalorder %v4235_v9, %v1078_v1  ;;  %v568_v42 = vperm.slane %v4264_v41, 7  ;;  %v2333_v49 = vld [vmem:[%s4201_s28 + $0x2d] sm:$0x1] }
  0x54   : > { %vm1399_vm13 = vcmp.eq.s32.totalorder %v4235_v9, %v1398_v6  ;;  %566 = vperm.xlu2 %3653, %v561_v26   ;;  %559 = vperm.xlu1 %3652, %v554_v27   ;;  %v3514_v39 = vsel %vm1079_vm11, 1.0, %v4081_v62  ;;  %vm1408_vm14 = vcmp.eq.s32.totalorder %v4235_v9, %v1407_v8  ;;  %v582_v46 = vperm.slane %v4409_v28, 1  ;;  %v2334_v55 = vld [vmem:[%s4201_s28 + $0x35] sm:$0x1]  ;;  %v2335_v61 = vld [vmem:[%s4201_s28 + $0x3d] sm:$0x1] }
  0x55   : > { %6387 = vst [vmem:[#allocation19_spill] sm:$0xff] %v4422_v34  ;;  %v3522_v40 = vsel %vm1399_vm13, 1.0, %v4081_v62  ;;  %1760 = vmatpush.msrb.mxu3 %v4422_v34  ;;  %3519 = vmatmul.msk.f32.vlgmr.msrb.gmra.mxu0 %vm679_vm9, %v4276_v51  ;;  %v4438_v44 = vadd.f32 %v3514_v39, %v3512_v35  ;;  %v3524_v45 = vsel %vm1408_vm14, 1.0, %v4081_v62  ;;  %v2015_v47 = vrot.slane %v2000_v16, 7  ;;  %v3531_v3 = vld [vmem:[%s4223_s21 + $0x6] sm:$0x3] }
  0x56   : > { %v4444_v52 = vadd.f32 %v3524_v45, %v3522_v40  ;;  %3656 = vset.pattern.permute.xlu0 %v4271_v50  ;;  %v2017_v41 = vrot.slane %v2001_v21, 6  ;;  %v2019_v53 = vrot.slane %v2002_v22, 5  ;;  %v2021_v54 = vrot.slane %v2003_v24, 4  ;;  %v3541_v12 = vld [vmem:[%s4223_s21 + $0x8] sm:$0x3] }
  0x57   : > { %6388 = vst [vmem:[#allocation20_spill] sm:$0xff] %v4438_v44  ;;  %3529 = vmatmul.msk.f32.vlgmr.msrb.gmra.mxu2 %vm679_vm9, %v4276_v51  ;;  %1432 = vmatpush.msrb.mxu1 %v4438_v44  ;;  %v2016_v56 = vsel %vm659_vm2, %v2015_v47, %v1999_v29  ;;  %v2023_v57 = vrot.slane %v2004_v30, 3  ;;  %v2025_v58 = vrot.slane %v4414_v31, 2  ;;  %v2027_v59 = vrot.slane %v4417_v32, 1  ;;  %v2661_v45 = vld [vmem:[%s4201_s28 + $0x26] sm:$0x1] }
  0x58   : > { %6389 = vst [vmem:[#allocation21_spill] sm:$0xff] %v4444_v52  ;;  %1761 = vmatpush.msrb.mxu3 %v4444_v52  ;;  %3526 = vmatmul.msk.f32.vlgmr.msrb.gmra.mxu1 %vm731_vm12, %v4301_v7  ;;  %v2018_v63 = vsel %vm662_vm3, %v2017_v41, %v2016_v56  ;;  %v2344_v0 = vrot.slane %v2329_v36, 7  ;;  %v2346_v1 = vrot.slane %v2330_v37, 6  ;;  %v2348_v2 = vrot.slane %v2331_v38, 5  ;;  %v2658_v37 = vld [vmem:[%s4201_s28 + $0xe] sm:$0x1] }
  0x59   : > { %v2020_v6 = vsel %vm665_vm4, %v2019_v53, %v2018_v63  ;;  %v2350_v8 = vrot.slane %v2332_v43, 4  ;;  %v2352_v10 = vrot.slane %v2333_v49, 3  ;;  %v2354_v11 = vrot.slane %v2334_v55, 2  ;;  %v2660_v43 = vld [vmem:[%s4201_s28 + $0x1e] sm:$0x1] }
  0x5a   : > { %v2022_v14 = vsel %vm668_vm5, %v2021_v54, %v2020_v6  ;;  %v2345_v15 = vsel %vm659_vm2, %v2344_v0, %v2328_v48  ;;  %v2356_v16 = vrot.slane %v2335_v61, 1  ;;  %v575_v17 = vperm.slane %v4409_v28, 0  ;;  %v2657_v48 = vld [vmem:[%s4201_s28 + $0x6] sm:$0x1]  ;;  %v2662_v49 = vld [vmem:[%s4201_s28 + $0x2e] sm:$0x1] }
  0x5b   : > { %3536 = vmatmul.msk.f32.vlgmr.msrb.gmra.mxu3 %vm731_vm12, %v4301_v7  ;;  %v2024_v20 = vsel %vm671_vm6, %v2023_v57, %v2022_v14  ;;  %v2347_v21 = vsel %vm662_vm3, %v2346_v1, %v2345_v15  ;;  %v1727_v22 = vperm.slane %v3531_v3, 0  ;;  %v1736_v24 = vperm.slane %v3531_v3, 1  ;;  %v2663_v41 = vld [vmem:[%s4201_s28 + $0x36] sm:$0x1]  ;;  %v2987_v56 = vld [vmem:[%s4201_s28 + $0xf] sm:$0x1] }
  0x5c   : > { %3655 = vset.pattern.permute.xlu2 %v4271_v50  ;;  %573 = vperm.xlu1 %3652, %v568_v42   ;;  %v2026_v25 = vsel %vm674_vm7, %v2025_v58, %v2024_v20  ;;  %v2349_v26 = vsel %vm665_vm4, %v2348_v2, %v2347_v21  ;;  %v2056_v27 = vperm.slane %v3541_v12, 0  ;;  %v2065_v29 = vperm.slane %v3541_v12, 1  ;;  %v2659_v42 = vld [vmem:[%s4201_s28 + $0x16] sm:$0x1]  ;;  %v2988_v57 = vld [vmem:[%s4201_s28 + $0x17] sm:$0x1] }
  0x5d   : > { %3520 = vmatmul.msk.f32.gmra.mxu0 %vm679_vm9, %v4316_v13  ;;  %v2028_v30 = vsel %vm677_vm8, %v2027_v59, %v2026_v25  ;;  %v2351_v31 = vsel %vm668_vm5, %v2350_v8, %v2349_v26  ;;  %vm1729_vm15 = vcmp.eq.s32.totalorder %v4271_v50, %v1727_v22  ;;  %vm1738_vm0 = vcmp.eq.s32.totalorder %v4271_v50, %v1736_v24  ;;  %v2664_v63 = vld [vmem:[%s4201_s28 + $0x3e] sm:$0x1]  ;;  %v2989_v0 = vld [vmem:[%s4201_s28 + $0x1f] sm:$0x1]  ;;  %v2990_v1 = vld [vmem:[%s4201_s28 + $0x27] sm:$0x1] }
  0x5e   : > { %587 = vperm.xlu0 %3656, %v582_v46   ;;  %3538 = vmatpush.xpose.msk.msra.mxu0 %vm679_vm9, %v2028_v30  ;;  %v2353_v32 = vsel %vm671_vm6, %v2352_v10, %v2351_v31  ;;  %v3533_v35 = vsel %vm1729_vm15, 1.0, %v4081_v62  ;;  %v3535_v36 = vsel %vm1738_vm0, 1.0, %v4081_v62  ;;  %vm2058_vm1 = vcmp.eq.s32.totalorder %v4271_v50, %v2056_v27  ;;  %v2986_v8 = vld [vmem:[%s4201_s28 + $0x7] sm:$0x1]  ;;  %v2991_v10 = vld [vmem:[%s4201_s28 + $0x2f] sm:$0x1] }
  0x5f   : > { %3530 = vmatmul.msk.f32.gmra.mxu2 %vm679_vm9, %v4316_v13  ;;  %v2355_v38 = vsel %vm674_vm7, %v2354_v11, %v2353_v32  ;;  %v4487_v39 = vadd.f32 %v3535_v36, %v3533_v35  ;;  %v3543_v40 = vsel %vm2058_vm1, 1.0, %v4081_v62  ;;  %vm2067_vm11 = vcmp.eq.s32.totalorder %v4271_v50, %v2065_v29  ;;  %v3551_v30 = vld [vmem:[%s4223_s21 + $0xa] sm:$0x3]  ;;  %s4742_s29 = scalar_select %p465_p1, 1, 0 }
  0x60   : > { %3527 = vmatmul.msk.f32.gmra.mxu1 %vm731_vm12, %v4373_v60  ;;  %v2357_v46 = vsel %vm677_vm8, %v2356_v16, %v2355_v38  ;;  %v3545_v47 = vsel %vm2067_vm11, 1.0, %v4081_v62  ;;  %vm1728_vm13 = vcmp.eq.s32.totalorder %v4235_v9, %v1727_v22  ;;  %vm1737_vm14 = vcmp.eq.s32.totalorder %v4235_v9, %v1736_v24  ;;  %v2992_v16 = vld [vmem:[%s4201_s28 + $0x37] sm:$0x1]  ;;  %v2993_v24 = vld [vmem:[%s4201_s28 + $0x3f] sm:$0x1]  ;;  %s1669_s28 = sadd.s32 3, %s4208_s19 }
  0x61   : > { %6390 = vst [vmem:[#allocation22_spill] sm:$0xff] %v4487_v39  ;;  %3548 = vmatpush.xpose.msk.msra.mxu2 %vm679_vm9, %v2357_v46  ;;  %2089 = vmatpush.msra.mxu1 %v4487_v39  ;;  %v4505_v53 = vadd.f32 %v3545_v47, %v3543_v40  ;;  %v3532_v54 = vsel %vm1728_vm13, 1.0, %v4081_v62  ;;  %v3534_v55 = vsel %vm1737_vm14, 1.0, %v4081_v62  ;;  %vm2057_vm15 = vcmp.eq.s32.totalorder %v4235_v9, %v2056_v27 }
  0x62   : > { %v4512_v58 = vadd.f32 %v3534_v55, %v3532_v54  ;;  %v3542_v59 = vsel %vm2057_vm15, 1.0, %v4081_v62  ;;  %vm2066_vm0 = vcmp.eq.s32.totalorder %v4235_v9, %v2065_v29  ;;  %v617_v61 = vperm.slane %v4409_v28, 6 }
  0x63   : > { %6391 = vst [vmem:[#allocation23_spill] sm:$0xff] %v4505_v53  ;;  %3537 = vmatmul.msk.f32.gmra.mxu3 %vm731_vm12, %v4373_v60  ;;  %v3544_v2 = vsel %vm2066_vm0, 1.0, %v4081_v62  ;;  %v596_v3 = vperm.slane %v4409_v28, 3  ;;  %v2673_v6 = vrot.slane %v2658_v37, 7  ;;  %v2675_v12 = vrot.slane %v2659_v42, 6 }
  0x64   : > { %6392 = vst [vmem:[#allocation24_spill] sm:$0xff] %v4512_v58  ;;  %580 = vperm.xlu2 %3655, %v575_v17   ;;  %3657 = vset.pattern.permute.xlu1 %v4271_v50  ;;  %v4527_v11 = vadd.f32 %v3544_v2, %v3542_v59  ;;  %v2677_v14 = vrot.slane %v2660_v43, 5  ;;  %v2679_v15 = vrot.slane %v2661_v45, 4  ;;  %v589_v20 = vperm.slane %v4409_v28, 2  ;;  %v3561_v37 = vld [vmem:[%s4223_s21 + $0xc] sm:$0x3] }
  0x65   : > { %2418 = vmatpush.msra.mxu3 %v4505_v53  ;;  %3539 = vmatmul.msk.f32.vlgmr.msra.gmra.mxu0 %vm679_vm9, %v4276_v51  ;;  %v2674_v21 = vsel %vm659_vm2, %v2673_v6, %v2657_v48  ;;  %v2681_v22 = vrot.slane %v2662_v49, 3  ;;  %v2683_v17 = vrot.slane %v2663_v41, 2  ;;  %v3002_v26 = vrot.slane %v2987_v56, 7  ;;  %s1998_s21 = sadd.s32 4, %s4208_s19 }
  0x66   : > { %2090 = vmatpush.msra.mxu1 %v4512_v58  ;;  %622 = vperm.xlu0 %3656, %v617_v61   ;;  %v2676_v25 = vsel %vm662_vm3, %v2675_v12, %v2674_v21  ;;  %v3004_v27 = vrot.slane %v2988_v57, 6  ;;  %v3006_v29 = vrot.slane %v2989_v0, 5  ;;  %v2685_v32 = vrot.slane %v2664_v63, 1  ;;  %v492_v63 = vld [vmem:[%s6294_s8 + $0x8] sm:$0xff] }
  0x67   : > { %3549 = vmatmul.msk.f32.vlgmr.msra.gmra.mxu2 %vm679_vm9, %v4276_v51  ;;  %2419 = vmatpush.msra.mxu3 %v4527_v11  ;;  %v2678_v31 = vsel %vm665_vm4, %v2677_v14, %v2676_v25  ;;  %v3008_v35 = vrot.slane %v2990_v1, 4  ;;  %v3010_v36 = vrot.slane %v2991_v10, 3  ;;  %v3003_v40 = vsel %vm659_vm2, %v3002_v26, %v2986_v8  ;;  %v4642_v26 = vld [vmem:[#allocation2] sm:$0xff] }
  0x68   : > { %3546 = vmatmul.msk.f32.vlgmr.msra.gmra.mxu1 %vm731_vm12, %v4301_v7  ;;  %v2680_v38 = vsel %vm668_vm5, %v2679_v15, %v2678_v31  ;;  %v3012_v42 = vrot.slane %v2992_v16, 2  ;;  %v3014_v43 = vrot.slane %v2993_v24, 1  ;;  %v3005_v46 = vsel %vm662_vm3, %v3004_v27, %v3003_v40 }
  0x69   : > { %v2682_v45 = vsel %vm671_vm6, %v2681_v22, %v2680_v38  ;;  %v610_v47 = vperm.slane %v4409_v28, 5  ;;  %v2385_v48 = vperm.slane %v3551_v30, 0  ;;  %v3007_v41 = vsel %vm665_vm4, %v3006_v29, %v3005_v46 }
  0x6a   : > { %v2684_v49 = vsel %vm674_vm7, %v2683_v17, %v2682_v45  ;;  %v2394_v54 = vperm.slane %v3551_v30, 1  ;;  %v2714_v55 = vperm.slane %v3561_v37, 0  ;;  %v3009_v57 = vsel %vm668_vm5, %v3008_v35, %v3007_v41 }
  0x6b   : > { %3556 = vmatmul.msk.f32.vlgmr.msra.gmra.mxu3 %vm731_vm12, %v4301_v7  ;;  %v2686_v56 = vsel %vm677_vm8, %v2685_v32, %v2684_v49  ;;  %vm2387_vm2 = vcmp.eq.s32.totalorder %v4271_v50, %v2385_v48  ;;  %v2723_v59 = vperm.slane %v3561_v37, 1  ;;  %v3011_v61 = vsel %vm671_vm6, %v3010_v36, %v3009_v57 }
  0x6c   : > { %601 = vperm.xlu2 %3655, %v596_v3   ;;  %594 = vperm.xlu1 %3657, %v589_v20   ;;  %v3553_v0 = vsel %vm2387_vm2, 1.0, %v4081_v62  ;;  %vm2396_vm3 = vcmp.eq.s32.totalorder %v4271_v50, %v2394_v54  ;;  %vm2716_vm4 = vcmp.eq.s32.totalorder %v4271_v50, %v2714_v55  ;;  %v3013_v1 = vsel %vm674_vm7, %v3012_v42, %v3011_v61 }
  0x6d   : > { %3540 = vmatmul.msk.f32.gmra.mxu0 %vm679_vm9, %v4316_v13  ;;  %v3555_v2 = vsel %vm2396_vm3, 1.0, %v4081_v62  ;;  %v3563_v3 = vsel %vm2716_vm4, 1.0, %v4081_v62  ;;  %vm2725_vm5 = vcmp.eq.s32.totalorder %v4271_v50, %v2723_v59  ;;  %v3015_v6 = vsel %vm677_vm8, %v3014_v43, %v3013_v1 }
  0x6e   : > { %3659 = vset.pattern.permute.xlu0 %v6299_v5  ;;  %3558 = vmatpush.xpose.msk.msrb.mxu0 %vm679_vm9, %v2686_v56  ;;  %v4574_v8 = vadd.f32 %v3555_v2, %v3553_v0  ;;  %v3565_v10 = vsel %vm2725_vm5, 1.0, %v4081_v62  ;;  %vm2386_vm6 = vcmp.eq.s32.totalorder %v4235_v9, %v2385_v48  ;;  %vm2395_vm7 = vcmp.eq.s32.totalorder %v4235_v9, %v2394_v54 }
  0x6f   : > { %3550 = vmatmul.msk.f32.gmra.mxu2 %vm679_vm9, %v4316_v13  ;;  %500 = vperm.xlu0 %3659, %v492_v63   ;;  %v4580_v12 = vadd.f32 %v3565_v10, %v3563_v3  ;;  %v3552_v14 = vsel %vm2386_vm6, 1.0, %v4081_v62  ;;  %vm2715_vm1 = vcmp.eq.s32.totalorder %v4235_v9, %v2714_v55  ;;  %v603_v15 = vperm.slane %v4409_v28, 4 }
  0x70   : > { %6393 = vst [vmem:[#allocation25_spill] sm:$0xff] %v4574_v8  ;;  %3547 = vmatmul.msk.f32.gmra.mxu1 %vm731_vm12, %v4373_v60  ;;  %3568 = vmatpush.xpose.msk.msrb.mxu2 %vm679_vm9, %v3015_v6  ;;  %v3554_v16 = vsel %vm2395_vm7, 1.0, %v4081_v62  ;;  %v3562_v20 = vsel %vm2715_vm1, 1.0, %v4081_v62  ;;  %vm2724_vm8 = vcmp.eq.s32.totalorder %v4235_v9, %v2723_v59  ;;  %v624_v9 = vperm.slane %v4409_v28, 7 }
  0x71   : > { %6394 = vst [vmem:[#allocation26_spill] sm:$0xff] %v4580_v12  ;;  %2747 = vmatpush.msrb.mxu1 %v4574_v8  ;;  %3076 = vmatpush.msrb.mxu3 %v4580_v12  ;;  %v4594_v21 = vadd.f32 %v3554_v16, %v3552_v14  ;;  %v3564_v22 = vsel %vm2724_vm8, 1.0, %v4081_v62  ;;  %v491_v62 = vld [vmem:[%s6294_s8] sm:$0xff]  ;;  %v811_v29 = vrot.slane %v4642_v26, 4  ;;  %v808_v30 = vrot.slane %v4642_v26, 1 }
  0x72   : > { %v4597_v17 = vadd.f32 %v3564_v22, %v3562_v20  ;;  %v809_v31 = vrot.slane %v4642_v26, 2  ;;  %v813_v32 = vrot.slane %v4642_v26, 6  ;;  %v810_v36 = vrot.slane %v4642_v26, 3 }
  0x73   : > { %6395 = vst [vmem:[#allocation27_spill] sm:$0xff] %v4594_v21  ;;  %3557 = vmatmul.msk.f32.gmra.mxu3 %vm731_vm12, %v4373_v60  ;;  %2748 = vmatpush.msrb.mxu1 %v4594_v21  ;;  %v819_v38 = vperm.slane %v811_v29, 0  ;;  %v816_v42 = vperm.slane %v808_v30, 0  ;;  %v814_v48 = vrot.slane %v4642_v26, 7  ;;  %v815_v54 = vperm.slane %v4642_v26, 0 }
  0x74   : > { %6396 = vst [vmem:[#allocation28_spill] sm:$0xff] %v4597_v17  ;;  %615 = vperm.xlu2 %3655, %v610_v47   ;;  %608 = vperm.xlu1 %3657, %v603_v15   ;;  %v817_v45 = vperm.slane %v809_v31, 0  ;;  %v821_v46 = vperm.slane %v813_v32, 0  ;;  %v818_v49 = vperm.slane %v810_v36, 0  ;;  %vm3318_vm0 = vcmask 57344  }
  0x75   : > { %3559 = vmatmul.msk.f32.vlgmr.msrb.gmra.mxu0 %vm679_vm9, %v4276_v51  ;;  %3077 = vmatpush.msrb.mxu3 %v4597_v17  ;;  %v822_v0 = vperm.slane %v814_v48, 0 }
  0x77   : > { %3569 = vmatmul.msk.f32.vlgmr.msrb.gmra.mxu2 %vm679_vm9, %v4276_v51  ;;  %3661 = vset.pattern.permute.xlu0 %v4271_v50  ;;  %v503_v50 = vld [vmem:[%s6295_s9] sm:$0xff]  ;;  %v504_v51 = vld [vmem:[%s6295_s9 + $0x8] sm:$0xff] }
  0x78   : > { %3566 = vmatmul.msk.f32.vlgmr.msrb.gmra.mxu1 %vm731_vm12, %v4301_v7 }
  0x7b   : > { %3576 = vmatmul.msk.f32.vlgmr.msrb.gmra.mxu3 %vm731_vm12, %v4301_v7 }
  0x7c   : > { %629 = vperm.xlu1 %3657, %v624_v9   ;;  %3658 = vset.pattern.permute.xlu2 %v6299_v5 }
  0x7d   : > { %495 = vperm.xlu2 %3658, %v491_v62   ;;  %3560 = vmatmul.msk.f32.gmra.mxu0 %vm679_vm9, %v4316_v13 }
  0x7f   : > { %3570 = vmatmul.msk.f32.gmra.mxu2 %vm679_vm9, %v4316_v13 }
  0x80   : > { %3567 = vmatmul.msk.f32.gmra.mxu1 %vm731_vm12, %v4373_v60 }
  0x83   : > { %3577 = vmatmul.msk.f32.gmra.mxu3 %vm731_vm12, %v4373_v60  ;;  %v812_v60 = vrot.slane %v4642_v26, 5 }
  0x84   : > { %3660 = vset.pattern.permute.xlu1 %v6299_v5 }
  0x85   : > { %507 = vperm.xlu1 %3660, %v503_v50   ;;  %512 = vperm.xlu2 %3658, %v504_v51   ;;  %v820_v35 = vperm.slane %v812_v60, 0 }
  0x9c   : > { %v4636_v28 = vpop.permute.xlu2 %538 }
  0x9d   : > { %v833_v59 = vadd.f32 %v817_v45, %v4636_v28 }
  0xa4   : > { %v4645_v27 = vpop.permute.xlu2 %545 }
  0xa5   : > { %6397 = vst [vmem:[#allocation29_spill] sm:$0xff] %v4645_v27  ;;  %v834_v1 = vadd.f32 %v818_v49, %v4645_v27 }
  0xa7   : > { %v4632_v7 = vpop.permute.xlu0 %483 }
  0xae   : > { %v4663_v56 = vpop.permute.xlu2 %566 }
  0xaf   : > { %v4638_v24 = vpop.permute.xlu0 %488  ;;  %6400 = vst [vmem:[#allocation32_spill] sm:$0xff] %v4663_v56  ;;  %v837_v61 = vadd.f32 %v821_v46, %v4663_v56 }
  0xb4   : > { %v4634_v13 = vpop.permute.xlu1 %524 }
  0xb5   : > { %v831_v3 = vadd.f32 %v815_v54, %v4634_v13 }
  0xbd   : > { %v4640_v25 = vpop.permute.xlu1 %531 }
  0xbe   : > { %v705_v37 = vpop.f32.mrf.mxu0  ;;  %v832_v57 = vadd.f32 %v816_v42, %v4640_v25 }
  0xbf   : > { %v4659_v41 = vadd.f32 %v705_v37, %v4632_v7 }
  0xc0   : > { %v4654_v43 = vpop.permute.xlu0 %552 }
  0xc1   : > { %6399 = vst [vmem:[#allocation31_spill] sm:$0xff] %v4654_v43  ;;  %v835_v55 = vadd.f32 %v819_v38, %v4654_v43  ;;  %v840_v2 = vadd.f32 %v832_v57, %v4659_v41  ;;  %v841_v10 = vadd.f32 %v833_v59, %v4659_v41  ;;  %v4677_v14 = vadd.f32 %v837_v61, %v4659_v41 }
  0xc2   : > { %v839_v16 = vadd.f32 %v831_v3, %v4659_v41  ;;  %v842_v9 = vadd.f32 %v834_v1, %v4659_v41 }
  0xc3   : > { %v843_v6 = vadd.f32 %v835_v55, %v4659_v41  ;;  %v848_v62 = vsel %vm765_vm10, %v840_v2, -inf  ;;  %v849_v60 = vsel %vm765_vm10, %v841_v10, -inf  ;;  %v855_v29 = vsel %vm765_vm10, %v4677_v14, -inf  ;;  %v4703_v55 = vld [vmem:[#allocation2 + $0x8] sm:$0xff] }
  0xc4   : > { %v847_v31 = vsel %vm765_vm10, %v839_v16, -inf  ;;  %v850_v32 = vsel %vm765_vm10, %v842_v9, -inf  ;;  %v856_v37 = vmax.f32 %v849_v60, %v855_v29  ;;  %v911_v17 = vrot.slane %v4703_v55, 7 }
  0xc5   : > { %v851_v50 = vsel %vm765_vm10, %v843_v6, -inf  ;;  %v755_v42 = vpop.f32.mrf.mxu1 }
  0xc6   : > { %v4652_v40 = vpop.permute.xlu1 %559  ;;  %v852_v36 = vmax.f32 %v847_v31, %v851_v50  ;;  %v708_v61 = vpop.f32.mrf.mxu0 }
  0xc7   : > { %6398 = vst [vmem:[#allocation30_spill] sm:$0xff] %v4652_v40  ;;  %v836_v47 = vadd.f32 %v820_v35, %v4652_v40  ;;  %v4715_v60 = vadd.f32 %v708_v61, %v4638_v24 }
  0xc9   : > { %v4669_v63 = vadd.f32 %v836_v47, %v4659_v41  ;;  %v4698_v47 = vpop.permute.xlu2 %580 }
  0xca   : > { %6402 = vst [vmem:[#allocation34_spill] sm:$0xff] %v4698_v47  ;;  %v1061_v49 = vpop.f32.mrf.mxu2 }
  0xcb   : > { %v853_v20 = vsel %vm765_vm10, %v4669_v63, -inf  ;;  %v4752_v23 = vadd.f32 %v1061_v49, %v4632_v7 }
  0xcc   : > { %v854_v30 = vmax.f32 %v848_v62, %v853_v20  ;;  %v907_v62 = vrot.slane %v4703_v55, 3 }
  0xce   : > { %v4679_v15 = vpop.permute.xlu1 %573  ;;  %v859_v45 = vmax.f32 %v852_v36, %v854_v30  ;;  %v4708_v3 = vpop.f32.mrf.mxu3  ;;  %v912_v30 = vperm.slane %v4703_v55, 0 }
  0xcf   : > { %6401 = vst [vmem:[#allocation33_spill] sm:$0xff] %v4679_v15  ;;  %v838_v22 = vadd.f32 %v822_v0, %v4679_v15 }
  0xd1   : > { %v4689_v51 = vadd.f32 %v838_v22, %v4659_v41  ;;  %v4721_v31 = vpop.permute.xlu2 %601 }
  0xd2   : > { %6404 = vst [vmem:[#allocation36_spill] sm:$0xff] %v4721_v31 }
  0xd3   : > { %v857_v35 = vsel %vm765_vm10, %v4689_v51, -inf }
  0xd4   : > { %v858_v38 = vmax.f32 %v850_v32, %v857_v35  ;;  %v915_v32 = vperm.slane %v907_v62, 0  ;;  %v4723_v35 = vpop.permute.xlu0 %587 }
  0xd5   : > { %6405 = vst [vmem:[#allocation37_spill] sm:$0xff] %v4723_v35 }
  0xd6   : > { %v860_v46 = vmax.f32 %v856_v37, %v858_v38  ;;  %v909_v38 = vrot.slane %v4703_v55, 5 }
  0xd8   : > { %v4700_v48 = vmax.f32 %v859_v45, %v860_v46 }
  0xda   : > { %v864_v54 = vsub.f32 %v841_v10, %v4700_v48  ;;  %v862_v57 = vsub.f32 %v839_v16, %v4700_v48  ;;  %v863_v59 = vsub.f32 %v840_v2, %v4700_v48  ;;  %v865_v0 = vsub.f32 %v842_v9, %v4700_v48  ;;  %v758_v2 = vpop.f32.mrf.mxu1 }
  0xdb   : > { %v866_v50 = vsub.f32 %v843_v6, %v4700_v48  ;;  %v761_v16 = vadd.f32 %v755_v42, %v4659_v41  ;;  %v867_v9 = vsub.f32 %v4669_v63, %v4700_v48  ;;  %v868_v6 = vsub.f32 %v4677_v14, %v4700_v48  ;;  %v1064_v42 = vpop.f32.mrf.mxu2 }
  0xdc   : > { %v874_v1 = vmul.f32 1.442695, %v864_v54  ;;  %v870_v20 = vmul.f32 1.442695, %v862_v57  ;;  %v872_v10 = vmul.f32 1.442695, %v863_v59  ;;  %v762_v37 = vadd.f32 %v758_v2, %v4715_v60 }
  0xdd   : > { %v876_v29 = vmul.f32 1.442695, %v865_v0  ;;  %v878_v36 = vmul.f32 1.442695, %v866_v50  ;;  %v905_v63 = vrot.slane %v4703_v55, 1  ;;  %v763_v45 = vmul.f32 %v761_v16, %v4348_v33 }
  0xde   : > { %v4710_v22 = vpop.permute.xlu1 %594  ;;  %3662 = vpow2.f32 %v874_v1  ;;  %v869_v46 = vsub.f32 %v4689_v51, %v4700_v48  ;;  %v880_v54 = vmul.f32 1.442695, %v867_v9  ;;  %v928_v57 = vadd.f32 %v912_v30, %v4698_v47 }
  0xdf   : > { %6403 = vst [vmem:[#allocation35_spill] sm:$0xff] %v4710_v22  ;;  %3664 = vpow2.f32 %v870_v20  ;;  %v906_v14 = vrot.slane %v4703_v55, 2  ;;  %v908_v59 = vrot.slane %v4703_v55, 4  ;;  %v931_v0 = vadd.f32 %v915_v32, %v4721_v31  ;;  %v1390_v32 = vpop.f32.mrf.mxu0 }
  0xe0   : > { %3666 = vpow2.f32 %v872_v10  ;;  %v882_v1 = vmul.f32 1.442695, %v868_v6  ;;  %v764_v50 = vmul.f32 %v762_v37, %v4326_v18  ;;  %v917_v51 = vperm.slane %v909_v38, 0  ;;  %v1108_v10 = vpop.f32.mrf.mxu3 }
  0xe1   : > { %3668 = vpow2.f32 %v876_v29  ;;  %v913_v16 = vperm.slane %v905_v63, 0  ;;  %v910_v2 = vrot.slane %v4703_v55, 6  ;;  %v766_v9 = vsel %vm765_vm10, %v763_v45, 0.0 }
  0xe2   : > { %3670 = vpow2.f32 %v878_v36  ;;  %v884_v30 = vmul.f32 1.442695, %v869_v46  ;;  %v914_v37 = vperm.slane %v906_v14, 0  ;;  %v916_v38 = vperm.slane %v908_v59, 0  ;;  %v1434_v49 = vpop.f32.mrf.mxu1 }
  0xe3   : > { %3672 = vpow2.f32 %v880_v54  ;;  %v4749_v63 = vadd.f32 %v928_v57, %v4715_v60  ;;  %v4755_v46 = vadd.f32 %v931_v0, %v4715_v60  ;;  %v767_v54 = vsel %vm765_vm10, %v764_v50, 0.0  ;;  %v4769_v0 = vld [vmem:[%s4218_s24] sm:$0x1]  ;;  %v1719_v12 = vpop.f32.mrf.mxu2 }
  0xe4   : > { %v3663_v61 = vpop.eup %3662  ;;  %3674 = vpow2.f32 %v882_v1  ;;  %v918_v59 = vperm.slane %v910_v2, 0  ;;  %v4763_v4 = vadd.f32 %v1064_v42, %v4638_v24  ;;  %v929_v1 = vadd.f32 %v913_v16, %v4723_v35 }
  0xe5   : > { %v3665_v62 = vpop.eup %3664  ;;  %v889_v14 = vsel %vm765_vm10, %v3663_v61, 0.0  ;;  %3676 = vpow2.f32 %v884_v30  ;;  %v4776_v2 = vsel %vm765_vm10, %v4749_v63, -inf  ;;  %v768_v30 = vadd.f32 %v767_v54, %v766_v9 }
  0xe6   : > { %v4737_v20 = vpop.permute.xlu1 %608  ;;  %v3667_v29 = vpop.eup %3666  ;;  %v886_v6 = vsel %vm765_vm10, %v3665_v62, 0.0  ;;  %6408 = vst [vmem:[#allocation40_spill] sm:$0xff] %v4763_v4  ;;  %vm1001_vm9 = vcmp.gt.f32.partialorder %v4769_v0, 0.0  ;;  %v1111_v9 = vadd.f32 %v4708_v3, %v4752_v23 }
  0xe7   : > { %6406 = vst [vmem:[#allocation38_spill] sm:$0xff] %v4737_v20  ;;  %v887_v36 = vsel %vm765_vm10, %v3667_v29, 0.0  ;;  %v3669_v5 = vpop.eup %3668  ;;  %v4758_v62 = vpop.permute.xlu2 %615  ;;  %v930_v29 = vadd.f32 %v914_v37, %v4710_v22  ;;  %v932_v61 = vadd.f32 %v916_v38, %v4737_v20  ;;  %v769_v3 = vrot.slane %v768_v30, 4 }
  0xe8   : > { %v888_v45 = vadd.f32 %v887_v36, %v886_v6  ;;  %6407 = vst [vmem:[#allocation39_spill] sm:$0xff] %v4758_v62  ;;  %v3671_v57 = vpop.eup %3670  ;;  %v4766_v36 = vpop.permute.xlu0 %622  ;;  %v891_v50 = vsel %vm765_vm10, %v3669_v5, 0.0  ;;  %v933_v16 = vadd.f32 %v917_v51, %v4758_v62  ;;  %v1112_v51 = vadd.f32 %v1108_v10, %v4763_v4 }
  0xe9   : > { %6409 = vst [vmem:[#allocation41_spill] sm:$0xff] %v4766_v36  ;;  %v3673_v42 = vpop.eup %3672  ;;  %v893_v5 = vsel %vm765_vm10, %v3671_v57, 0.0  ;;  %v934_v37 = vadd.f32 %v918_v59, %v4766_v36  ;;  %v4786_v38 = vadd.f32 %v932_v61, %v4715_v60  ;;  %v1763_v59 = vpop.f32.mrf.mxu3  ;;  %v919_v61 = vperm.slane %v911_v17, 0 }
  0xea   : > { %v890_v6 = vadd.f32 %v889_v14, %v888_v45  ;;  %v4780_v45 = vadd.f32 %v1390_v32, %v4632_v7  ;;  %v3675_v20 = vpop.eup %3674  ;;  %v4793_v32 = vadd.f32 %v929_v1, %v4715_v60  ;;  %v895_v57 = vsel %vm765_vm10, %v3673_v42, 0.0 }
  0xeb   : > { %v947_v36 = vsel %vm765_vm10, %v4755_v46, -inf  ;;  %v3677_v62 = vpop.eup %3676  ;;  %v4804_v10 = vadd.f32 %v933_v16, %v4715_v60  ;;  %v897_v4 = vsel %vm765_vm10, %v3675_v20, 0.0  ;;  %v4809_v42 = vadd.f32 %v934_v37, %v4715_v60 }
  0xec   : > { %6410 = vst [vmem:[#allocation42_spill] sm:$0xff] %v4780_v45  ;;  %v892_v14 = vadd.f32 %v891_v50, %v890_v6  ;;  %v4799_v50 = vadd.f32 %v930_v29, %v4715_v60  ;;  %v1440_v1 = vadd.f32 %v1434_v49, %v4780_v45  ;;  %v948_v17 = vsel %vm765_vm10, %v4786_v38, -inf }
  0xed   : > { %v1113_v31 = vmul.f32 %v1111_v9, %v4438_v44  ;;  %v1114_v22 = vmul.f32 %v1112_v51, %v4394_v19  ;;  %v945_v16 = vsel %vm765_vm10, %v4793_v32, -inf  ;;  %v950_v9 = vsel %vm765_vm10, %v4804_v10, -inf  ;;  %v1437_v19 = vpop.f32.mrf.mxu1 }
  0xee   : > { %v894_v54 = vadd.f32 %v893_v5, %v892_v14  ;;  %v4795_v6 = vpop.permute.xlu1 %629  ;;  %v1393_v5 = vpop.f32.mrf.mxu0  ;;  %v946_v37 = vsel %vm765_vm10, %v4799_v50, -inf  ;;  %v949_v44 = vmax.f32 %v4776_v2, %v948_v17 }
  0xef   : > { %6411 = vst [vmem:[#allocation43_spill] sm:$0xff] %v4795_v6  ;;  %v935_v29 = vadd.f32 %v919_v61, %v4795_v6  ;;  %v4820_v20 = vadd.f32 %v1393_v5, %v4638_v24  ;;  %v770_v61 = vadd.f32 %v769_v3, %v768_v30  ;;  %v1722_v5 = vpop.f32.mrf.mxu2  ;;  %v496_v30 = vpop.permute.xlu2 %495  ;;  %v6416_v6 = vstv %s4742_s29 }
  0xf0   : > { %v896_v14 = vadd.f32 %v895_v57, %v894_v54  ;;  %v899_v54 = vsel %vm765_vm10, %v3677_v62, 0.0  ;;  %v951_v62 = vmax.f32 %v945_v16, %v950_v9  ;;  %v777_v2 = vmul.f32 %v4348_v33, %v496_v30 }
  0xf1   : > { %6412 = vst [vmem:[#allocation44_spill] sm:$0xff] %v4820_v20  ;;  %v4825_v57 = vadd.f32 %v935_v29, %v4715_v60  ;;  %v1116_v29 = vsel %vm765_vm10, %v1114_v22, 0.0  ;;  %v4843_v16 = vadd.f32 %v1719_v12, %v4632_v7  ;;  %v1441_v9 = vadd.f32 %v1437_v19, %v4820_v20 }
  0xf2   : > { %v898_v49 = vadd.f32 %v897_v4, %v896_v14  ;;  %v1442_v4 = vmul.f32 %v1440_v1, %v4444_v52  ;;  %v952_v14 = vsel %vm765_vm10, %v4809_v42, -inf  ;;  %v6413_v1 = vmov 0  }
  0xf3   : > { %v954_v45 = vsel %vm765_vm10, %v4825_v57, -inf  ;;  %v953_v3 = vmax.f32 %v946_v37, %v952_v14  ;;  %v1002_v17 = vsel %vm1001_vm9, 1, %v6413_v1  ;;  %6414 = vst [vmem:[#allocation45_spill] sm:$0xff] %v4843_v16  ;;  %v1115_v22 = vsel %vm765_vm10, %v1113_v31, 0.0 }
  0xf4   : > { %v900_v51 = vadd.f32 %v899_v54, %v898_v49  ;;  %v4836_v49 = vpop.permute.xlu0 %500  ;;  %v955_v54 = vmax.f32 %v947_v36, %v954_v45  ;;  %v956_v37 = vmax.f32 %v949_v44, %v951_v62  ;;  %v771_v52 = vrot.slane %v770_v61, 2  ;;  %v1766_v45 = vpop.f32.mrf.mxu3 }
  0xf5   : > { %v4850_v36 = vadd.f32 %v1116_v29, %v1115_v22  ;;  %v778_v33 = vmul.f32 %v4326_v18, %v4836_v49  ;;  %vm4856_vm12 = vcmp.eq.s32.totalorder %v6416_v6, 1  ;;  %v1003_v19 = vperm.slane %v1002_v17, 0 }
  0xf6   : > { %3678 = vlog2.f32 %v900_v51  ;;  %v4848_v51 = vadd.f32 %v1722_v5, %v4638_v24  ;;  %v957_v14 = vmax.f32 %v953_v3, %v955_v54  ;;  %v1007_v31 = vadd.f32 %v4659_v41, %v496_v30 }
  0xf7   : > { %v4864_v44 = vsel %vm765_vm10, %v1442_v4, 0.0  ;;  %v779_v62 = vsel %vm765_vm10, %v777_v2, 0.0  ;;  %v1769_v5 = vadd.f32 %v1763_v59, %v4843_v16  ;;  %v1443_v29 = vmul.f32 %v1441_v9, %v4422_v34 }
  0xf8   : > { %6415 = vst [vmem:[#allocation46_spill] sm:$0xff] %v4848_v51  ;;  %v4861_v20 = vmax.f32 %v956_v37, %v957_v14  ;;  %v1770_v6 = vadd.f32 %v1766_v45, %v4848_v51  ;;  %v4876_v4 = vadd.f32 %v771_v52, %v770_v61  ;;  %v780_v59 = vsel %vm765_vm10, %v778_v33, 0.0 }
  0xf9   : > { %vm4880_vm11 = vcmp.eq.s32.totalorder %v1003_v19, 1  ;;  %v4890_v52 = vmul.f32 %v1769_v5, %v4512_v58  ;;  %v4893_v61 = vsel %vm765_vm10, %v1443_v29, 0.0  ;;  %v4898_v14 = vadd.f32 %v780_v59, %v779_v62 }
  0xfa   : > { %v959_v54 = vsub.f32 %v4749_v63, %v4861_v20  ;;  %v960_v41 = vsub.f32 %v4793_v32, %v4861_v20  ;;  %v961_v30 = vsub.f32 %v4799_v50, %v4861_v20  ;;  %v962_v63 = vsub.f32 %v4755_v46, %v4861_v20 }
  0xfb   : > { %v963_v32 = vsub.f32 %v4786_v38, %v4861_v20  ;;  %v4896_v37 = vmul.f32 %v1770_v6, %v4487_v39  ;;  %v966_v58 = vsub.f32 %v4825_v57, %v4861_v20  ;;  %v6423_v57 = vsub.f32 %v4809_v42, %v4861_v20 }
  0xfc   : > { %v3679_v3 = vpop.eup %3678  ;;  %v967_v22 = vmul.f32 1.442695, %v959_v54  ;;  %v969_v33 = vmul.f32 1.442695, %v960_v41  ;;  %v971_v46 = vmul.f32 1.442695, %v961_v30  ;;  %v2048_v30 = vpop.f32.mrf.mxu0 }
  0xfd   : > { %v902_v17 = vmul.f32 0.6931472, %v3679_v3  ;;  %v973_v62 = vmul.f32 1.442695, %v962_v63  ;;  %v975_v5 = vmul.f32 1.442695, %v963_v32 }
  0xfe   : > { %3680 = vpow2.f32 %v967_v22 }
  0xff   : > { %v903_v50 = vadd.f32 %v902_v17, %v4700_v48  ;;  %v964_v48 = vsub.f32 %v4804_v10, %v4861_v20  ;;  %3682 = vpow2.f32 %v969_v33 }
 0x100   : > { %3684 = vpow2.f32 %v971_v46 }
 0x101   : > { %v1005_v38 = vsel %vm4880_vm11, %v903_v50, %v4642_v26  ;;  %3686 = vpow2.f32 %v973_v62 }
 0x102   : > { %v4909_v19 = vsel %vm4856_vm12, %v1007_v31, %v1005_v38  ;;  %3688 = vpow2.f32 %v975_v5  ;;  %v981_v5 = vmul.f32 1.442695, %v966_v58 }
 0x103   : > { %v1141_v29 = vrot.slane %v4909_v19, 1  ;;  %v1142_v3 = vrot.slane %v4909_v19, 2  ;;  %v1143_v26 = vrot.slane %v4909_v19, 3  ;;  %v1144_v6 = vrot.slane %v4909_v19, 4 }
 0x104   : > { %v1145_v10 = vrot.slane %v4909_v19, 5  ;;  %v1146_v54 = vrot.slane %v4909_v19, 6  ;;  %v1147_v41 = vrot.slane %v4909_v19, 7  ;;  %v1148_v31 = vperm.slane %v4909_v19, 0  ;;  %v3681_v22 = vpop.eup %3680  ;;  %v2051_v18 = vpop.f32.mrf.mxu0 }
 0x105   : > { %v1149_v17 = vperm.slane %v1141_v29, 0  ;;  %v1150_v59 = vperm.slane %v1142_v3, 0  ;;  %v1151_v63 = vperm.slane %v1143_v26, 0  ;;  %v1152_v32 = vperm.slane %v1144_v6, 0  ;;  %v3683_v45 = vpop.eup %3682 }
 0x106   : > { %v1153_v50 = vperm.slane %v1145_v10, 0  ;;  %v1154_v33 = vperm.slane %v1146_v54, 0  ;;  %v1155_v46 = vperm.slane %v1147_v41, 0  ;;  %v1164_v38 = vadd.f32 %v1148_v31, %v4634_v13  ;;  %v3685_v16 = vpop.eup %3684 }
 0x107   : > { %v1165_v2 = vadd.f32 %v1149_v17, %v4640_v25  ;;  %v1166_v51 = vadd.f32 %v1150_v59, %v4636_v28  ;;  %v1167_v39 = vadd.f32 %v1151_v63, %v4645_v27  ;;  %v1168_v34 = vadd.f32 %v1152_v32, %v4654_v43 }
 0x108   : > { %v1169_v29 = vadd.f32 %v1153_v50, %v4652_v40  ;;  %v1170_v3 = vadd.f32 %v1154_v33, %v4663_v56  ;;  %v1171_v26 = vadd.f32 %v1155_v46, %v4679_v15  ;;  %v1172_v6 = vadd.f32 %v1164_v38, %v4752_v23  ;;  %v2092_v50 = vpop.f32.mrf.mxu1 }
 0x109   : > { %v1173_v10 = vadd.f32 %v1165_v2, %v4752_v23  ;;  %v1174_v54 = vadd.f32 %v1166_v51, %v4752_v23  ;;  %v1175_v41 = vadd.f32 %v1167_v39, %v4752_v23  ;;  %v4932_v31 = vadd.f32 %v1168_v34, %v4752_v23 }
 0x10a   : > { %v4935_v17 = vadd.f32 %v1169_v29, %v4752_v23  ;;  %v4938_v59 = vadd.f32 %v1170_v3, %v4752_v23  ;;  %v4941_v63 = vadd.f32 %v1171_v26, %v4752_v23  ;;  %v1180_v32 = vsel %vm765_vm10, %v1172_v6, -inf }
 0x10b   : > { %v1181_v2 = vsel %vm765_vm10, %v1173_v10, -inf  ;;  %v1182_v51 = vsel %vm765_vm10, %v1174_v54, -inf  ;;  %v1183_v39 = vsel %vm765_vm10, %v1175_v41, -inf  ;;  %v1184_v34 = vsel %vm765_vm10, %v4932_v31, -inf }
 0x10c   : > { %v1185_v33 = vmax.f32 %v1180_v32, %v1184_v34  ;;  %v1186_v46 = vsel %vm765_vm10, %v4935_v17, -inf  ;;  %v1188_v23 = vsel %vm765_vm10, %v4938_v59, -inf  ;;  %v1190_v38 = vsel %vm765_vm10, %v4941_v63, -inf }
 0x10d   : > { %v1187_v29 = vmax.f32 %v1181_v2, %v1186_v46  ;;  %v1189_v3 = vmax.f32 %v1182_v51, %v1188_v23  ;;  %v1191_v26 = vmax.f32 %v1183_v39, %v1190_v38  ;;  %v977_v15 = vmul.f32 1.442695, %v964_v48 }
 0x10e   : > { %v983_v32 = vsel %vm765_vm10, %v3681_v22, 0.0  ;;  %v984_v34 = vsel %vm765_vm10, %v3683_v45, 0.0  ;;  %v6421_v56 = vrot.slane %v4850_v36, 4  ;;  %v1773_v2 = vsel %vm765_vm10, %v4890_v52, 0.0 }
 0x10f   : > { %v1192_v43 = vmax.f32 %v1185_v33, %v1187_v29  ;;  %v1193_v27 = vmax.f32 %v1189_v3, %v1191_v26  ;;  %v4967_v51 = vadd.f32 %v2048_v30, %v4632_v7  ;;  %v979_v48 = vmul.f32 1.442695, %v6423_v57 }
 0x110   : > { %v4962_v40 = vadd.f32 %v6421_v56, %v4850_v36  ;;  %v985_v62 = vadd.f32 %v984_v34, %v983_v32  ;;  %v1446_v56 = vadd.f32 %v4893_v61, %v4864_v44  ;;  %v1774_v36 = vsel %vm765_vm10, %v4896_v37, 0.0  ;;  %v3687_v61 = vpop.eup %3686  ;;  %v2095_v39 = vpop.f32.mrf.mxu1 }
 0x111   : > { %6422 = vst [vmem:[#allocation47_spill] sm:$0xff] %v4967_v51  ;;  %v4972_v45 = vmax.f32 %v1192_v43, %v1193_v27  ;;  %v4979_v22 = vadd.f32 %v2051_v18, %v4638_v24  ;;  %v782_v52 = vrot.slane %v4898_v14, 4  ;;  %3690 = vpow2.f32 %v977_v15 }
 0x112   : > { %v986_v30 = vsel %vm765_vm10, %v3685_v16, 0.0  ;;  %v2098_v18 = vadd.f32 %v2092_v50, %v4967_v51  ;;  %3692 = vpow2.f32 %v979_v48  ;;  %v1775_v46 = vadd.f32 %v1774_v36, %v1773_v2 }
 0x113   : > { %6424 = vst [vmem:[#allocation48_spill] sm:$0xff] %v4979_v22  ;;  %v1195_v42 = vsub.f32 %v1172_v6, %v4972_v45  ;;  %v1196_v27 = vsub.f32 %v1173_v10, %v4972_v45  ;;  %v1197_v43 = vsub.f32 %v1174_v54, %v4972_v45  ;;  %v1198_v44 = vsub.f32 %v1175_v41, %v4972_v45  ;;  %v3689_v6 = vpop.eup %3688 }
 0x114   : > { %v1199_v37 = vsub.f32 %v4932_v31, %v4972_v45  ;;  %v987_v15 = vadd.f32 %v986_v30, %v985_v62  ;;  %v1200_v10 = vsub.f32 %v4935_v17, %v4972_v45  ;;  %v783_v41 = vadd.f32 %v782_v52, %v4898_v14 }
 0x115   : > { %v1203_v58 = vmul.f32 1.442695, %v1195_v42  ;;  %v1205_v33 = vmul.f32 1.442695, %v1196_v27  ;;  %v1207_v16 = vmul.f32 1.442695, %v1197_v43  ;;  %3694 = vpow2.f32 %v981_v5  ;;  %v2377_v42 = vpop.f32.mrf.mxu2 }
 0x116   : > { %v1209_v54 = vmul.f32 1.442695, %v1198_v44  ;;  %v1447_v23 = vrot.slane %v1446_v56, 4  ;;  %v2099_v31 = vadd.f32 %v2095_v39, %v4979_v22  ;;  %v988_v50 = vsel %vm765_vm10, %v3687_v61, 0.0 }
 0x117   : > { %3696 = vpow2.f32 %v1203_v58  ;;  %v3691_v38 = vpop.eup %3690  ;;  %v1201_v29 = vsub.f32 %v4938_v59, %v4972_v45  ;;  %v1211_v3 = vmul.f32 1.442695, %v1199_v37  ;;  %v989_v26 = vadd.f32 %v988_v50, %v987_v15 }
 0x118   : > { %3698 = vpow2.f32 %v1205_v33  ;;  %v1202_v17 = vsub.f32 %v4941_v63, %v4972_v45  ;;  %v1776_v32 = vrot.slane %v1775_v46, 4  ;;  %v990_v14 = vsel %vm765_vm10, %v3689_v6, 0.0  ;;  %v3693_v34 = vpop.eup %3692 }
 0x119   : > { %3700 = vpow2.f32 %v1207_v16  ;;  %v1213_v2 = vmul.f32 1.442695, %v1200_v10  ;;  %v784_v57 = vrot.slane %v783_v41, 2  ;;  %v991_v48 = vadd.f32 %v990_v14, %v989_v26  ;;  %v2421_v16 = vpop.f32.mrf.mxu3 }
 0x11a   : > { %3702 = vpow2.f32 %v1209_v54  ;;  %v773_v62 = vrot.slane %v4876_v4, 1  ;;  %v1120_v36 = vrot.slane %v4962_v40, 2  ;;  %v2101_v59 = vmul.f32 %v2099_v31, %v4505_v53 }
 0x11b   : > { %v992_v52 = vsel %vm765_vm10, %v3691_v38, 0.0  ;;  %v3695_v5 = vpop.eup %3694  ;;  %3704 = vpow2.f32 %v1211_v3  ;;  %v1215_v63 = vmul.f32 1.442695, %v1201_v29  ;;  %v1448_v30 = vadd.f32 %v1447_v23, %v1446_v56 }
 0x11c   : > { %v993_v27 = vadd.f32 %v992_v52, %v991_v48  ;;  %v1217_v44 = vmul.f32 1.442695, %v1202_v17  ;;  %v1777_v61 = vadd.f32 %v1776_v32, %v1775_v46  ;;  %v2100_v37 = vmul.f32 %v2098_v18, %v4527_v11  ;;  %v1087_v17 = vld [vmem:[%s4218_s24 + $0x1] sm:$0x1] }
 0x11d   : > { %v3697_v43 = vpop.eup %3696  ;;  %v994_v39 = vsel %vm765_vm10, %v3693_v34, 0.0  ;;  %3706 = vpow2.f32 %v1213_v2  ;;  %v785_v33 = vadd.f32 %v784_v57, %v783_v41  ;;  %v1121_v56 = vadd.f32 %v1120_v36, %v4962_v40 }
 0x11e   : > { %v3699_v15 = vpop.eup %3698  ;;  %v1219_v58 = vsel %vm765_vm10, %v3697_v43, 0.0  ;;  %v995_v6 = vadd.f32 %v994_v39, %v993_v27  ;;  %v2103_v23 = vsel %vm765_vm10, %v2101_v59, 0.0  ;;  %v996_v46 = vsel %vm765_vm10, %v3695_v5, 0.0  ;;  %v2380_v39 = vpop.f32.mrf.mxu2 }
 0x11f   : > { %v3701_v10 = vpop.eup %3700  ;;  %v1220_v54 = vsel %vm765_vm10, %v3699_v15, 0.0  ;;  %3708 = vpow2.f32 %v1215_v63  ;;  %v1449_v50 = vrot.slane %v1448_v30, 2  ;;  %v1778_v29 = vrot.slane %v1777_v61, 2 }
 0x120   : > { %v3703_v18 = vpop.eup %3702  ;;  %v1221_v31 = vadd.f32 %v1220_v54, %v1219_v58  ;;  %v997_v38 = vadd.f32 %v996_v46, %v995_v6  ;;  %3710 = vpow2.f32 %v1217_v44  ;;  %v1222_v41 = vsel %vm765_vm10, %v3701_v10, 0.0  ;;  %v639_v54 = vld [vmem:[#allocation4] sm:$0x1] }
 0x121   : > { %v2102_v3 = vsel %vm765_vm10, %v2100_v37, 0.0  ;;  %v3705_v26 = vpop.eup %3704  ;;  %v786_v32 = vrot.slane %v785_v33, 1  ;;  %v774_v34 = vadd.f32 %v773_v62, %v4876_v4  ;;  %vm1334_vm13 = vcmp.gt.f32.partialorder %v1087_v17, 0.0 }
 0x122   : > { %v1223_v40 = vadd.f32 %v1222_v41, %v1221_v31  ;;  %v2104_v14 = vadd.f32 %v2103_v23, %v2102_v3  ;;  %3712 = vlog2.f32 %v997_v38  ;;  %v1224_v2 = vsel %vm765_vm10, %v3703_v18, 0.0  ;;  %v2424_v23 = vpop.f32.mrf.mxu3 }
 0x123   : > { %v3707_v57 = vpop.eup %3706  ;;  %v1122_v48 = vrot.slane %v1121_v56, 1  ;;  %v1450_v59 = vadd.f32 %v1449_v50, %v1448_v30  ;;  %v5017_v52 = vadd.f32 %v2377_v42, %v4632_v7  ;;  %v1226_v5 = vsel %vm765_vm10, %v3705_v26, 0.0 }
 0x124   : > { %v1225_v36 = vadd.f32 %v1224_v2, %v1223_v40  ;;  %v1779_v63 = vadd.f32 %v1778_v29, %v1777_v61  ;;  %v787_v44 = vadd.f32 %v786_v32, %v785_v33  ;;  %v2105_v37 = vrot.slane %v2104_v14, 4 }
 0x125   : > { %6425 = vst [vmem:[#allocation49_spill] sm:$0xff] %v5017_v52  ;;  %v3709_v27 = vpop.eup %3708  ;;  %v775_v4 = vmul.f32 %v774_v34, %v4769_v0  ;;  %v1335_v62 = vsel %vm1334_vm13, 1, %v6413_v1  ;;  %v1228_v58 = vsel %vm765_vm10, %v3707_v57, 0.0  ;;  %v5025_v30 = vadd.f32 %v2380_v39, %v4638_v24 }
 0x126   : > { %v1227_v43 = vadd.f32 %v1226_v5, %v1225_v36  ;;  %v3711_v15 = vpop.eup %3710  ;;  %v1123_v6 = vadd.f32 %v1122_v48, %v1121_v56  ;;  %v1451_v61 = vrot.slane %v1450_v59, 1  ;;  %v2427_v33 = vadd.f32 %v2421_v16, %v5017_v52  ;;  %v6438_v52 = vld [vmem:[#allocation42_spill] sm:$0xff] }
 0x127   : > { %6426 = vst [vmem:[#allocation50_spill] sm:$0xff] %v5025_v30  ;;  %v1230_v46 = vsel %vm765_vm10, %v3709_v27, 0.0  ;;  %v1780_v18 = vrot.slane %v1779_v63, 1  ;;  %v2428_v31 = vadd.f32 %v2424_v23, %v5025_v30  ;;  %v1336_v50 = vperm.slane %v1335_v62, 0  ;;  %v6431_v23 = vld [vmem:[#allocation38_spill] sm:$0xff]  ;;  %v6437_v30 = vld [vmem:[#allocation31_spill] sm:$0xff] }
 0x128   : > { %v3713_v42 = vpop.eup %3712  ;;  %v1229_v10 = vadd.f32 %v1228_v58, %v1227_v43  ;;  %v791_v41 = vsel %vm4856_vm12, %v787_v44, 0.0  ;;  %v5032_v29 = vadd.f32 %v2105_v37, %v2104_v14  ;;  %v1232_v56 = vsel %vm765_vm10, %v3711_v15, 0.0 }
 0x129   : > { %v999_v0 = vmul.f32 0.6931472, %v3713_v42  ;;  %v776_v3 = vadd.f32 %v775_v4, %v639_v54  ;;  %v2430_v16 = vmul.f32 %v2428_v31, %v4574_v8  ;;  %v5037_v40 = vmul.f32 %v1123_v6, %v1087_v17  ;;  %v6430_v54 = vld [vmem:[#allocation36_spill] sm:$0xff]  ;;  %v6439_v8 = vld [vmem:[#allocation30_spill] sm:$0xff] }
 0x12a   : > { %v1231_v38 = vadd.f32 %v1230_v46, %v1229_v10  ;;  %v1008_v34 = vadd.f32 %v4715_v60, %v4836_v49  ;;  %v5042_v2 = vmul.f32 %v2427_v33, %v4594_v21  ;;  %v5044_v57 = vadd.f32 %v1451_v61, %v1450_v59  ;;  %v6429_v10 = vld [vmem:[#allocation35_spill] sm:$0xff] }
 0x12b   : > { %v1000_v26 = vadd.f32 %v999_v0, %v4861_v20  ;;  %v5046_v14 = vadd.f32 %v1780_v18, %v1779_v63  ;;  %v5048_v48 = vadd.f32 %v791_v41, %v776_v3  ;;  %vm5053_vm14 = vcmp.eq.s32.totalorder %v1336_v50, 1  ;;  %v6432_v0 = vld [vmem:[#allocation39_spill] sm:$0xff]  ;;  %v6433_v50 = vld [vmem:[#allocation41_spill] sm:$0xff]  ;;  %v6435_v3 = vld [vmem:[#allocation40_spill] sm:$0xff] }
 0x12c   : > { %v1233_v32 = vadd.f32 %v1232_v56, %v1231_v38  ;;  %v5063_v36 = vsel %vm765_vm10, %v2430_v16, 0.0  ;;  %v6434_v41 = vld [vmem:[#allocation43_spill] sm:$0xff] }
 0x12d   : > { %v1006_v20 = vsel %vm4880_vm11, %v1000_v26, %v4703_v55 }
 0x12e   : > { %3714 = vlog2.f32 %v1233_v32  ;;  %v5060_v49 = vsel %vm4856_vm12, %v1008_v34, %v1006_v20 }
 0x12f   : > { %v1238_v59 = vrot.slane %v5060_v49, 1  ;;  %v1239_v5 = vrot.slane %v5060_v49, 2  ;;  %v1240_v55 = vrot.slane %v5060_v49, 3  ;;  %v1241_v9 = vrot.slane %v5060_v49, 4 }
 0x130   : > { %v1242_v63 = vrot.slane %v5060_v49, 5  ;;  %v1243_v27 = vrot.slane %v5060_v49, 6  ;;  %v1244_v43 = vrot.slane %v5060_v49, 7  ;;  %v1245_v12 = vperm.slane %v5060_v49, 0 }
 0x131   : > { %v1246_v44 = vperm.slane %v1238_v59, 0  ;;  %v1247_v37 = vperm.slane %v1239_v5, 0  ;;  %v1248_v39 = vperm.slane %v1240_v55, 0  ;;  %v1249_v15 = vperm.slane %v1241_v9, 0 }
 0x132   : > { %v1250_v4 = vperm.slane %v1242_v63, 0  ;;  %v1251_v62 = vperm.slane %v1243_v27, 0  ;;  %v1252_v58 = vperm.slane %v1244_v43, 0  ;;  %v1261_v42 = vadd.f32 %v1245_v12, %v4698_v47  ;;  %v3079_v47 = vpop.f32.mrf.mxu3 }
 0x133   : > { %v1262_v6 = vadd.f32 %v1246_v44, %v4723_v35  ;;  %v1263_v61 = vadd.f32 %v1247_v37, %v6429_v10  ;;  %v1264_v33 = vadd.f32 %v1248_v39, %v6430_v54  ;;  %v1265_v46 = vadd.f32 %v1249_v15, %v6431_v23  ;;  %v2750_v23 = vpop.f32.mrf.mxu1 }
 0x134   : > { %v3715_v18 = vpop.eup %3714  ;;  %v1266_v31 = vadd.f32 %v1250_v4, %v6432_v0  ;;  %v1267_v38 = vadd.f32 %v1251_v62, %v6433_v50  ;;  %v1268_v56 = vadd.f32 %v1252_v58, %v6434_v41  ;;  %v5082_v26 = vadd.f32 %v1261_v42, %v6435_v3 }
 0x135   : > { %v1235_v16 = vmul.f32 0.6931472, %v3715_v18  ;;  %v5085_v32 = vadd.f32 %v1262_v6, %v6435_v3  ;;  %v5088_v34 = vadd.f32 %v1263_v61, %v6435_v3  ;;  %v5091_v20 = vadd.f32 %v1264_v33, %v6435_v3 }
 0x136   : > { %v5094_v59 = vadd.f32 %v1265_v46, %v6435_v3  ;;  %v5097_v5 = vadd.f32 %v1266_v31, %v6435_v3  ;;  %v5100_v55 = vadd.f32 %v1267_v38, %v6435_v3  ;;  %v5103_v9 = vadd.f32 %v1268_v56, %v6435_v3 }
 0x137   : > { %v1236_v63 = vadd.f32 %v1235_v16, %v4972_v45  ;;  %v5108_v27 = vsel %vm765_vm10, %v5082_v26, -inf  ;;  %v1278_v43 = vsel %vm765_vm10, %v5085_v32, -inf  ;;  %v5114_v12 = vsel %vm765_vm10, %v5088_v34, -inf }
 0x138   : > { %v5118_v44 = vsel %vm765_vm10, %v5091_v20, -inf  ;;  %v1281_v37 = vsel %vm765_vm10, %v5094_v59, -inf  ;;  %v1283_v45 = vsel %vm765_vm10, %v5097_v5, -inf  ;;  %v5126_v39 = vsel %vm765_vm10, %v5100_v55, -inf }
 0x139   : > { %v5131_v15 = vsel %vm5053_vm14, %v1236_v63, %v4909_v19  ;;  %v1282_v4 = vmax.f32 %v5108_v27, %v1281_v37  ;;  %v1284_v62 = vmax.f32 %v1278_v43, %v1283_v45  ;;  %v1286_v58 = vmax.f32 %v5114_v12, %v5126_v39  ;;  %v6436_v39 = vld [vmem:[#allocation29_spill] sm:$0xff] }
 0x13a   : > { %v1470_v42 = vrot.slane %v5131_v15, 1  ;;  %v1471_v6 = vrot.slane %v5131_v15, 2  ;;  %v1472_v61 = vrot.slane %v5131_v15, 3  ;;  %v1473_v33 = vrot.slane %v5131_v15, 4 }
 0x13b   : > { %v1474_v46 = vrot.slane %v5131_v15, 5  ;;  %v1477_v18 = vperm.slane %v5131_v15, 0  ;;  %v1475_v19 = vrot.slane %v5131_v15, 6  ;;  %v1476_v31 = vrot.slane %v5131_v15, 7 }
 0x13c   : > { %v1478_v38 = vperm.slane %v1470_v42, 0  ;;  %v1479_v56 = vperm.slane %v1471_v6, 0  ;;  %v1480_v3 = vperm.slane %v1472_v61, 0  ;;  %v1481_v16 = vperm.slane %v1473_v33, 0  ;;  %v6440_v6 = vld [vmem:[#allocation32_spill] sm:$0xff]  ;;  %v6441_v33 = vld [vmem:[#allocation33_spill] sm:$0xff] }
 0x13d   : > { %v1493_v63 = vadd.f32 %v1477_v18, %v4634_v13  ;;  %v1482_v27 = vperm.slane %v1474_v46, 0  ;;  %v1483_v43 = vperm.slane %v1475_v19, 0  ;;  %v1484_v12 = vperm.slane %v1476_v31, 0 }
 0x13e   : > { %v1494_v37 = vadd.f32 %v1478_v38, %v4640_v25  ;;  %v1495_v45 = vadd.f32 %v1479_v56, %v4636_v28  ;;  %v1496_v60 = vadd.f32 %v1480_v3, %v6436_v39  ;;  %v1497_v22 = vadd.f32 %v1481_v16, %v6437_v30  ;;  %v2706_v38 = vpop.f32.mrf.mxu0 }
 0x13f   : > { %v1501_v51 = vadd.f32 %v1493_v63, %v6438_v52  ;;  %v1498_v42 = vadd.f32 %v1482_v27, %v6439_v8  ;;  %v1499_v61 = vadd.f32 %v1483_v43, %v6440_v6  ;;  %v1500_v53 = vadd.f32 %v1484_v12, %v6441_v33  ;;  %v3035_v27 = vpop.f32.mrf.mxu2 }
 0x140   : > { %v1502_v46 = vadd.f32 %v1494_v37, %v6438_v52  ;;  %v1503_v18 = vadd.f32 %v1495_v45, %v6438_v52  ;;  %v1504_v19 = vadd.f32 %v1496_v60, %v6438_v52  ;;  %v1505_v31 = vadd.f32 %v1497_v22, %v6438_v52 }
 0x141   : > { %v1506_v56 = vadd.f32 %v1498_v42, %v6438_v52  ;;  %v5159_v3 = vadd.f32 %v1499_v61, %v6438_v52  ;;  %v5162_v16 = vadd.f32 %v1500_v53, %v6438_v52  ;;  %v1509_v63 = vsel %vm765_vm10, %v1501_v51, -inf  ;;  %v5175_v52 = vld [vmem:[%s4218_s24 + $0x2] sm:$0x1] }
 0x142   : > { %v1510_v43 = vsel %vm765_vm10, %v1502_v46, -inf  ;;  %v1511_v12 = vsel %vm765_vm10, %v1503_v18, -inf  ;;  %v1512_v60 = vsel %vm765_vm10, %v1504_v19, -inf  ;;  %v1513_v22 = vsel %vm765_vm10, %v1505_v31, -inf }
 0x143   : > { %v1514_v37 = vmax.f32 %v1509_v63, %v1513_v22  ;;  %v1515_v45 = vsel %vm765_vm10, %v1506_v56, -inf  ;;  %v1517_v42 = vsel %vm765_vm10, %v5159_v3, -inf  ;;  %v1519_v53 = vsel %vm765_vm10, %v5162_v16, -inf }
 0x144   : > { %v1516_v61 = vmax.f32 %v1510_v43, %v1515_v45  ;;  %v1518_v41 = vmax.f32 %v1511_v12, %v1517_v42  ;;  %v1520_v50 = vmax.f32 %v1512_v60, %v1519_v53  ;;  %v1287_v0 = vsel %vm765_vm10, %v5103_v9, -inf  ;;  %v5188_v12 = vld [vmem:[%s4218_s24 + $0x3] sm:$0x1] }
 0x145   : > { %v1125_v63 = vadd.f32 %v5037_v40, %v5048_v48  ;;  %v6442_v22 = vrot.slane %v5032_v29, 2  ;;  %v1288_v10 = vmax.f32 %v5118_v44, %v1287_v0  ;;  %v1289_v35 = vmax.f32 %v1282_v4, %v1284_v62 }
 0x146   : > { %v1521_v21 = vmax.f32 %v1514_v37, %v1516_v61  ;;  %v1522_v43 = vmax.f32 %v1518_v41, %v1520_v50  ;;  %v2431_v60 = vsel %vm765_vm10, %v5042_v2, 0.0  ;;  %v1453_v45 = vmul.f32 %v5044_v57, %v5175_v52  ;;  %v2753_v61 = vpop.f32.mrf.mxu1 }
 0x147   : > { %v5184_v54 = vadd.f32 %v6442_v22, %v5032_v29  ;;  %v1290_v40 = vmax.f32 %v1286_v58, %v1288_v10  ;;  %v2433_v48 = vadd.f32 %v5063_v36, %v2431_v60  ;;  %v5196_v29 = vadd.f32 %v2706_v38, %v4632_v7  ;;  %v3038_v38 = vpop.f32.mrf.mxu2  ;;  %v6447_v60 = vld [vmem:[#allocation28_spill] sm:$0xff] }
 0x148   : > { %v5198_v42 = vmax.f32 %v1521_v21, %v1522_v43  ;;  %v5202_v0 = vmul.f32 %v5046_v14, %v5188_v12  ;;  %v5204_v50 = vadd.f32 %v1453_v45, %v1125_v63  ;;  %v2709_v21 = vpop.f32.mrf.mxu0  ;;  %vm1663_vm15 = vcmp.gt.f32.partialorder %v5175_v52, 0.0 }
 0x149   : > { %6443 = vst [vmem:[#allocation40_spill] sm:$0xff] %v5196_v29  ;;  %v2109_v41 = vrot.slane %v5184_v54, 1  ;;  %v5207_v2 = vmax.f32 %v1289_v35, %v1290_v40  ;;  %v2434_v62 = vrot.slane %v2433_v48, 4  ;;  %v2756_v58 = vadd.f32 %v2750_v23, %v5196_v29 }
 0x14a   : > { %v1524_v57 = vsub.f32 %v1501_v51, %v5198_v42  ;;  %v1525_v10 = vsub.f32 %v1502_v46, %v5198_v42  ;;  %v1526_v36 = vsub.f32 %v1503_v18, %v5198_v42  ;;  %v1527_v44 = vsub.f32 %v1504_v19, %v5198_v42 }
 0x14b   : > { %v1528_v4 = vsub.f32 %v1505_v31, %v5198_v42  ;;  %v1529_v14 = vsub.f32 %v1506_v56, %v5198_v42  ;;  %v1530_v35 = vsub.f32 %v5159_v3, %v5198_v42  ;;  %v1531_v46 = vsub.f32 %v5162_v16, %v5198_v42 }
 0x14c   : > { %v1532_v37 = vmul.f32 1.442695, %v1524_v57  ;;  %v1534_v51 = vmul.f32 1.442695, %v1525_v10  ;;  %v1536_v53 = vmul.f32 1.442695, %v1526_v36  ;;  %v5221_v19 = vadd.f32 %v3035_v27, %v4632_v7  ;;  %v3082_v7 = vpop.f32.mrf.mxu3 }
 0x14d   : > { %v1538_v18 = vmul.f32 1.442695, %v1527_v44  ;;  %v5224_v31 = vadd.f32 %v2709_v21, %v4638_v24  ;;  %v1540_v56 = vmul.f32 1.442695, %v1528_v4  ;;  %v1292_v23 = vsub.f32 %v5082_v26, %v5207_v2 }
 0x14e   : > { %6444 = vst [vmem:[#allocation29_spill] sm:$0xff] %v5221_v19  ;;  %3716 = vpow2.f32 %v1532_v37  ;;  %v5229_v3 = vadd.f32 %v3038_v38, %v4638_v24  ;;  %v1542_v63 = vmul.f32 1.442695, %v1529_v14  ;;  %v1293_v16 = vsub.f32 %v5085_v32, %v5207_v2 }
 0x14f   : > { %6445 = vst [vmem:[#allocation31_spill] sm:$0xff] %v5224_v31  ;;  %3718 = vpow2.f32 %v1534_v51  ;;  %v2435_v22 = vadd.f32 %v2434_v62, %v2433_v48  ;;  %v1544_v27 = vmul.f32 1.442695, %v1530_v35  ;;  %v1294_v43 = vsub.f32 %v5088_v34, %v5207_v2  ;;  %v6449_v51 = vld [vmem:[#allocation14_spill] sm:$0xff] }
 0x150   : > { %6446 = vst [vmem:[#allocation42_spill] sm:$0xff] %v5229_v3  ;;  %3720 = vpow2.f32 %v1536_v53  ;;  %v2758_v45 = vmul.f32 %v2756_v58, %v6447_v60  ;;  %v1546_v26 = vmul.f32 1.442695, %v1531_v46  ;;  %v1295_v24 = vsub.f32 %v5091_v20, %v5207_v2  ;;  %v6448_v58 = vld [vmem:[#allocation26_spill] sm:$0xff] }
 0x151   : > { %3722 = vpow2.f32 %v1538_v18  ;;  %v2757_v40 = vadd.f32 %v2753_v61, %v5224_v31  ;;  %v1300_v57 = vmul.f32 1.442695, %v1292_v23  ;;  %v3085_v32 = vadd.f32 %v3079_v47, %v5221_v19 }
 0x152   : > { %3724 = vpow2.f32 %v1540_v56  ;;  %v3086_v48 = vadd.f32 %v3082_v7, %v5229_v3  ;;  %v1296_v10 = vsub.f32 %v5094_v59, %v5207_v2  ;;  %v1302_v34 = vmul.f32 1.442695, %v1293_v16  ;;  %v6450_v56 = vld [vmem:[#allocation16_spill] sm:$0xff] }
 0x153   : > { %3726 = vpow2.f32 %v1542_v63  ;;  %v2436_v36 = vrot.slane %v2435_v22, 2  ;;  %v1297_v21 = vsub.f32 %v5097_v5, %v5207_v2  ;;  %v1304_v20 = vmul.f32 1.442695, %v1294_v43 }
 0x154   : > { %v3717_v44 = vpop.eup %3716  ;;  %3728 = vpow2.f32 %v1544_v27  ;;  %v2760_v4 = vsel %vm765_vm10, %v2758_v45, 0.0  ;;  %v1306_v62 = vmul.f32 1.442695, %v1295_v24  ;;  %v2759_v38 = vmul.f32 %v2757_v40, %v6448_v58 }
 0x155   : > { %v3719_v14 = vpop.eup %3718  ;;  %3730 = vpow2.f32 %v1546_v26  ;;  %v1548_v47 = vsel %vm765_vm10, %v3717_v44, 0.0  ;;  %v1298_v37 = vsub.f32 %v5100_v55, %v5207_v2  ;;  %v3088_v53 = vmul.f32 %v3086_v48, %v6449_v51 }
 0x156   : > { %v3721_v35 = vpop.eup %3720  ;;  %v1549_v59 = vsel %vm765_vm10, %v3719_v14, 0.0  ;;  %3732 = vpow2.f32 %v1300_v57  ;;  %v1308_v18 = vmul.f32 1.442695, %v1296_v10  ;;  %v3087_v23 = vmul.f32 %v3085_v32, %v6450_v56 }
 0x157   : > { %v3723_v5 = vpop.eup %3722  ;;  %v1550_v46 = vadd.f32 %v1549_v59, %v1548_v47  ;;  %3734 = vpow2.f32 %v1302_v34  ;;  %v1551_v63 = vsel %vm765_vm10, %v3721_v35, 0.0  ;;  %v2437_v16 = vadd.f32 %v2436_v36, %v2435_v22  ;;  %v2074_v47 = vld [vmem:[%s4218_s24 + $0x4] sm:$0x1] }
 0x158   : > { %v3725_v61 = vpop.eup %3724  ;;  %3736 = vpow2.f32 %v1304_v20  ;;  %v2761_v7 = vsel %vm765_vm10, %v2759_v38, 0.0  ;;  %v1310_v55 = vmul.f32 1.442695, %v1297_v21  ;;  %v1553_v24 = vsel %vm765_vm10, %v3723_v5, 0.0 }
 0x159   : > { %v3727_v27 = vpop.eup %3726  ;;  %v1552_v43 = vadd.f32 %v1551_v63, %v1550_v46  ;;  %3738 = vpow2.f32 %v1306_v62  ;;  %v2762_v45 = vadd.f32 %v2761_v7, %v2760_v4  ;;  %v1299_v40 = vsub.f32 %v5103_v9, %v5207_v2 }
 0x15a   : > { %v3729_v26 = vpop.eup %3728  ;;  %v1312_v57 = vmul.f32 1.442695, %v1298_v37  ;;  %v3090_v32 = vsel %vm765_vm10, %v3088_v53, 0.0  ;;  %3740 = vpow2.f32 %v1308_v18  ;;  %v3089_v22 = vsel %vm765_vm10, %v3087_v23, 0.0 }
 0x15b   : > { %v3731_v48 = vpop.eup %3730  ;;  %v1554_v10 = vadd.f32 %v1553_v24, %v1552_v43  ;;  %v2763_v34 = vrot.slane %v2762_v45, 4  ;;  %v1555_v44 = vsel %vm765_vm10, %v3725_v61, 0.0  ;;  %v2110_v21 = vadd.f32 %v2109_v41, %v5184_v54  ;;  %v2403_v24 = vld [vmem:[%s4218_s24 + $0x5] sm:$0x1] }
 0x15c   : > { %v3733_v36 = vpop.eup %3732  ;;  %v2438_v20 = vrot.slane %v2437_v16, 1  ;;  %v3091_v4 = vadd.f32 %v3090_v32, %v3089_v22  ;;  %3742 = vpow2.f32 %v1310_v55  ;;  %v1557_v59 = vsel %vm765_vm10, %v3727_v27, 0.0 }
 0x15d   : > { %v3735_v14 = vpop.eup %3734  ;;  %v1556_v9 = vadd.f32 %v1555_v44, %v1554_v10  ;;  %v1316_v62 = vsel %vm765_vm10, %v3733_v36, 0.0  ;;  %v2764_v38 = vadd.f32 %v2763_v34, %v2762_v45  ;;  %v1314_v37 = vmul.f32 1.442695, %v1299_v40 }
 0x15e   : > { %v3737_v35 = vpop.eup %3736  ;;  %v1317_v53 = vsel %vm765_vm10, %v3735_v14, 0.0  ;;  %v3092_v5 = vrot.slane %v3091_v4, 4  ;;  %3744 = vpow2.f32 %v1312_v57  ;;  %v1559_v23 = vsel %vm765_vm10, %v3729_v26, 0.0 }
 0x15f   : > { %v3739_v46 = vpop.eup %3738  ;;  %v1558_v18 = vadd.f32 %v1557_v59, %v1556_v9  ;;  %v1318_v54 = vadd.f32 %v1317_v53, %v1316_v62  ;;  %v2765_v41 = vrot.slane %v2764_v38, 2  ;;  %v1319_v61 = vsel %vm765_vm10, %v3737_v35, 0.0  ;;  %v5280_v35 = vpop.permute.xlu1 %507 }
 0x160   : > { %v2439_v63 = vadd.f32 %v2438_v20, %v2437_v16  ;;  %v3093_v7 = vadd.f32 %v3092_v5, %v3091_v4  ;;  %v3741_v43 = vpop.eup %3740  ;;  %v2111_v45 = vmul.f32 %v2110_v21, %v2074_v47  ;;  %v1561_v32 = vsel %vm765_vm10, %v3731_v48, 0.0  ;;  %v2732_v20 = vld [vmem:[%s4218_s24 + $0x6] sm:$0x1]  ;;  %6451 = vst [vmem:[#allocation28_spill] sm:$0xff] %v5280_v35  ;;  %v5282_v59 = vpop.permute.xlu2 %512 }
 0x161   : > { %v1560_v55 = vadd.f32 %v1559_v23, %v1558_v18  ;;  %v1320_v27 = vadd.f32 %v1319_v61, %v1318_v54  ;;  %v2766_v40 = vadd.f32 %v2765_v41, %v2764_v38  ;;  %3746 = vpow2.f32 %v1314_v37  ;;  %v3061_v37 = vld [vmem:[%s4218_s24 + $0x7] sm:$0x1]  ;;  %v6452_v23 = vld [vmem:[#allocation17_spill] sm:$0xff] }
 0x162   : > { %v1321_v57 = vsel %vm765_vm10, %v3739_v46, 0.0  ;;  %v3094_v10 = vrot.slane %v3093_v7, 2  ;;  %v3743_v22 = vpop.eup %3742  ;;  %v1783_v36 = vadd.f32 %v5202_v0, %v5204_v50  ;;  %v1323_v44 = vsel %vm765_vm10, %v3741_v43, 0.0 }
 0x163   : > { %v1562_v34 = vadd.f32 %v1561_v32, %v1560_v55  ;;  %v1322_v26 = vadd.f32 %v1321_v57, %v1320_v27  ;;  %v2767_v16 = vrot.slane %v2766_v40, 1  ;;  %v2440_v21 = vmul.f32 %v2439_v63, %v2403_v24  ;;  %v6453_v63 = vld [vmem:[#allocation15_spill] sm:$0xff]  ;;  %v6454_v24 = vld [vmem:[#allocation20_spill] sm:$0xff] }
 0x164   : > { %v3095_v4 = vadd.f32 %v3094_v10, %v3093_v7  ;;  %v3745_v48 = vpop.eup %3744  ;;  %v1664_v47 = vsel %vm1663_vm15, 1, %v6413_v1  ;;  %v2112_v62 = vadd.f32 %v2111_v45, %v1783_v36  ;;  %v1325_v52 = vsel %vm765_vm10, %v3743_v22, 0.0  ;;  %v6456_v22 = vld [vmem:[#allocation18_spill] sm:$0xff] }
 0x165   : > { %3748 = vlog2.f32 %v1562_v34  ;;  %v1324_v14 = vadd.f32 %v1323_v44, %v1322_v26  ;;  %v2768_v9 = vadd.f32 %v2767_v16, %v2766_v40  ;;  %v1327_v5 = vsel %vm765_vm10, %v3745_v48, 0.0  ;;  %v6460_v48 = vld [vmem:[#allocation24_spill] sm:$0xff] }
 0x166   : > { %v3096_v38 = vrot.slane %v3095_v4, 1  ;;  %v2441_v46 = vadd.f32 %v2440_v21, %v2112_v62  ;;  %v1665_v54 = vperm.slane %v1664_v47, 0  ;;  %v795_v61 = vmul.f32 %v6452_v23, %v5280_v35 }
 0x167   : > { %v1326_v0 = vadd.f32 %v1325_v52, %v1324_v14  ;;  %v2769_v50 = vmul.f32 %v2768_v9, %v2732_v20  ;;  %v3747_v53 = vpop.eup %3746  ;;  %v796_v7 = vmul.f32 %v6453_v63, %v5282_v59  ;;  %v1128_v40 = vmul.f32 %v6454_v24, %v5280_v35  ;;  %v6459_v20 = vld [vmem:[#allocation21_spill] sm:$0xff] }
 0x168   : > { %v3097_v18 = vadd.f32 %v3096_v38, %v3095_v4  ;;  %v1329_v27 = vsel %vm765_vm10, %v3747_v53, 0.0  ;;  %v1129_v34 = vmul.f32 %v6456_v22, %v5282_v59  ;;  %vm5297_vm2 = vcmp.eq.s32.totalorder %v1665_v54, 1 }
 0x169   : > { %v1328_v41 = vadd.f32 %v1327_v5, %v1326_v0  ;;  %v2770_v43 = vadd.f32 %v2769_v50, %v2441_v46  ;;  %v797_v16 = vsel %vm765_vm10, %v795_v61, 0.0  ;;  %v798_v36 = vsel %vm765_vm10, %v796_v7, 0.0 }
 0x16a   : > { %v3098_v55 = vmul.f32 %v3097_v18, %v3061_v37  ;;  %v1130_v21 = vsel %vm765_vm10, %v1128_v40, 0.0  ;;  %v1457_v4 = vmul.f32 %v6459_v20, %v5280_v35  ;;  %v1786_v14 = vmul.f32 %v6460_v48, %v5280_v35 }
 0x16b   : > { %v3749_v45 = vpop.eup %3748  ;;  %v1330_v57 = vadd.f32 %v1329_v27, %v1328_v41  ;;  %v5316_v47 = vadd.f32 %v798_v36, %v797_v16  ;;  %vm1992_vm3 = vcmp.gt.f32.partialorder %v5188_v12, 0.0 }
 0x16c   : > { %v1564_v32 = vmul.f32 0.6931472, %v3749_v45  ;;  %v5293_v10 = vadd.f32 %v3098_v55, %v2770_v43 }
 0x16d   : > { %3750 = vlog2.f32 %v1330_v57  ;;  %v6461_v57 = vld [vmem:[#allocation45_spill] sm:$0xff] }
 0x16e   : > { %6455 = vst [vmem:[#allocation26_spill] sm:$0xff] %v5293_v10  ;;  %v1565_v44 = vadd.f32 %v1564_v32, %v5198_v42  ;;  %v1131_v42 = vsel %vm765_vm10, %v1129_v34, 0.0 }
 0x16f   : > { %3319 = vst.msk [vmem:[#allocation4] sm:$0x1] %vm3318_vm0, %v5293_v10 }
 0x170   : > { %v5314_v9 = vsel %vm5297_vm2, %v1565_v44, %v5131_v15 }
 0x171   : > { %v1799_v62 = vrot.slane %v5314_v9, 1  ;;  %v1800_v52 = vrot.slane %v5314_v9, 2  ;;  %v1801_v38 = vrot.slane %v5314_v9, 3  ;;  %v1802_v0 = vrot.slane %v5314_v9, 4 }
 0x172   : > { %v1803_v50 = vrot.slane %v5314_v9, 5  ;;  %v1804_v37 = vrot.slane %v5314_v9, 6  ;;  %v1805_v15 = vrot.slane %v5314_v9, 7  ;;  %v1806_v53 = vperm.slane %v5314_v9, 0 }
 0x173   : > { %v1807_v5 = vperm.slane %v1799_v62, 0  ;;  %v1808_v46 = vperm.slane %v1800_v52, 0  ;;  %v1809_v18 = vperm.slane %v1801_v38, 0  ;;  %v1810_v54 = vperm.slane %v1802_v0, 0  ;;  %v3751_v27 = vpop.eup %3750 }
 0x174   : > { %v1811_v41 = vperm.slane %v1803_v50, 0  ;;  %v1812_v23 = vperm.slane %v1804_v37, 0  ;;  %v1813_v61 = vperm.slane %v1805_v15, 0  ;;  %v1822_v63 = vadd.f32 %v1806_v53, %v4634_v13 }
 0x175   : > { %v1823_v7 = vadd.f32 %v1807_v5, %v4640_v25  ;;  %v1824_v43 = vadd.f32 %v1808_v46, %v4636_v28  ;;  %v1825_v55 = vadd.f32 %v1809_v18, %v6436_v39  ;;  %v1826_v45 = vadd.f32 %v1810_v54, %v6437_v30 }
 0x176   : > { %v1827_v24 = vadd.f32 %v1811_v41, %v6439_v8  ;;  %v1828_v40 = vadd.f32 %v1812_v23, %v6440_v6  ;;  %v1829_v32 = vadd.f32 %v1813_v61, %v6441_v33  ;;  %v1830_v22 = vadd.f32 %v1822_v63, %v6461_v57 }
 0x177   : > { %v1831_v34 = vadd.f32 %v1823_v7, %v6461_v57  ;;  %v1832_v16 = vadd.f32 %v1824_v43, %v6461_v57  ;;  %v1833_v36 = vadd.f32 %v1825_v55, %v6461_v57  ;;  %v1834_v44 = vadd.f32 %v1826_v45, %v6461_v57 }
 0x178   : > { %v1835_v20 = vadd.f32 %v1827_v24, %v6461_v57  ;;  %v1836_v48 = vadd.f32 %v1828_v40, %v6461_v57  ;;  %v5343_v62 = vadd.f32 %v1829_v32, %v6461_v57  ;;  %v1838_v52 = vsel %vm765_vm10, %v1830_v22, -inf }
 0x179   : > { %v1839_v38 = vsel %vm765_vm10, %v1831_v34, -inf  ;;  %v1840_v0 = vsel %vm765_vm10, %v1832_v16, -inf  ;;  %v1841_v50 = vsel %vm765_vm10, %v1833_v36, -inf  ;;  %v1842_v37 = vsel %vm765_vm10, %v1834_v44, -inf }
 0x17a   : > { %v1843_v15 = vmax.f32 %v1838_v52, %v1842_v37  ;;  %v1844_v53 = vsel %vm765_vm10, %v1835_v20, -inf  ;;  %v1846_v5 = vsel %vm765_vm10, %v1836_v48, -inf  ;;  %v1848_v46 = vsel %vm765_vm10, %v5343_v62, -inf }
 0x17b   : > { %v1845_v18 = vmax.f32 %v1839_v38, %v1844_v53  ;;  %v1847_v54 = vmax.f32 %v1840_v0, %v1846_v5  ;;  %v1849_v41 = vmax.f32 %v1841_v50, %v1848_v46  ;;  %v1332_v23 = vmul.f32 0.6931472, %v3751_v27  ;;  %v6472_v38 = vld [vmem:[#allocation44_spill] sm:$0xff] }
 0x17c   : > { %v2115_v43 = vmul.f32 %v4527_v11, %v5280_v35  ;;  %v800_v55 = vrot.slane %v5316_v47, 4  ;;  %v5358_v45 = vadd.f32 %v1131_v42, %v1130_v21  ;;  %v5363_v40 = vsel %vm765_vm10, %v1457_v4, 0.0 }
 0x17d   : > { %v1850_v61 = vmax.f32 %v1843_v15, %v1845_v18  ;;  %v1851_v63 = vmax.f32 %v1847_v54, %v1849_v41  ;;  %v1333_v7 = vadd.f32 %v1332_v23, %v5207_v2  ;;  %v5366_v32 = vsel %vm765_vm10, %v1786_v14, 0.0  ;;  %v6462_v2 = vld [vmem:[#allocation27_spill] sm:$0xff] }
 0x17e   : > { %v5375_v11 = vmul.f32 %v6462_v2, %v5280_v35  ;;  %v5379_v21 = vmul.f32 %v6447_v60, %v5280_v35  ;;  %v5383_v4 = vmul.f32 %v6450_v56, %v5280_v35  ;;  %v5391_v52 = vsel %vm765_vm10, %v2115_v43, 0.0 }
 0x17f   : > { %v5360_v24 = vmax.f32 %v1850_v61, %v1851_v63  ;;  %v5371_v27 = vsel %vm5053_vm14, %v1333_v7, %v5060_v49  ;;  %v5394_v60 = vadd.f32 %v800_v55, %v5316_v47  ;;  %v6463_v7 = vld [vmem:[#allocation19_spill] sm:$0xff] }
 0x180   : > { %v1570_v15 = vrot.slane %v5371_v27, 4  ;;  %v1571_v53 = vrot.slane %v5371_v27, 5  ;;  %v1572_v5 = vrot.slane %v5371_v27, 6  ;;  %v1573_v18 = vrot.slane %v5371_v27, 7 }
 0x181   : > { %v1853_v14 = vsub.f32 %v1830_v22, %v5360_v24  ;;  %v1854_v42 = vsub.f32 %v1831_v34, %v5360_v24  ;;  %v1855_v17 = vsub.f32 %v1832_v16, %v5360_v24  ;;  %v1856_v49 = vsub.f32 %v1833_v36, %v5360_v24 }
 0x182   : > { %v1857_v57 = vsub.f32 %v1834_v44, %v5360_v24  ;;  %v1858_v56 = vsub.f32 %v1835_v20, %v5360_v24  ;;  %v1567_v16 = vrot.slane %v5371_v27, 1  ;;  %v1568_v36 = vrot.slane %v5371_v27, 2 }
 0x183   : > { %v1861_v0 = vmul.f32 1.442695, %v1853_v14  ;;  %v1863_v22 = vmul.f32 1.442695, %v1854_v42  ;;  %v1865_v50 = vmul.f32 1.442695, %v1855_v17  ;;  %v1859_v37 = vsub.f32 %v1836_v48, %v5360_v24 }
 0x184   : > { %v1867_v34 = vmul.f32 1.442695, %v1856_v49  ;;  %v1569_v44 = vrot.slane %v5371_v27, 3  ;;  %v1860_v47 = vsub.f32 %v5343_v62, %v5360_v24  ;;  %v1869_v20 = vmul.f32 1.442695, %v1857_v57  ;;  %v6464_v14 = vld [vmem:[#allocation34_spill] sm:$0xff] }
 0x185   : > { %3752 = vpow2.f32 %v1861_v0  ;;  %v1871_v46 = vmul.f32 1.442695, %v1858_v56  ;;  %v1574_v54 = vperm.slane %v5371_v27, 0  ;;  %v1575_v48 = vperm.slane %v1567_v16, 0  ;;  %v6465_v57 = vld [vmem:[#allocation37_spill] sm:$0xff]  ;;  %v6466_v0 = vld [vmem:[#allocation35_spill] sm:$0xff] }
 0x186   : > { %3754 = vpow2.f32 %v1863_v22  ;;  %v1576_v41 = vperm.slane %v1568_v36, 0  ;;  %v1577_v23 = vperm.slane %v1569_v44, 0  ;;  %v1873_v62 = vmul.f32 1.442695, %v1859_v37  ;;  %v6468_v44 = vld [vmem:[#allocation38_spill] sm:$0xff] }
 0x187   : > { %3756 = vpow2.f32 %v1865_v50  ;;  %v1578_v61 = vperm.slane %v1570_v15, 0  ;;  %v1579_v63 = vperm.slane %v1571_v53, 0  ;;  %v1458_v43 = vmul.f32 %v6463_v7, %v5282_v59  ;;  %v6467_v50 = vld [vmem:[#allocation36_spill] sm:$0xff]  ;;  %v6469_v15 = vld [vmem:[#allocation39_spill] sm:$0xff] }
 0x188   : > { %3758 = vpow2.f32 %v1867_v34  ;;  %v1580_v55 = vperm.slane %v1572_v5, 0  ;;  %v1581_v2 = vperm.slane %v1573_v18, 0  ;;  %v1590_v42 = vadd.f32 %v1574_v54, %v6464_v14  ;;  %v6470_v18 = vld [vmem:[#allocation41_spill] sm:$0xff]  ;;  %v6471_v54 = vld [vmem:[#allocation43_spill] sm:$0xff] }
 0x189   : > { %3760 = vpow2.f32 %v1869_v20  ;;  %v1875_v49 = vmul.f32 1.442695, %v1860_v47  ;;  %v1591_v56 = vadd.f32 %v1575_v48, %v6465_v57  ;;  %v1592_v22 = vadd.f32 %v1576_v41, %v6466_v0 }
 0x18a   : > { %v1593_v34 = vadd.f32 %v1577_v23, %v6467_v50  ;;  %3762 = vpow2.f32 %v1871_v46  ;;  %v1594_v37 = vadd.f32 %v1578_v61, %v6468_v44  ;;  %v1595_v20 = vadd.f32 %v1579_v63, %v6469_v15 }
 0x18b   : > { %v3753_v17 = vpop.eup %3752  ;;  %3764 = vpow2.f32 %v1873_v62  ;;  %v1596_v47 = vadd.f32 %v1580_v55, %v6470_v18  ;;  %v1597_v48 = vadd.f32 %v1581_v2, %v6471_v54  ;;  %v5422_v23 = vadd.f32 %v1590_v42, %v6472_v38 }
 0x18c   : > { %v3755_v16 = vpop.eup %3754  ;;  %v1877_v36 = vsel %vm765_vm10, %v3753_v17, 0.0  ;;  %v5425_v46 = vadd.f32 %v1591_v56, %v6472_v38  ;;  %v5428_v61 = vadd.f32 %v1592_v22, %v6472_v38  ;;  %v5432_v62 = vadd.f32 %v1593_v34, %v6472_v38 }
 0x18d   : > { %v3757_v53 = vpop.eup %3756  ;;  %v1878_v5 = vsel %vm765_vm10, %v3755_v16, 0.0  ;;  %v5435_v55 = vadd.f32 %v1594_v37, %v6472_v38  ;;  %v5438_v2 = vadd.f32 %v1595_v20, %v6472_v38  ;;  %3766 = vpow2.f32 %v1875_v49  ;;  %v6473_v37 = vld [vmem:[#allocation22_spill] sm:$0xff] }
 0x18e   : > { %v3759_v7 = vpop.eup %3758  ;;  %v1879_v41 = vadd.f32 %v1878_v5, %v1877_v36  ;;  %v1880_v63 = vsel %vm765_vm10, %v3757_v53, 0.0  ;;  %v5441_v56 = vadd.f32 %v1596_v47, %v6472_v38  ;;  %v5444_v22 = vadd.f32 %v1597_v48, %v6472_v38 }
 0x18f   : > { %v3761_v17 = vpop.eup %3760  ;;  %v1882_v16 = vsel %vm765_vm10, %v3759_v7, 0.0  ;;  %v1607_v34 = vsel %vm765_vm10, %v5425_v46, -inf  ;;  %v1608_v36 = vsel %vm765_vm10, %v5428_v61, -inf  ;;  %v1787_v20 = vmul.f32 %v6473_v37, %v5282_v59 }
 0x190   : > { %v1881_v42 = vadd.f32 %v1880_v63, %v1879_v41  ;;  %v3763_v53 = vpop.eup %3762  ;;  %v1606_v5 = vsel %vm765_vm10, %v5422_v23, -inf  ;;  %v1609_v38 = vsel %vm765_vm10, %v5432_v62, -inf  ;;  %v1610_v47 = vsel %vm765_vm10, %v5435_v55, -inf }
 0x191   : > { %v3765_v48 = vpop.eup %3764  ;;  %v1884_v7 = vsel %vm765_vm10, %v3761_v17, 0.0  ;;  %v1611_v41 = vmax.f32 %v1606_v5, %v1610_v47  ;;  %v1612_v63 = vsel %vm765_vm10, %v5438_v2, -inf  ;;  %v1614_v37 = vsel %vm765_vm10, %v5441_v56, -inf }
 0x192   : > { %v1883_v49 = vadd.f32 %v1882_v16, %v1881_v42  ;;  %v1613_v16 = vmax.f32 %v1607_v34, %v1612_v63  ;;  %v1615_v10 = vmax.f32 %v1608_v36, %v1614_v37  ;;  %v1616_v35 = vsel %vm765_vm10, %v5444_v22, -inf }
 0x193   : > { %v1886_v3 = vsel %vm765_vm10, %v3763_v53, 0.0  ;;  %v1617_v19 = vmax.f32 %v1609_v38, %v1616_v35  ;;  %v802_v31 = vrot.slane %v5394_v60, 2  ;;  %v1460_v17 = vsel %vm765_vm10, %v1458_v43, 0.0  ;;  %v3767_v5 = vpop.eup %3766 }
 0x194   : > { %v1885_v42 = vadd.f32 %v1884_v7, %v1883_v49  ;;  %v1618_v29 = vmax.f32 %v1611_v41, %v1613_v16  ;;  %v6474_v54 = vrot.slane %v5358_v45, 4  ;;  %v1461_v34 = vadd.f32 %v1460_v17, %v5363_v40 }
 0x195   : > { %v1888_v36 = vsel %vm765_vm10, %v3765_v48, 0.0  ;;  %v1619_v49 = vmax.f32 %v1615_v10, %v1617_v19  ;;  %v1789_v35 = vsel %vm765_vm10, %v1787_v20, 0.0  ;;  %v2446_v43 = vsel %vm765_vm10, %v5375_v11, 0.0  ;;  %v6475_v19 = vld [vmem:[#allocation23_spill] sm:$0xff] }
 0x196   : > { %v1887_v47 = vadd.f32 %v1886_v3, %v1885_v42  ;;  %v1134_v18 = vadd.f32 %v6474_v54, %v5358_v45  ;;  %v5480_v3 = vsel %vm765_vm10, %v5379_v21, 0.0  ;;  %v1462_v38 = vrot.slane %v1461_v34, 4 }
 0x197   : > { %v1890_v45 = vsel %vm765_vm10, %v3767_v5, 0.0  ;;  %v5483_v40 = vmax.f32 %v1618_v29, %v1619_v49  ;;  %v5487_v12 = vsel %vm765_vm10, %v5383_v4, 0.0  ;;  %v2116_v10 = vmul.f32 %v6475_v19, %v5282_v59  ;;  %v6476_v4 = vld [vmem:[#allocation25_spill] sm:$0xff] }
 0x198   : > { %v1889_v53 = vadd.f32 %v1888_v36, %v1887_v47  ;;  %v1993_v11 = vsel %vm1992_vm3, 1, %v6413_v1  ;;  %v803_v20 = vadd.f32 %v802_v31, %v5394_v60  ;;  %v1790_v21 = vadd.f32 %v1789_v35, %v5366_v32 }
 0x199   : > { %v1621_v48 = vsub.f32 %v5422_v23, %v5483_v40  ;;  %v1622_v29 = vsub.f32 %v5425_v46, %v5483_v40  ;;  %v1135_v7 = vrot.slane %v1134_v18, 2  ;;  %v2445_v41 = vmul.f32 %v6476_v4, %v5282_v59 }
 0x19a   : > { %v1891_v54 = vadd.f32 %v1890_v45, %v1889_v53  ;;  %v1623_v63 = vsub.f32 %v5428_v61, %v5483_v40  ;;  %v793_v37 = vstv %s4208_s19  ;;  %v1463_v31 = vadd.f32 %v1462_v38, %v1461_v34 }
 0x19b   : > { %v1624_v32 = vsub.f32 %v5432_v62, %v5483_v40  ;;  %v1629_v60 = vmul.f32 1.442695, %v1621_v48  ;;  %v1631_v42 = vmul.f32 1.442695, %v1622_v29  ;;  %v2118_v23 = vsel %vm765_vm10, %v2116_v10, 0.0 }
 0x19c   : > { %3768 = vlog2.f32 %v1891_v54  ;;  %v1994_v16 = vperm.slane %v1993_v11, 0  ;;  %v1625_v46 = vsub.f32 %v5435_v55, %v5483_v40  ;;  %v804_v17 = vrot.slane %v803_v20, 1 }
 0x19d   : > { %v1791_v5 = vrot.slane %v1790_v21, 4  ;;  %v1626_v47 = vsub.f32 %v5438_v2, %v5483_v40  ;;  %3770 = vpow2.f32 %v1629_v60  ;;  %v5512_v61 = vadd.f32 %v1135_v7, %v1134_v18 }
 0x19e   : > { %v2447_v62 = vsel %vm765_vm10, %v2445_v41, 0.0  ;;  %v1627_v34 = vsub.f32 %v5441_v56, %v5483_v40  ;;  %3772 = vpow2.f32 %v1631_v42  ;;  %v1633_v36 = vmul.f32 1.442695, %v1623_v63 }
 0x19f   : > { %v2119_v49 = vadd.f32 %v2118_v23, %v5391_v52  ;;  %v1628_v55 = vsub.f32 %v5444_v22, %v5483_v40  ;;  %v1635_v35 = vmul.f32 1.442695, %v1624_v32  ;;  %v5520_v53 = vstv %s1011_s27 }
 0x1a0   : > { %v1464_v2 = vrot.slane %v1463_v31, 2  ;;  %v1637_v45 = vmul.f32 1.442695, %v1625_v46  ;;  %v5522_v18 = vstv %s1340_s30  ;;  %v5524_v19 = vadd.f32 %v1791_v5, %v1790_v21 }
 0x1a1   : > { %v5526_v10 = vadd.f32 %v2447_v62, %v2446_v43  ;;  %vm5528_vm4 = vcmp.eq.s32.totalorder %v1994_v16, 1  ;;  %v6477_v54 = vmov 0  ;;  %v5532_v52 = vadd.f32 %v804_v17, %v803_v20  ;;  %v5570_v62 = vld [vmem:[%s6291_s5] sm:$0x1] }
 0x1a2   : > { %v3769_v38 = vpop.eup %3768  ;;  %v6478_v54 = vsel %vm5528_vm4, 4294967295, %v6477_v54  ;;  %v2120_v22 = vrot.slane %v2119_v49, 4  ;;  %3774 = vpow2.f32 %v1633_v36  ;;  %v5534_v11 = vmul.f32 1.442695, %v1626_v47 }
 0x1a3   : > { %v1893_v56 = vmul.f32 0.6931472, %v3769_v38  ;;  %6479 = vst [vmem:[#allocation14_spill] sm:$0xff] %v6478_v54  ;;  %v5536_v48 = vmul.f32 1.442695, %v1627_v34  ;;  %v3771_v7 = vpop.eup %3770  ;;  %3776 = vpow2.f32 %v1635_v35  ;;  %v5542_v4 = vadd.f32 %v1464_v2, %v1463_v31 }
 0x1a4   : > { %v5540_v43 = vmul.f32 1.442695, %v1628_v55  ;;  %v3773_v41 = vpop.eup %3772  ;;  %3778 = vpow2.f32 %v1637_v45  ;;  %v2449_v63 = vrot.slane %v5526_v10, 4  ;;  %v5548_v32 = vmul.f32 %v6448_v58, %v5282_v59 }
 0x1a5   : > { %v1894_v21 = vadd.f32 %v1893_v56, %v5360_v24  ;;  %v1645_v24 = vsel %vm765_vm10, %v3771_v7, 0.0  ;;  %v1646_v31 = vsel %vm765_vm10, %v3773_v41, 0.0  ;;  %v5557_v42 = vadd.f32 %v2120_v22, %v2119_v49 }
 0x1a6   : > { %vm5580_vm5 = vcmp.eq.s32.totalorder %v793_v37, %v5570_v62  ;;  %vm1127_vm6 = vcmp.eq.s32.totalorder %v5520_v53, %v5570_v62  ;;  %vm1456_vm7 = vcmp.eq.s32.totalorder %v5522_v18, %v5570_v62  ;;  %3780 = vpow2.f32 %v5534_v11 }
 0x1a7   : > { %v5553_v60 = vsel %vm5528_vm4, %v1894_v21, %v5314_v9  ;;  %v3103_v54 = vmul.f32 %v6449_v51, %v5282_v59  ;;  %3782 = vpow2.f32 %v5536_v48  ;;  %v1466_v11 = vrot.slane %v5542_v4, 1 }
 0x1a8   : > { %v2128_v23 = vrot.slane %v5553_v60, 1  ;;  %v2129_v16 = vrot.slane %v5553_v60, 2  ;;  %v2130_v46 = vrot.slane %v5553_v60, 3  ;;  %v2131_v58 = vrot.slane %v5553_v60, 4  ;;  %v3775_v34 = vpop.eup %3774 }
 0x1a9   : > { %v2132_v17 = vrot.slane %v5553_v60, 5  ;;  %v2133_v5 = vrot.slane %v5553_v60, 6  ;;  %v2134_v9 = vrot.slane %v5553_v60, 7  ;;  %v2135_v47 = vperm.slane %v5553_v60, 0  ;;  %v3777_v2 = vpop.eup %3776 }
 0x1aa   : > { %v2136_v36 = vperm.slane %v2128_v23, 0  ;;  %v2137_v49 = vperm.slane %v2129_v16, 0  ;;  %v2138_v55 = vperm.slane %v2130_v46, 0  ;;  %v2139_v35 = vperm.slane %v2131_v58, 0  ;;  %v3779_v7 = vpop.eup %3778 }
 0x1ab   : > { %v2140_v38 = vperm.slane %v2132_v17, 0  ;;  %v2141_v45 = vperm.slane %v2133_v5, 0  ;;  %v2142_v56 = vperm.slane %v2134_v9, 0  ;;  %v2151_v22 = vadd.f32 %v2135_v47, %v4634_v13  ;;  %v6482_v17 = vld [vmem:[#allocation47_spill] sm:$0xff] }
 0x1ac   : > { %v2152_v21 = vadd.f32 %v2136_v36, %v4640_v25  ;;  %v2153_v41 = vadd.f32 %v2137_v49, %v4636_v28  ;;  %v2154_v29 = vadd.f32 %v2138_v55, %v6436_v39  ;;  %v2155_v20 = vadd.f32 %v2139_v35, %v6437_v30 }
 0x1ad   : > { %v2156_v16 = vadd.f32 %v2140_v38, %v6439_v8  ;;  %v2157_v46 = vadd.f32 %v2141_v45, %v6440_v6  ;;  %v2158_v58 = vadd.f32 %v2142_v56, %v6441_v33  ;;  %v2159_v5 = vadd.f32 %v2151_v22, %v6482_v17 }
 0x1ae   : > { %v2160_v9 = vadd.f32 %v2152_v21, %v6482_v17  ;;  %v5590_v47 = vadd.f32 %v2153_v41, %v6482_v17  ;;  %v5593_v36 = vadd.f32 %v2154_v29, %v6482_v17  ;;  %v5596_v37 = vadd.f32 %v2155_v20, %v6482_v17 }
 0x1af   : > { %v5599_v49 = vadd.f32 %v2156_v16, %v6482_v17  ;;  %v5602_v55 = vadd.f32 %v2157_v46, %v6482_v17  ;;  %v5605_v35 = vadd.f32 %v2158_v58, %v6482_v17  ;;  %v2167_v38 = vsel %vm765_vm10, %v2159_v5, -inf }
 0x1b0   : > { %v2168_v29 = vsel %vm765_vm10, %v2160_v9, -inf  ;;  %v2169_v20 = vsel %vm765_vm10, %v5590_v47, -inf  ;;  %v2170_v45 = vsel %vm765_vm10, %v5593_v36, -inf  ;;  %v2171_v56 = vsel %vm765_vm10, %v5596_v37, -inf }
 0x1b1   : > { %v2172_v22 = vmax.f32 %v2167_v38, %v2171_v56  ;;  %v2173_v21 = vsel %vm765_vm10, %v5599_v49, -inf  ;;  %v2175_v41 = vsel %vm765_vm10, %v5602_v55, -inf  ;;  %v2177_v16 = vsel %vm765_vm10, %v5605_v35, -inf }
 0x1b2   : > { %v2174_v46 = vmax.f32 %v2168_v29, %v2173_v21  ;;  %v2176_v58 = vmax.f32 %v2169_v20, %v2175_v41  ;;  %v2178_v17 = vmax.f32 %v2170_v45, %v2177_v16  ;;  %v1647_v33 = vadd.f32 %v1646_v31, %v1645_v24  ;;  %v640_v20 = vld [vmem:[#allocation5] sm:$0x1]  ;;  %v3781_v16 = vpop.eup %3780 }
 0x1b3   : > { %v1648_v38 = vsel %vm765_vm10, %v3775_v34, 0.0  ;;  %v2450_v56 = vadd.f32 %v2449_v63, %v5526_v10  ;;  %v2122_v24 = vrot.slane %v5557_v42, 2  ;;  %v1650_v31 = vsel %vm765_vm10, %v3777_v2, 0.0 }
 0x1b4   : > { %v2179_v6 = vmax.f32 %v2172_v22, %v2174_v46  ;;  %v2180_v8 = vmax.f32 %v2176_v58, %v2178_v17  ;;  %v1649_v29 = vadd.f32 %v1648_v38, %v1647_v33  ;;  %v6483_v34 = vrot.slane %v5524_v19, 2 }
 0x1b5   : > { %v1784_v63 = vstv %s1669_s28  ;;  %v6484_v33 = vrot.slane %v5512_v61, 1  ;;  %3784 = vpow2.f32 %v5540_v43  ;;  %v806_v48 = vsel %vm5580_vm5, %v5532_v52, %v640_v20 }
 0x1b6   : > { %v1794_v45 = vadd.f32 %v6483_v34, %v5524_v19  ;;  %v5638_v10 = vmax.f32 %v2179_v6, %v2180_v8  ;;  %v1651_v51 = vadd.f32 %v1650_v31, %v1649_v29  ;;  %v2451_v2 = vrot.slane %v2450_v56, 2 }
 0x1b7   : > { %v1138_v22 = vadd.f32 %v6484_v33, %v5512_v61  ;;  %v2776_v19 = vsel %vm765_vm10, %v5548_v32, 0.0  ;;  %v2123_v21 = vadd.f32 %v2122_v24, %v5557_v42  ;;  %v3105_v41 = vsel %vm765_vm10, %v3103_v54, 0.0 }
 0x1b8   : > { %v2182_v8 = vsub.f32 %v2159_v5, %v5638_v10  ;;  %v2183_v6 = vsub.f32 %v2160_v9, %v5638_v10  ;;  %v1652_v61 = vsel %vm765_vm10, %v3779_v7, 0.0  ;;  %v2113_v43 = vstv %s1998_s21  ;;  %v3783_v9 = vpop.eup %3782 }
 0x1b9   : > { %v1467_v23 = vadd.f32 %v1466_v11, %v5542_v4  ;;  %v1795_v52 = vrot.slane %v1794_v45, 1  ;;  %v1653_v58 = vadd.f32 %v1652_v61, %v1651_v51  ;;  %v1139_v32 = vsel %vm1127_vm6, %v1138_v22, %v806_v48 }
 0x1ba   : > { %v2190_v46 = vmul.f32 1.442695, %v2182_v8  ;;  %v2777_v5 = vadd.f32 %v2776_v19, %v5480_v3  ;;  %v2192_v42 = vmul.f32 1.442695, %v2183_v6  ;;  %vm1785_vm1 = vcmp.eq.s32.totalorder %v1784_v63, %v5570_v62 }
 0x1bb   : > { %v2452_v54 = vadd.f32 %v2451_v2, %v2450_v56  ;;  %v3106_v7 = vadd.f32 %v3105_v41, %v5487_v12  ;;  %v1654_v17 = vsel %vm765_vm10, %v3781_v16, 0.0  ;;  %vm2114_vm8 = vcmp.eq.s32.totalorder %v2113_v43, %v5570_v62  ;;  %v3785_v29 = vpop.eup %3784 }
 0x1bc   : > { %v2442_v4 = vstv %s2327_s25  ;;  %v2124_v38 = vrot.slane %v2123_v21, 1  ;;  %v2184_v53 = vsub.f32 %v5590_v47, %v5638_v10  ;;  %v1655_v3 = vadd.f32 %v1654_v17, %v1653_v58 }
 0x1bd   : > { %v1468_v20 = vsel %vm1456_vm7, %v1467_v23, %v1139_v32  ;;  %v1796_v56 = vadd.f32 %v1795_v52, %v1794_v45  ;;  %v2185_v12 = vsub.f32 %v5593_v36, %v5638_v10  ;;  %3786 = vpow2.f32 %v2190_v46 }
 0x1be   : > { %v1656_v24 = vsel %vm765_vm10, %v3783_v9, 0.0  ;;  %v2778_v31 = vrot.slane %v2777_v5, 4  ;;  %3788 = vpow2.f32 %v2192_v42  ;;  %v2453_v34 = vrot.slane %v2452_v54, 1 }
 0x1bf   : > { %v1657_v11 = vadd.f32 %v1656_v24, %v1655_v3  ;;  %v3107_v51 = vrot.slane %v3106_v7, 4  ;;  %v2186_v47 = vsub.f32 %v5596_v37, %v5638_v10  ;;  %v1658_v33 = vsel %vm765_vm10, %v3785_v29, 0.0 }
 0x1c0   : > { %v2125_v18 = vadd.f32 %v2124_v38, %v2123_v21  ;;  %v2779_v45 = vadd.f32 %v2778_v31, %v2777_v5  ;;  %v2194_v22 = vmul.f32 1.442695, %v2184_v53  ;;  %v1797_v36 = vsel %vm1785_vm1, %v1796_v56, %v1468_v20 }
 0x1c1   : > { %v1659_v48 = vadd.f32 %v1658_v33, %v1657_v11  ;;  %v3108_v2 = vadd.f32 %v3107_v51, %v3106_v7  ;;  %v2196_v19 = vmul.f32 1.442695, %v2185_v12  ;;  %v2771_v8 = vstv %s2656_s26 }
 0x1c2   : > { %v2780_v6 = vrot.slane %v2779_v45, 2  ;;  %vm2443_vm9 = vcmp.eq.s32.totalorder %v2442_v4, %v5570_v62  ;;  %v3100_v41 = vstv %s2985_s11  ;;  %v2454_v16 = vadd.f32 %v2453_v34, %v2452_v54 }
 0x1c3   : > { %v3109_v61 = vrot.slane %v3108_v2, 2  ;;  %v3787_v37 = vpop.eup %3786  ;;  %v2198_v23 = vmul.f32 1.442695, %v2186_v47  ;;  %3790 = vlog2.f32 %v1659_v48  ;;  %v2126_v21 = vsel %vm2114_vm8, %v2125_v18, %v1797_v36 }
 0x1c4   : > { %v2781_v52 = vadd.f32 %v2780_v6, %v2779_v45  ;;  %v3789_v46 = vpop.eup %3788  ;;  %3792 = vpow2.f32 %v2194_v22  ;;  %v2187_v58 = vsub.f32 %v5599_v49, %v5638_v10  ;;  %vm2772_vm12 = vcmp.eq.s32.totalorder %v2771_v8, %v5570_v62 }
 0x1c5   : > { %v3110_v63 = vadd.f32 %v3109_v61, %v3108_v2  ;;  %3794 = vpow2.f32 %v2196_v19  ;;  %v2188_v5 = vsub.f32 %v5602_v55, %v5638_v10  ;;  %vm3101_vm11 = vcmp.eq.s32.totalorder %v3100_v41, %v5570_v62 }
 0x1c6   : > { %v2782_v32 = vrot.slane %v2781_v52, 1  ;;  %v2455_v43 = vsel %vm2443_vm9, %v2454_v16, %v2126_v21  ;;  %3796 = vpow2.f32 %v2198_v23  ;;  %v2206_v42 = vsel %vm765_vm10, %v3787_v37, 0.0 }
 0x1c7   : > { %v3111_v9 = vrot.slane %v3110_v63, 1  ;;  %v2207_v54 = vsel %vm765_vm10, %v3789_v46, 0.0  ;;  %v2189_v38 = vsub.f32 %v5605_v35, %v5638_v10  ;;  %v2200_v29 = vmul.f32 1.442695, %v2187_v58 }
 0x1c8   : > { %v2783_v7 = vadd.f32 %v2782_v32, %v2781_v52  ;;  %v2202_v3 = vmul.f32 1.442695, %v2188_v5  ;;  %v2208_v20 = vadd.f32 %v2207_v54, %v2206_v42  ;;  %v6485_v5 = vld [vmem:[#allocation41_spill] sm:$0xff]  ;;  %v6487_v54 = vld [vmem:[#allocation46_spill] sm:$0xff] }
 0x1c9   : > { %v3112_v17 = vadd.f32 %v3111_v9, %v3110_v63  ;;  %v3791_v49 = vpop.eup %3790  ;;  %3798 = vpow2.f32 %v2200_v29  ;;  %v2204_v11 = vmul.f32 1.442695, %v2189_v38  ;;  %v6486_v9 = vld [vmem:[#allocation43_spill] sm:$0xff] }
 0x1ca   : > { %v2784_v53 = vsel %vm2772_vm12, %v2783_v7, %v2455_v43  ;;  %v3793_v55 = vpop.eup %3792  ;;  %v1661_v56 = vmul.f32 0.6931472, %v3791_v49  ;;  %3800 = vpow2.f32 %v2202_v3 }
 0x1cb   : > { %v5697_v4 = vsel %vm3101_vm11, %v3112_v17, %v2784_v53  ;;  %v3795_v12 = vpop.eup %3794  ;;  %v2209_v35 = vsel %vm765_vm10, %v3793_v55, 0.0  ;;  %3802 = vpow2.f32 %v2204_v11 }
 0x1cc   : > { %3320 = vst.msk [vmem:[#allocation5] sm:$0x1] %vm3318_vm0, %v5697_v4  ;;  %v1662_v24 = vadd.f32 %v1661_v56, %v5483_v40  ;;  %v3797_v31 = vpop.eup %3796  ;;  %v2210_v34 = vadd.f32 %v2209_v35, %v2208_v20  ;;  %v2211_v51 = vsel %vm765_vm10, %v3795_v12, 0.0 }
 0x1cd   : > { %v2213_v45 = vsel %vm765_vm10, %v3797_v31, 0.0 }
 0x1ce   : > { %v5707_v62 = vsel %vm5297_vm2, %v1662_v24, %v5371_v27  ;;  %v2212_v8 = vadd.f32 %v2211_v51, %v2210_v34 }
 0x1cf   : > { %v1896_v47 = vrot.slane %v5707_v62, 1  ;;  %v1897_v33 = vrot.slane %v5707_v62, 2  ;;  %v1898_v40 = vrot.slane %v5707_v62, 3  ;;  %v1899_v18 = vrot.slane %v5707_v62, 4  ;;  %v3799_v61 = vpop.eup %3798 }
 0x1d0   : > { %v1900_v22 = vrot.slane %v5707_v62, 5  ;;  %v1901_v48 = vrot.slane %v5707_v62, 6  ;;  %v1902_v36 = vrot.slane %v5707_v62, 7  ;;  %v1903_v26 = vperm.slane %v5707_v62, 0  ;;  %v3801_v46 = vpop.eup %3800 }
 0x1d1   : > { %v1904_v27 = vperm.slane %v1896_v47, 0  ;;  %v1905_v2 = vperm.slane %v1897_v33, 0  ;;  %v1906_v19 = vperm.slane %v1898_v40, 0  ;;  %v1907_v6 = vperm.slane %v1899_v18, 0 }
 0x1d2   : > { %v1908_v41 = vperm.slane %v1900_v22, 0  ;;  %v1909_v16 = vperm.slane %v1901_v48, 0  ;;  %v1910_v37 = vperm.slane %v1902_v36, 0  ;;  %v1919_v23 = vadd.f32 %v1903_v26, %v6464_v14 }
 0x1d3   : > { %v1920_v21 = vadd.f32 %v1904_v27, %v6465_v57  ;;  %v1921_v52 = vadd.f32 %v1905_v2, %v6466_v0  ;;  %v1922_v63 = vadd.f32 %v1906_v19, %v6467_v50  ;;  %v1923_v58 = vadd.f32 %v1907_v6, %v6468_v44  ;;  %v3803_v2 = vpop.eup %3802 }
 0x1d4   : > { %v1924_v32 = vadd.f32 %v1908_v41, %v6469_v15  ;;  %v1925_v43 = vadd.f32 %v1909_v16, %v6485_v5  ;;  %v1926_v42 = vadd.f32 %v1910_v37, %v6486_v9  ;;  %v1927_v7 = vadd.f32 %v1919_v23, %v6487_v54 }
 0x1d5   : > { %v1928_v17 = vadd.f32 %v1920_v21, %v6487_v54  ;;  %v1929_v49 = vadd.f32 %v1921_v52, %v6487_v54  ;;  %v1930_v38 = vadd.f32 %v1922_v63, %v6487_v54  ;;  %v1931_v29 = vadd.f32 %v1923_v58, %v6487_v54 }
 0x1d6   : > { %v1932_v53 = vadd.f32 %v1924_v32, %v6487_v54  ;;  %v1933_v55 = vadd.f32 %v1925_v43, %v6487_v54  ;;  %v2214_v3 = vadd.f32 %v2213_v45, %v2212_v8  ;;  %v1934_v20 = vadd.f32 %v1926_v42, %v6487_v54  ;;  %v3950_v42 = vld [vmem:[%s4218_s24 + $0x4] sm:$0x1] }
 0x1d7   : > { %v1936_v56 = vsel %vm765_vm10, %v1928_v17, -inf  ;;  %v1937_v12 = vsel %vm765_vm10, %v1929_v49, -inf  ;;  %v1938_v24 = vsel %vm765_vm10, %v1930_v38, -inf  ;;  %v1939_v31 = vsel %vm765_vm10, %v1931_v29, -inf }
 0x1d8   : > { %v1941_v35 = vsel %vm765_vm10, %v1932_v53, -inf  ;;  %v1943_v34 = vsel %vm765_vm10, %v1933_v55, -inf  ;;  %v2215_v51 = vsel %vm765_vm10, %v3799_v61, 0.0  ;;  %v1935_v47 = vsel %vm765_vm10, %v1927_v7, -inf }
 0x1d9   : > { %v1945_v33 = vsel %vm765_vm10, %v1934_v20, -inf  ;;  %v1940_v40 = vmax.f32 %v1935_v47, %v1939_v31  ;;  %v1942_v18 = vmax.f32 %v1936_v56, %v1941_v35  ;;  %v1944_v45 = vmax.f32 %v1937_v12, %v1943_v34 }
 0x1da   : > { %v1946_v22 = vmax.f32 %v1938_v24, %v1945_v33  ;;  %v2216_v48 = vadd.f32 %v2215_v51, %v2214_v3  ;;  %v2217_v36 = vsel %vm765_vm10, %v3801_v46, 0.0  ;;  %v2219_v8 = vsel %vm765_vm10, %v3803_v2, 0.0 }
 0x1db   : > { %v1947_v26 = vmax.f32 %v1940_v40, %v1942_v18  ;;  %vm2321_vm13 = vcmp.gt.f32.partialorder %v3950_v42, 0.0 }
 0x1dc   : > { %v1948_v27 = vmax.f32 %v1944_v45, %v1946_v22  ;;  %v2218_v19 = vadd.f32 %v2217_v36, %v2216_v48 }
 0x1de   : > { %v5745_v11 = vmax.f32 %v1947_v26, %v1948_v27  ;;  %v2220_v6 = vadd.f32 %v2219_v8, %v2218_v19 }
 0x1e0   : > { %v1950_v41 = vsub.f32 %v1927_v7, %v5745_v11  ;;  %v1951_v16 = vsub.f32 %v1928_v17, %v5745_v11  ;;  %v1952_v61 = vsub.f32 %v1929_v49, %v5745_v11  ;;  %v1953_v37 = vsub.f32 %v1930_v38, %v5745_v11 }
 0x1e1   : > { %v1954_v23 = vsub.f32 %v1931_v29, %v5745_v11  ;;  %3804 = vlog2.f32 %v2220_v6  ;;  %v1955_v63 = vsub.f32 %v1932_v53, %v5745_v11  ;;  %v1956_v32 = vsub.f32 %v1933_v55, %v5745_v11 }
 0x1e2   : > { %v1958_v21 = vmul.f32 1.442695, %v1950_v41  ;;  %v1960_v52 = vmul.f32 1.442695, %v1951_v16  ;;  %v1962_v46 = vmul.f32 1.442695, %v1952_v61  ;;  %v1957_v54 = vsub.f32 %v1934_v20, %v5745_v11 }
 0x1e3   : > { %v1964_v58 = vmul.f32 1.442695, %v1953_v37  ;;  %v1966_v43 = vmul.f32 1.442695, %v1954_v23  ;;  %v1968_v7 = vmul.f32 1.442695, %v1955_v63 }
 0x1e4   : > { %3806 = vpow2.f32 %v1958_v21  ;;  %v2322_v49 = vsel %vm2321_vm13, 1, %v6413_v1  ;;  %v1970_v38 = vmul.f32 1.442695, %v1956_v32  ;;  %v1972_v56 = vmul.f32 1.442695, %v1957_v54 }
 0x1e5   : > { %3808 = vpow2.f32 %v1960_v52  ;;  %v2323_v24 = vperm.slane %v2322_v49, 0 }
 0x1e6   : > { %3810 = vpow2.f32 %v1962_v46 }
 0x1e7   : > { %3812 = vpow2.f32 %v1964_v58  ;;  %v3805_v17 = vpop.eup %3804  ;;  %vm5761_vm14 = vcmp.eq.s32.totalorder %v2323_v24, 1 }
 0x1e8   : > { %3814 = vpow2.f32 %v1966_v43  ;;  %v2222_v3 = vmul.f32 0.6931472, %v3805_v17 }
 0x1e9   : > { %3816 = vpow2.f32 %v1968_v7 }
 0x1ea   : > { %v3807_v29 = vpop.eup %3806  ;;  %3818 = vpow2.f32 %v1970_v38  ;;  %v2223_v47 = vadd.f32 %v2222_v3, %v5638_v10 }
 0x1eb   : > { %v3809_v53 = vpop.eup %3808  ;;  %v1974_v55 = vsel %vm765_vm10, %v3807_v29, 0.0  ;;  %3820 = vpow2.f32 %v1972_v56  ;;  %v6490_v56 = vld [vmem:[#allocation49_spill] sm:$0xff] }
 0x1ec   : > { %v3811_v12 = vpop.eup %3810  ;;  %v1975_v31 = vsel %vm765_vm10, %v3809_v53, 0.0  ;;  %v5770_v26 = vsel %vm5761_vm14, %v2223_v47, %v5553_v60 }
 0x1ed   : > { %v3813_v35 = vpop.eup %3812  ;;  %v1976_v20 = vadd.f32 %v1975_v31, %v1974_v55  ;;  %v1977_v34 = vsel %vm765_vm10, %v3811_v12, 0.0  ;;  %v2457_v8 = vrot.slane %v5770_v26, 1  ;;  %v2458_v61 = vrot.slane %v5770_v26, 2 }
 0x1ee   : > { %v3815_v51 = vpop.eup %3814  ;;  %v1979_v18 = vsel %vm765_vm10, %v3813_v35, 0.0  ;;  %v2459_v23 = vrot.slane %v5770_v26, 3  ;;  %v2460_v60 = vrot.slane %v5770_v26, 4  ;;  %v2461_v52 = vrot.slane %v5770_v26, 5  ;;  %v6491_v35 = vld [vmem:[#allocation30_spill] sm:$0xff] }
 0x1ef   : > { %v1978_v33 = vadd.f32 %v1977_v34, %v1976_v20  ;;  %v3817_v45 = vpop.eup %3816  ;;  %v1981_v48 = vsel %vm765_vm10, %v3815_v51, 0.0  ;;  %v2465_v21 = vperm.slane %v2457_v8, 0  ;;  %v2462_v46 = vrot.slane %v5770_v26, 6  ;;  %v6492_v34 = vld [vmem:[#allocation32_spill] sm:$0xff] }
 0x1f0   : > { %v3819_v36 = vpop.eup %3818  ;;  %v1983_v10 = vsel %vm765_vm10, %v3817_v45, 0.0  ;;  %v2464_v63 = vperm.slane %v5770_v26, 0  ;;  %v2466_v58 = vperm.slane %v2458_v61, 0  ;;  %v2467_v32 = vperm.slane %v2459_v23, 0 }
 0x1f1   : > { %v1980_v22 = vadd.f32 %v1979_v18, %v1978_v33  ;;  %v3821_v2 = vpop.eup %3820  ;;  %v1985_v6 = vsel %vm765_vm10, %v3819_v36, 0.0  ;;  %v2468_v43 = vperm.slane %v2460_v60, 0  ;;  %v2481_v42 = vadd.f32 %v2465_v21, %v4640_v25 }
 0x1f2   : > { %v1987_v16 = vsel %vm765_vm10, %v3821_v2, 0.0  ;;  %v2463_v54 = vrot.slane %v5770_v26, 7  ;;  %v2469_v17 = vperm.slane %v2461_v52, 0  ;;  %v2470_v49 = vperm.slane %v2462_v46, 0 }
 0x1f3   : > { %v1982_v27 = vadd.f32 %v1981_v48, %v1980_v22  ;;  %v2480_v38 = vadd.f32 %v2464_v63, %v4634_v13  ;;  %v2482_v29 = vadd.f32 %v2466_v58, %v4636_v28  ;;  %v2483_v53 = vadd.f32 %v2467_v32, %v6436_v39 }
 0x1f4   : > { %v2484_v3 = vadd.f32 %v2468_v43, %v6437_v30  ;;  %v5789_v55 = vadd.f32 %v2481_v42, %v6490_v56  ;;  %v2471_v24 = vperm.slane %v2463_v54, 0  ;;  %v2485_v20 = vadd.f32 %v2469_v17, %v6491_v35 }
 0x1f5   : > { %v1984_v19 = vadd.f32 %v1983_v10, %v1982_v27  ;;  %v2486_v51 = vadd.f32 %v2470_v49, %v6492_v34  ;;  %v5795_v47 = vadd.f32 %v2480_v38, %v6490_v56  ;;  %v5798_v33 = vadd.f32 %v2482_v29, %v6490_v56 }
 0x1f6   : > { %v5801_v18 = vadd.f32 %v2483_v53, %v6490_v56  ;;  %v5804_v45 = vadd.f32 %v2484_v3, %v6490_v56  ;;  %v5808_v22 = vsel %vm765_vm10, %v5789_v55, -inf }
 0x1f7   : > { %v1986_v41 = vadd.f32 %v1985_v6, %v1984_v19 }
 0x1f9   : > { %v1988_v37 = vadd.f32 %v1987_v16, %v1986_v41 }
 0x1fb   : > { %3822 = vlog2.f32 %v1988_v37 }
 0x201   : > { %v3823_v7 = vpop.eup %3822 }
 0x202   : > { %v1990_v12 = vmul.f32 0.6931472, %v3823_v7  ;;  %v6494_v7 = vld [vmem:[#allocation48_spill] sm:$0xff] }
 0x204   : > { %v1991_v31 = vadd.f32 %v1990_v12, %v5745_v11 }
 0x206   : > { %v5813_v48 = vsel %vm5528_vm4, %v1991_v31, %v5707_v62 }
 0x207   : > { %v2225_v36 = vrot.slane %v5813_v48, 1  ;;  %v2226_v27 = vrot.slane %v5813_v48, 2  ;;  %v2227_v10 = vrot.slane %v5813_v48, 3  ;;  %v2228_v2 = vrot.slane %v5813_v48, 4 }
 0x208   : > { %v2229_v19 = vrot.slane %v5813_v48, 5  ;;  %v2230_v8 = vrot.slane %v5813_v48, 6  ;;  %v2231_v6 = vrot.slane %v5813_v48, 7  ;;  %v2232_v41 = vperm.slane %v5813_v48, 0 }
 0x209   : > { %v2233_v16 = vperm.slane %v2225_v36, 0  ;;  %v2234_v61 = vperm.slane %v2226_v27, 0  ;;  %v2235_v62 = vperm.slane %v2227_v10, 0  ;;  %v2236_v37 = vperm.slane %v2228_v2, 0 }
 0x20a   : > { %v2237_v23 = vperm.slane %v2229_v19, 0  ;;  %v2238_v60 = vperm.slane %v2230_v8, 0  ;;  %v2239_v21 = vperm.slane %v2231_v6, 0  ;;  %v2248_v52 = vadd.f32 %v2232_v41, %v6464_v14 }
 0x20b   : > { %v2249_v46 = vadd.f32 %v2233_v16, %v6465_v57  ;;  %v2250_v63 = vadd.f32 %v2234_v61, %v6466_v0  ;;  %v2251_v58 = vadd.f32 %v2235_v62, %v6467_v50  ;;  %v2252_v32 = vadd.f32 %v2236_v37, %v6468_v44  ;;  %v6495_v37 = vld [vmem:[#allocation33_spill] sm:$0xff] }
 0x20c   : > { %v2253_v43 = vadd.f32 %v2237_v23, %v6469_v15  ;;  %v2254_v42 = vadd.f32 %v2238_v60, %v6485_v5  ;;  %v2255_v54 = vadd.f32 %v2239_v21, %v6486_v9  ;;  %v2256_v17 = vadd.f32 %v2248_v52, %v6494_v7 }
 0x20d   : > { %v2257_v49 = vadd.f32 %v2249_v46, %v6494_v7  ;;  %v2258_v38 = vadd.f32 %v2250_v63, %v6494_v7  ;;  %v2259_v29 = vadd.f32 %v2251_v58, %v6494_v7  ;;  %v2260_v53 = vadd.f32 %v2252_v32, %v6494_v7 }
 0x20e   : > { %v2261_v3 = vadd.f32 %v2253_v43, %v6494_v7  ;;  %v2262_v12 = vadd.f32 %v2254_v42, %v6494_v7  ;;  %v2263_v31 = vadd.f32 %v2255_v54, %v6494_v7  ;;  %v2264_v11 = vsel %vm765_vm10, %v2256_v17, -inf }
 0x20f   : > { %v2265_v36 = vsel %vm765_vm10, %v2257_v49, -inf  ;;  %v2266_v27 = vsel %vm765_vm10, %v2258_v38, -inf  ;;  %v2267_v10 = vsel %vm765_vm10, %v2259_v29, -inf  ;;  %v2268_v2 = vsel %vm765_vm10, %v2260_v53, -inf }
 0x210   : > { %v2269_v19 = vmax.f32 %v2264_v11, %v2268_v2  ;;  %v2270_v8 = vsel %vm765_vm10, %v2261_v3, -inf  ;;  %v2272_v6 = vsel %vm765_vm10, %v2262_v12, -inf  ;;  %v2274_v41 = vsel %vm765_vm10, %v2263_v31, -inf }
 0x211   : > { %v2271_v16 = vmax.f32 %v2265_v36, %v2270_v8  ;;  %v2273_v61 = vmax.f32 %v2266_v27, %v2272_v6  ;;  %v2275_v62 = vmax.f32 %v2267_v10, %v2274_v41  ;;  %v2487_v23 = vadd.f32 %v2471_v24, %v6495_v37 }
 0x212   : > { %v2498_v60 = vsel %vm765_vm10, %v5798_v33, -inf  ;;  %v2500_v21 = vsel %vm765_vm10, %v5804_v45, -inf  ;;  %v5853_v52 = vadd.f32 %v2485_v20, %v6490_v56  ;;  %v5856_v46 = vadd.f32 %v2486_v51, %v6490_v56 }
 0x213   : > { %v2276_v63 = vmax.f32 %v2269_v19, %v2271_v16  ;;  %v2277_v58 = vmax.f32 %v2273_v61, %v2275_v62  ;;  %v5859_v32 = vadd.f32 %v2487_v23, %v6490_v56  ;;  %v2499_v24 = vsel %vm765_vm10, %v5801_v18, -inf }
 0x214   : > { %v2496_v43 = vsel %vm765_vm10, %v5795_v47, -inf  ;;  %v2502_v42 = vsel %vm765_vm10, %v5853_v52, -inf  ;;  %v2504_v20 = vsel %vm765_vm10, %v5856_v46, -inf }
 0x215   : > { %v2501_v54 = vmax.f32 %v2496_v43, %v2500_v21  ;;  %v5869_v51 = vmax.f32 %v2276_v63, %v2277_v58  ;;  %v2503_v7 = vmax.f32 %v5808_v22, %v2502_v42  ;;  %v2506_v56 = vsel %vm765_vm10, %v5859_v32, -inf }
 0x216   : > { %v2505_v11 = vmax.f32 %v2498_v60, %v2504_v20  ;;  %v2507_v36 = vmax.f32 %v2499_v24, %v2506_v56 }
 0x217   : > { %v2279_v27 = vsub.f32 %v2256_v17, %v5869_v51  ;;  %v2280_v10 = vsub.f32 %v2257_v49, %v5869_v51  ;;  %v2281_v2 = vsub.f32 %v2258_v38, %v5869_v51  ;;  %v2282_v19 = vsub.f32 %v2259_v29, %v5869_v51 }
 0x218   : > { %v2283_v8 = vsub.f32 %v2260_v53, %v5869_v51  ;;  %v2284_v6 = vsub.f32 %v2261_v3, %v5869_v51  ;;  %v2285_v41 = vsub.f32 %v2262_v12, %v5869_v51  ;;  %v2286_v22 = vsub.f32 %v2263_v31, %v5869_v51 }
 0x219   : > { %v2287_v16 = vmul.f32 1.442695, %v2279_v27  ;;  %v2289_v61 = vmul.f32 1.442695, %v2280_v10  ;;  %v2291_v62 = vmul.f32 1.442695, %v2281_v2  ;;  %v2508_v23 = vmax.f32 %v2501_v54, %v2503_v7 }
 0x21a   : > { %v2293_v60 = vmul.f32 1.442695, %v2282_v19  ;;  %v2509_v17 = vmax.f32 %v2505_v11, %v2507_v36  ;;  %v2295_v49 = vmul.f32 1.442695, %v2283_v8  ;;  %v2297_v38 = vmul.f32 1.442695, %v2284_v6 }
 0x21b   : > { %3824 = vpow2.f32 %v2287_v16  ;;  %v2299_v29 = vmul.f32 1.442695, %v2285_v41  ;;  %v2301_v53 = vmul.f32 1.442695, %v2286_v22 }
 0x21c   : > { %3826 = vpow2.f32 %v2289_v61  ;;  %v5882_v21 = vmax.f32 %v2508_v23, %v2509_v17 }
 0x21d   : > { %3828 = vpow2.f32 %v2291_v62 }
 0x21e   : > { %3830 = vpow2.f32 %v2293_v60  ;;  %v2511_v3 = vsub.f32 %v5795_v47, %v5882_v21  ;;  %v2512_v12 = vsub.f32 %v5789_v55, %v5882_v21  ;;  %v2513_v31 = vsub.f32 %v5798_v33, %v5882_v21 }
 0x21f   : > { %3832 = vpow2.f32 %v2295_v49  ;;  %v2514_v63 = vsub.f32 %v5801_v18, %v5882_v21  ;;  %v2515_v58 = vsub.f32 %v5804_v45, %v5882_v21  ;;  %v2516_v33 = vsub.f32 %v5853_v52, %v5882_v21 }
 0x220   : > { %3834 = vpow2.f32 %v2297_v38  ;;  %v2519_v24 = vmul.f32 1.442695, %v2511_v3  ;;  %v2521_v42 = vmul.f32 1.442695, %v2512_v12  ;;  %v2523_v20 = vmul.f32 1.442695, %v2513_v31 }
 0x221   : > { %v3825_v43 = vpop.eup %3824  ;;  %3836 = vpow2.f32 %v2299_v29  ;;  %v2525_v54 = vmul.f32 1.442695, %v2514_v63  ;;  %v2517_v45 = vsub.f32 %v5856_v46, %v5882_v21  ;;  %v2527_v36 = vmul.f32 1.442695, %v2515_v58 }
 0x222   : > { %v3827_v47 = vpop.eup %3826  ;;  %3838 = vpow2.f32 %v2301_v53  ;;  %v2303_v55 = vsel %vm765_vm10, %v3825_v43, 0.0  ;;  %v2518_v52 = vsub.f32 %v5859_v32, %v5882_v21  ;;  %v2529_v8 = vmul.f32 1.442695, %v2516_v33 }
 0x223   : > { %v3829_v7 = vpop.eup %3828  ;;  %v2304_v18 = vsel %vm765_vm10, %v3827_v47, 0.0  ;;  %3840 = vpow2.f32 %v2519_v24  ;;  %v2531_v46 = vmul.f32 1.442695, %v2517_v45 }
 0x224   : > { %v3831_v56 = vpop.eup %3830  ;;  %v2305_v11 = vadd.f32 %v2304_v18, %v2303_v55  ;;  %3842 = vpow2.f32 %v2521_v42  ;;  %v2306_v10 = vsel %vm765_vm10, %v3829_v7, 0.0  ;;  %v2533_v17 = vmul.f32 1.442695, %v2518_v52 }
 0x225   : > { %v3833_v27 = vpop.eup %3832  ;;  %3844 = vpow2.f32 %v2523_v20  ;;  %v2308_v41 = vsel %vm765_vm10, %v3831_v56, 0.0 }
 0x226   : > { %v3835_v2 = vpop.eup %3834  ;;  %v2307_v19 = vadd.f32 %v2306_v10, %v2305_v11  ;;  %3846 = vpow2.f32 %v2525_v54  ;;  %v2310_v62 = vsel %vm765_vm10, %v3833_v27, 0.0 }
 0x227   : > { %v3837_v6 = vpop.eup %3836  ;;  %3848 = vpow2.f32 %v2527_v36  ;;  %v2312_v32 = vsel %vm765_vm10, %v3835_v2, 0.0  ;;  %v3951_v2 = vld [vmem:[%s4218_s24 + $0x5] sm:$0x1] }
 0x228   : > { %v3839_v22 = vpop.eup %3838  ;;  %v2309_v16 = vadd.f32 %v2308_v41, %v2307_v19  ;;  %3850 = vpow2.f32 %v2529_v8  ;;  %v2314_v31 = vsel %vm765_vm10, %v3837_v6, 0.0  ;;  %vm2650_vm15 = vcmp.gt.f32.partialorder %v3951_v2, 0.0 }
 0x229   : > { %v3841_v61 = vpop.eup %3840  ;;  %3852 = vpow2.f32 %v2531_v46  ;;  %v2316_v42 = vsel %vm765_vm10, %v3839_v22, 0.0  ;;  %v2651_v8 = vsel %vm2650_vm15, 1, %v6413_v1 }
 0x22a   : > { %v3843_v23 = vpop.eup %3842  ;;  %v2311_v60 = vadd.f32 %v2310_v62, %v2309_v16  ;;  %v2535_v49 = vsel %vm765_vm10, %v3841_v61, 0.0  ;;  %3854 = vpow2.f32 %v2533_v17  ;;  %v2652_v41 = vperm.slane %v2651_v8, 0 }
 0x22b   : > { %v3845_v38 = vpop.eup %3844  ;;  %v2536_v29 = vsel %vm765_vm10, %v3843_v23, 0.0 }
 0x22c   : > { %v3847_v53 = vpop.eup %3846  ;;  %v2313_v3 = vadd.f32 %v2312_v32, %v2311_v60  ;;  %v2537_v12 = vadd.f32 %v2536_v29, %v2535_v49  ;;  %v2538_v63 = vsel %vm765_vm10, %v3845_v38, 0.0  ;;  %vm5924_vm2 = vcmp.eq.s32.totalorder %v2652_v41, 1 }
 0x22d   : > { %v3849_v58 = vpop.eup %3848  ;;  %v2540_v20 = vsel %vm765_vm10, %v3847_v53, 0.0 }
 0x22e   : > { %v2315_v24 = vadd.f32 %v2314_v31, %v2313_v3  ;;  %v2539_v43 = vadd.f32 %v2538_v63, %v2537_v12  ;;  %v3851_v47 = vpop.eup %3850  ;;  %v2542_v54 = vsel %vm765_vm10, %v3849_v58, 0.0 }
 0x22f   : > { %v3853_v7 = vpop.eup %3852  ;;  %v2544_v56 = vsel %vm765_vm10, %v3851_v47, 0.0 }
 0x230   : > { %v2317_v55 = vadd.f32 %v2316_v42, %v2315_v24  ;;  %v2541_v33 = vadd.f32 %v2540_v20, %v2539_v43  ;;  %v3855_v11 = vpop.eup %3854  ;;  %v2546_v36 = vsel %vm765_vm10, %v3853_v7, 0.0 }
 0x231   : > { %v2548_v10 = vsel %vm765_vm10, %v3855_v11, 0.0 }
 0x232   : > { %3856 = vlog2.f32 %v2317_v55  ;;  %v2543_v18 = vadd.f32 %v2542_v54, %v2541_v33  ;;  %v6498_v33 = vld [vmem:[#allocation50_spill] sm:$0xff] }
 0x234   : > { %v2545_v45 = vadd.f32 %v2544_v56, %v2543_v18 }
 0x236   : > { %v2547_v27 = vadd.f32 %v2546_v36, %v2545_v45 }
 0x238   : > { %v3857_v19 = vpop.eup %3856  ;;  %v2549_v52 = vadd.f32 %v2548_v10, %v2547_v27 }
 0x239   : > { %v2319_v6 = vmul.f32 0.6931472, %v3857_v19 }
 0x23a   : > { %3858 = vlog2.f32 %v2549_v52 }
 0x23b   : > { %v2320_v22 = vadd.f32 %v2319_v6, %v5869_v51 }
 0x23d   : > { %v5922_v16 = vsel %vm5761_vm14, %v2320_v22, %v5813_v48 }
 0x23e   : > { %v2560_v61 = vrot.slane %v5922_v16, 7  ;;  %v2554_v62 = vrot.slane %v5922_v16, 1  ;;  %v2555_v23 = vrot.slane %v5922_v16, 2  ;;  %v2556_v60 = vrot.slane %v5922_v16, 3 }
 0x23f   : > { %v2557_v51 = vrot.slane %v5922_v16, 4  ;;  %v2558_v17 = vrot.slane %v5922_v16, 5  ;;  %v2559_v40 = vrot.slane %v5922_v16, 6  ;;  %v2561_v48 = vperm.slane %v5922_v16, 0 }
 0x240   : > { %v2568_v49 = vperm.slane %v2560_v61, 0  ;;  %v2562_v38 = vperm.slane %v2554_v62, 0  ;;  %v2563_v32 = vperm.slane %v2555_v23, 0  ;;  %v2564_v29 = vperm.slane %v2556_v60, 0  ;;  %v3859_v53 = vpop.eup %3858 }
 0x241   : > { %v2565_v3 = vperm.slane %v2557_v51, 0  ;;  %v2566_v12 = vperm.slane %v2558_v17, 0  ;;  %v2567_v31 = vperm.slane %v2559_v40, 0  ;;  %v2577_v63 = vadd.f32 %v2561_v48, %v6464_v14 }
 0x242   : > { %v2584_v58 = vadd.f32 %v2568_v49, %v6486_v9  ;;  %v2578_v24 = vadd.f32 %v2562_v38, %v6465_v57  ;;  %v2579_v43 = vadd.f32 %v2563_v32, %v6466_v0  ;;  %v2580_v42 = vadd.f32 %v2564_v29, %v6467_v50 }
 0x243   : > { %v2581_v20 = vadd.f32 %v2565_v3, %v6468_v44  ;;  %v2582_v47 = vadd.f32 %v2566_v12, %v6469_v15  ;;  %v2583_v55 = vadd.f32 %v2567_v31, %v6485_v5  ;;  %v2585_v54 = vadd.f32 %v2577_v63, %v6498_v33 }
 0x244   : > { %v2586_v7 = vadd.f32 %v2578_v24, %v6498_v33  ;;  %v2587_v18 = vadd.f32 %v2579_v43, %v6498_v33  ;;  %v2588_v56 = vadd.f32 %v2580_v42, %v6498_v33  ;;  %v2551_v11 = vmul.f32 0.6931472, %v3859_v53 }
 0x245   : > { %v2589_v45 = vadd.f32 %v2581_v20, %v6498_v33  ;;  %v5950_v36 = vadd.f32 %v2582_v47, %v6498_v33  ;;  %v5953_v27 = vadd.f32 %v2583_v55, %v6498_v33  ;;  %v2593_v10 = vsel %vm765_vm10, %v2585_v54, -inf }
 0x246   : > { %v2594_v2 = vsel %vm765_vm10, %v2586_v7, -inf  ;;  %v2595_v19 = vsel %vm765_vm10, %v2587_v18, -inf  ;;  %v2596_v52 = vsel %vm765_vm10, %v2588_v56, -inf  ;;  %v2552_v8 = vadd.f32 %v2551_v11, %v5882_v21 }
 0x247   : > { %v2597_v6 = vsel %vm765_vm10, %v2589_v45, -inf  ;;  %v2599_v41 = vsel %vm765_vm10, %v5950_v36, -inf  ;;  %v2601_v22 = vsel %vm765_vm10, %v5953_v27, -inf  ;;  %v5966_v61 = vadd.f32 %v2584_v58, %v6498_v33 }
 0x248   : > { %v2598_v62 = vmax.f32 %v2593_v10, %v2597_v6  ;;  %v2600_v23 = vmax.f32 %v2594_v2, %v2599_v41  ;;  %v2602_v60 = vmax.f32 %v2595_v19, %v2601_v22  ;;  %v5971_v51 = vsel %vm5924_vm2, %v2552_v8, %v5770_v26 }
 0x249   : > { %v2603_v21 = vsel %vm765_vm10, %v5966_v61, -inf  ;;  %v2786_v17 = vrot.slane %v5971_v51, 1  ;;  %v2787_v40 = vrot.slane %v5971_v51, 2  ;;  %v2788_v48 = vrot.slane %v5971_v51, 3 }
 0x24a   : > { %v2605_v49 = vmax.f32 %v2598_v62, %v2600_v23  ;;  %v2604_v38 = vmax.f32 %v2596_v52, %v2603_v21  ;;  %v2789_v32 = vrot.slane %v5971_v51, 4  ;;  %v2790_v29 = vrot.slane %v5971_v51, 5 }
 0x24b   : > { %v2791_v53 = vrot.slane %v5971_v51, 6  ;;  %v2793_v26 = vperm.slane %v5971_v51, 0  ;;  %v2794_v3 = vperm.slane %v2786_v17, 0  ;;  %v2795_v31 = vperm.slane %v2787_v40, 0  ;;  %v6499_v17 = vld [vmem:[#allocation40_spill] sm:$0xff] }
 0x24c   : > { %v2606_v12 = vmax.f32 %v2602_v60, %v2604_v38  ;;  %v2796_v63 = vperm.slane %v2788_v48, 0  ;;  %v2797_v58 = vperm.slane %v2789_v32, 0  ;;  %v2798_v24 = vperm.slane %v2790_v29, 0 }
 0x24d   : > { %v2799_v43 = vperm.slane %v2791_v53, 0  ;;  %v2792_v20 = vrot.slane %v5971_v51, 7  ;;  %v2809_v47 = vadd.f32 %v2793_v26, %v4634_v13  ;;  %v2810_v55 = vadd.f32 %v2794_v3, %v4640_v25 }
 0x24e   : > { %v5982_v42 = vmax.f32 %v2605_v49, %v2606_v12  ;;  %v2811_v33 = vadd.f32 %v2795_v31, %v4636_v28  ;;  %v2812_v11 = vadd.f32 %v2796_v63, %v6436_v39  ;;  %v2813_v6 = vadd.f32 %v2797_v58, %v6437_v30 }
 0x24f   : > { %v2814_v41 = vadd.f32 %v2798_v24, %v6491_v35  ;;  %v2815_v22 = vadd.f32 %v2799_v43, %v6492_v34 }
 0x250   : > { %v2608_v10 = vsub.f32 %v2585_v54, %v5982_v42  ;;  %v2609_v2 = vsub.f32 %v2586_v7, %v5982_v42  ;;  %v2610_v19 = vsub.f32 %v2587_v18, %v5982_v42  ;;  %v2611_v52 = vsub.f32 %v2588_v56, %v5982_v42 }
 0x251   : > { %v2612_v8 = vsub.f32 %v2589_v45, %v5982_v42  ;;  %v2613_v62 = vsub.f32 %v5950_v36, %v5982_v42  ;;  %v2800_v7 = vperm.slane %v2792_v20, 0  ;;  %v6000_v18 = vadd.f32 %v2809_v47, %v6499_v17 }
 0x252   : > { %v2616_v23 = vmul.f32 1.442695, %v2608_v10  ;;  %v2618_v60 = vmul.f32 1.442695, %v2609_v2  ;;  %v2620_v54 = vmul.f32 1.442695, %v2610_v19  ;;  %v6003_v56 = vadd.f32 %v2810_v55, %v6499_v17 }
 0x253   : > { %v2622_v21 = vmul.f32 1.442695, %v2611_v52  ;;  %v2614_v45 = vsub.f32 %v5953_v27, %v5982_v42  ;;  %v2624_v40 = vmul.f32 1.442695, %v2612_v8  ;;  %v2819_v48 = vadd.f32 %v2811_v33, %v6499_v17 }
 0x254   : > { %3860 = vpow2.f32 %v2616_v23  ;;  %v6009_v36 = vadd.f32 %v2813_v6, %v6499_v17  ;;  %v6012_v49 = vadd.f32 %v2814_v41, %v6499_v17  ;;  %v6015_v38 = vadd.f32 %v2815_v22, %v6499_v17 }
 0x255   : > { %3862 = vpow2.f32 %v2618_v60  ;;  %v2615_v32 = vsub.f32 %v5966_v61, %v5982_v42  ;;  %v2626_v29 = vmul.f32 1.442695, %v2613_v62  ;;  %v2820_v27 = vadd.f32 %v2812_v11, %v6499_v17 }
 0x256   : > { %3864 = vpow2.f32 %v2620_v54  ;;  %v2826_v53 = vsel %vm765_vm10, %v6003_v56, -inf  ;;  %v2829_v26 = vsel %vm765_vm10, %v6009_v36, -inf  ;;  %v2831_v3 = vsel %vm765_vm10, %v6012_v49, -inf }
 0x257   : > { %3866 = vpow2.f32 %v2622_v21  ;;  %v2628_v12 = vmul.f32 1.442695, %v2614_v45  ;;  %v2825_v31 = vsel %vm765_vm10, %v6000_v18, -inf  ;;  %v2827_v61 = vsel %vm765_vm10, %v2819_v48, -inf }
 0x258   : > { %3868 = vpow2.f32 %v2624_v40  ;;  %v2833_v63 = vsel %vm765_vm10, %v6015_v38, -inf  ;;  %v2816_v58 = vadd.f32 %v2800_v7, %v6495_v37  ;;  %v2830_v43 = vmax.f32 %v2825_v31, %v2829_v26 }
 0x259   : > { %3870 = vpow2.f32 %v2626_v29  ;;  %v2832_v20 = vmax.f32 %v2826_v53, %v2831_v3  ;;  %v2630_v55 = vmul.f32 1.442695, %v2615_v32  ;;  %v2828_v11 = vsel %vm765_vm10, %v2820_v27, -inf }
 0x25a   : > { %v3861_v24 = vpop.eup %3860  ;;  %v2824_v10 = vadd.f32 %v2816_v58, %v6499_v17  ;;  %3872 = vpow2.f32 %v2628_v12  ;;  %v2834_v52 = vmax.f32 %v2827_v61, %v2833_v63 }
 0x25b   : > { %v3863_v47 = vpop.eup %3862  ;;  %v2632_v33 = vsel %vm765_vm10, %v3861_v24, 0.0  ;;  %v2837_v62 = vmax.f32 %v2830_v43, %v2832_v20  ;;  %3874 = vpow2.f32 %v2630_v55 }
 0x25c   : > { %v3865_v2 = vpop.eup %3864  ;;  %v2633_v19 = vsel %vm765_vm10, %v3863_v47, 0.0  ;;  %v2835_v41 = vsel %vm765_vm10, %v2824_v10, -inf }
 0x25d   : > { %v3867_v8 = vpop.eup %3866  ;;  %v2634_v6 = vadd.f32 %v2633_v19, %v2632_v33  ;;  %v2635_v22 = vsel %vm765_vm10, %v3865_v2, 0.0  ;;  %v2836_v23 = vmax.f32 %v2828_v11, %v2835_v41 }
 0x25e   : > { %v3869_v60 = vpop.eup %3868  ;;  %v2637_v7 = vsel %vm765_vm10, %v3867_v8, 0.0 }
 0x25f   : > { %v2636_v54 = vadd.f32 %v2635_v22, %v2634_v6  ;;  %v3871_v21 = vpop.eup %3870  ;;  %v2838_v17 = vmax.f32 %v2834_v52, %v2836_v23  ;;  %v2639_v32 = vsel %vm765_vm10, %v3869_v60, 0.0 }
 0x260   : > { %v3873_v40 = vpop.eup %3872  ;;  %v2641_v26 = vsel %vm765_vm10, %v3871_v21, 0.0 }
 0x261   : > { %v2638_v45 = vadd.f32 %v2637_v7, %v2636_v54  ;;  %v6040_v29 = vmax.f32 %v2837_v62, %v2838_v17  ;;  %v3875_v63 = vpop.eup %3874  ;;  %v2643_v24 = vsel %vm765_vm10, %v3873_v40, 0.0 }
 0x263   : > { %v2640_v53 = vadd.f32 %v2639_v32, %v2638_v45  ;;  %v2840_v3 = vsub.f32 %v6000_v18, %v6040_v29  ;;  %v2841_v12 = vsub.f32 %v6003_v56, %v6040_v29  ;;  %v2842_v31 = vsub.f32 %v2819_v48, %v6040_v29 }
 0x264   : > { %v2843_v61 = vsub.f32 %v2820_v27, %v6040_v29  ;;  %v2844_v43 = vsub.f32 %v6009_v36, %v6040_v29  ;;  %v2645_v18 = vsel %vm765_vm10, %v3875_v63, 0.0  ;;  %v2845_v48 = vsub.f32 %v6012_v49, %v6040_v29 }
 0x265   : > { %v2642_v58 = vadd.f32 %v2641_v26, %v2640_v53  ;;  %v2848_v20 = vmul.f32 1.442695, %v2840_v3  ;;  %v2850_v47 = vmul.f32 1.442695, %v2841_v12  ;;  %v2852_v55 = vmul.f32 1.442695, %v2842_v31 }
 0x266   : > { %v2854_v11 = vmul.f32 1.442695, %v2843_v61  ;;  %v2856_v27 = vmul.f32 1.442695, %v2844_v43  ;;  %v2846_v36 = vsub.f32 %v6015_v38, %v6040_v29  ;;  %v2858_v2 = vmul.f32 1.442695, %v2845_v48 }
 0x267   : > { %v2644_v33 = vadd.f32 %v2643_v24, %v2642_v58  ;;  %3876 = vpow2.f32 %v2848_v20  ;;  %v2847_v52 = vsub.f32 %v2824_v10, %v6040_v29 }
 0x268   : > { %3878 = vpow2.f32 %v2850_v47  ;;  %v2860_v62 = vmul.f32 1.442695, %v2846_v36 }
 0x269   : > { %v2646_v56 = vadd.f32 %v2645_v18, %v2644_v33  ;;  %3880 = vpow2.f32 %v2852_v55  ;;  %v2862_v21 = vmul.f32 1.442695, %v2847_v52 }
 0x26b   : > { %3882 = vlog2.f32 %v2646_v56 }
 0x26c   : > { %3884 = vpow2.f32 %v2854_v11 }
 0x26d   : > { %3886 = vpow2.f32 %v2856_v27  ;;  %v3877_v19 = vpop.eup %3876 }
 0x26e   : > { %v3879_v8 = vpop.eup %3878  ;;  %v2864_v6 = vsel %vm765_vm10, %v3877_v19, 0.0  ;;  %3888 = vpow2.f32 %v2858_v2 }
 0x26f   : > { %v3881_v41 = vpop.eup %3880  ;;  %v2865_v22 = vsel %vm765_vm10, %v3879_v8, 0.0  ;;  %3890 = vpow2.f32 %v2860_v62  ;;  %v6500_v8 = vld [vmem:[#allocation31_spill] sm:$0xff] }
 0x270   : > { %v2866_v23 = vadd.f32 %v2865_v22, %v2864_v6  ;;  %v2867_v38 = vsel %vm765_vm10, %v3881_v41, 0.0  ;;  %3892 = vpow2.f32 %v2862_v21 }
 0x271   : > { %v3883_v49 = vpop.eup %3882 }
 0x272   : > { %v3885_v60 = vpop.eup %3884  ;;  %v2648_v54 = vmul.f32 0.6931472, %v3883_v49  ;;  %v2868_v17 = vadd.f32 %v2867_v38, %v2866_v23 }
 0x273   : > { %v3887_v7 = vpop.eup %3886  ;;  %v2869_v10 = vsel %vm765_vm10, %v3885_v60, 0.0 }
 0x274   : > { %v2649_v45 = vadd.f32 %v2648_v54, %v5982_v42  ;;  %v2870_v32 = vadd.f32 %v2869_v10, %v2868_v17  ;;  %v2871_v53 = vsel %vm765_vm10, %v3887_v7, 0.0  ;;  %v3889_v26 = vpop.eup %3888 }
 0x275   : > { %v2873_v18 = vsel %vm765_vm10, %v3889_v26, 0.0  ;;  %v3891_v11 = vpop.eup %3890  ;;  %v3952_v26 = vld [vmem:[%s4218_s24 + $0x6] sm:$0x1] }
 0x276   : > { %v6066_v40 = vsel %vm5924_vm2, %v2649_v45, %v5922_v16  ;;  %v3893_v2 = vpop.eup %3892  ;;  %v2872_v41 = vadd.f32 %v2871_v53, %v2870_v32  ;;  %v2875_v45 = vsel %vm765_vm10, %v3891_v11, 0.0  ;;  %vm2979_vm3 = vcmp.gt.f32.partialorder %v3952_v26, 0.0 }
 0x277   : > { %v2883_v3 = vrot.slane %v6066_v40, 1  ;;  %v2884_v12 = vrot.slane %v6066_v40, 2  ;;  %v2885_v31 = vrot.slane %v6066_v40, 3  ;;  %v2886_v42 = vrot.slane %v6066_v40, 4 }
 0x278   : > { %v2887_v61 = vrot.slane %v6066_v40, 5  ;;  %v2888_v63 = vrot.slane %v6066_v40, 6  ;;  %v2889_v16 = vrot.slane %v6066_v40, 7  ;;  %v2890_v46 = vperm.slane %v6066_v40, 0 }
 0x279   : > { %v2891_v58 = vperm.slane %v2883_v3, 0  ;;  %v2892_v24 = vperm.slane %v2884_v12, 0  ;;  %v2893_v43 = vperm.slane %v2885_v31, 0  ;;  %v2894_v20 = vperm.slane %v2886_v42, 0 }
 0x27a   : > { %v2895_v47 = vperm.slane %v2887_v61, 0  ;;  %v2896_v55 = vperm.slane %v2888_v63, 0  ;;  %v2906_v33 = vadd.f32 %v2890_v46, %v6464_v14  ;;  %v2897_v22 = vperm.slane %v2889_v16, 0 }
 0x27b   : > { %v2907_v56 = vadd.f32 %v2891_v58, %v6465_v57  ;;  %v2908_v48 = vadd.f32 %v2892_v24, %v6466_v0  ;;  %v2909_v27 = vadd.f32 %v2893_v43, %v6467_v50  ;;  %v2910_v36 = vadd.f32 %v2894_v20, %v6468_v44 }
 0x27c   : > { %v2911_v19 = vadd.f32 %v2895_v47, %v6469_v15  ;;  %v2912_v52 = vadd.f32 %v2896_v55, %v6485_v5  ;;  %v2914_v6 = vadd.f32 %v2906_v33, %v6500_v8  ;;  %v2874_v21 = vadd.f32 %v2873_v18, %v2872_v41 }
 0x27d   : > { %v2915_v49 = vadd.f32 %v2907_v56, %v6500_v8  ;;  %v2916_v62 = vadd.f32 %v2908_v48, %v6500_v8  ;;  %v2918_v23 = vadd.f32 %v2910_v36, %v6500_v8  ;;  %v2917_v38 = vadd.f32 %v2909_v27, %v6500_v8 }
 0x27e   : > { %v2919_v60 = vadd.f32 %v2911_v19, %v6500_v8  ;;  %v2920_v54 = vadd.f32 %v2912_v52, %v6500_v8  ;;  %v2922_v10 = vsel %vm765_vm10, %v2914_v6, -inf  ;;  %v2876_v53 = vadd.f32 %v2875_v45, %v2874_v21 }
 0x27f   : > { %v2923_v7 = vsel %vm765_vm10, %v2915_v49, -inf  ;;  %v2926_v17 = vsel %vm765_vm10, %v2918_v23, -inf  ;;  %v2924_v3 = vsel %vm765_vm10, %v2916_v62, -inf  ;;  %v2877_v31 = vsel %vm765_vm10, %v3893_v2, 0.0 }
 0x280   : > { %v2928_v32 = vsel %vm765_vm10, %v2919_v60, -inf  ;;  %v2930_v12 = vsel %vm765_vm10, %v2920_v54, -inf  ;;  %v2913_v42 = vadd.f32 %v2897_v22, %v6486_v9  ;;  %v2927_v61 = vmax.f32 %v2922_v10, %v2926_v17 }
 0x281   : > { %v2929_v63 = vmax.f32 %v2923_v7, %v2928_v32  ;;  %v2878_v16 = vadd.f32 %v2877_v31, %v2876_v53  ;;  %v2925_v46 = vsel %vm765_vm10, %v2917_v38, -inf  ;;  %v2931_v24 = vmax.f32 %v2924_v3, %v2930_v12 }
 0x282   : > { %v2921_v58 = vadd.f32 %v2913_v42, %v6500_v8  ;;  %v2980_v43 = vsel %vm2979_vm3, 1, %v6413_v1 }
 0x283   : > { %3894 = vlog2.f32 %v2878_v16  ;;  %v2934_v47 = vmax.f32 %v2927_v61, %v2929_v63  ;;  %v2981_v33 = vperm.slane %v2980_v43, 0 }
 0x284   : > { %v2932_v20 = vsel %vm765_vm10, %v2921_v58, -inf }
 0x285   : > { %v2933_v55 = vmax.f32 %v2925_v46, %v2932_v20  ;;  %vm6108_vm4 = vcmp.eq.s32.totalorder %v2981_v33, 1 }
 0x287   : > { %v2935_v18 = vmax.f32 %v2931_v24, %v2933_v55 }
 0x289   : > { %v3895_v11 = vpop.eup %3894  ;;  %v6106_v56 = vmax.f32 %v2934_v47, %v2935_v18 }
 0x28a   : > { %v2880_v48 = vmul.f32 0.6931472, %v3895_v11 }
 0x28b   : > { %v2937_v36 = vsub.f32 %v2914_v6, %v6106_v56  ;;  %v2938_v2 = vsub.f32 %v2915_v49, %v6106_v56  ;;  %v2939_v19 = vsub.f32 %v2916_v62, %v6106_v56  ;;  %v2940_v52 = vsub.f32 %v2917_v38, %v6106_v56 }
 0x28c   : > { %v2881_v8 = vadd.f32 %v2880_v48, %v6040_v29  ;;  %v2941_v41 = vsub.f32 %v2918_v23, %v6106_v56  ;;  %v2942_v22 = vsub.f32 %v2919_v60, %v6106_v56  ;;  %v2943_v21 = vsub.f32 %v2920_v54, %v6106_v56 }
 0x28d   : > { %v2945_v7 = vmul.f32 1.442695, %v2937_v36  ;;  %v2947_v17 = vmul.f32 1.442695, %v2938_v2  ;;  %v2949_v45 = vmul.f32 1.442695, %v2939_v19  ;;  %v2944_v10 = vsub.f32 %v2921_v58, %v6106_v56 }
 0x28e   : > { %v2951_v6 = vmul.f32 1.442695, %v2940_v52  ;;  %v2953_v32 = vmul.f32 1.442695, %v2941_v41  ;;  %v6124_v49 = vsel %vm6108_vm4, %v2881_v8, %v5971_v51  ;;  %v2955_v29 = vmul.f32 1.442695, %v2942_v22 }
 0x28f   : > { %3896 = vpow2.f32 %v2945_v7  ;;  %v2957_v62 = vmul.f32 1.442695, %v2943_v21  ;;  %v3115_v23 = vrot.slane %v6124_v49, 1  ;;  %v3116_v60 = vrot.slane %v6124_v49, 2  ;;  %v6503_v19 = vld [vmem:[#allocation29_spill] sm:$0xff] }
 0x290   : > { %3898 = vpow2.f32 %v2947_v17  ;;  %v3117_v54 = vrot.slane %v6124_v49, 3  ;;  %v3118_v38 = vrot.slane %v6124_v49, 4  ;;  %v3119_v53 = vrot.slane %v6124_v49, 5 }
 0x291   : > { %3900 = vpow2.f32 %v2949_v45  ;;  %v3120_v26 = vrot.slane %v6124_v49, 6  ;;  %v3121_v51 = vrot.slane %v6124_v49, 7  ;;  %v3122_v3 = vperm.slane %v6124_v49, 0 }
 0x292   : > { %3902 = vpow2.f32 %v2951_v6  ;;  %v3123_v12 = vperm.slane %v3115_v23, 0  ;;  %v3124_v31 = vperm.slane %v3116_v60, 0  ;;  %v3125_v42 = vperm.slane %v3117_v54, 0 }
 0x293   : > { %3904 = vpow2.f32 %v2953_v32  ;;  %v3126_v61 = vperm.slane %v3118_v38, 0  ;;  %v3127_v63 = vperm.slane %v3119_v53, 0  ;;  %v2959_v16 = vmul.f32 1.442695, %v2944_v10 }
 0x294   : > { %3906 = vpow2.f32 %v2955_v29  ;;  %v3128_v46 = vperm.slane %v3120_v26, 0  ;;  %v3138_v58 = vadd.f32 %v3122_v3, %v4634_v13  ;;  %v3129_v43 = vperm.slane %v3121_v51, 0 }
 0x295   : > { %v3897_v24 = vpop.eup %3896  ;;  %v3139_v20 = vadd.f32 %v3123_v12, %v4640_v25  ;;  %v3140_v47 = vadd.f32 %v3124_v31, %v4636_v28  ;;  %v3141_v55 = vadd.f32 %v3125_v42, %v6436_v39  ;;  %3908 = vpow2.f32 %v2957_v62 }
 0x296   : > { %v3899_v33 = vpop.eup %3898  ;;  %v2961_v18 = vsel %vm765_vm10, %v3897_v24, 0.0  ;;  %v3142_v11 = vadd.f32 %v3126_v61, %v6437_v30  ;;  %v3143_v48 = vadd.f32 %v3127_v63, %v6491_v35  ;;  %v3144_v13 = vadd.f32 %v3128_v46, %v6492_v34 }
 0x297   : > { %v3901_v36 = vpop.eup %3900  ;;  %v2962_v2 = vsel %vm765_vm10, %v3899_v33, 0.0  ;;  %v3146_v52 = vadd.f32 %v3138_v58, %v6503_v19  ;;  %v3147_v25 = vadd.f32 %v3139_v20, %v6503_v19  ;;  %3910 = vpow2.f32 %v2959_v16 }
 0x298   : > { %v3903_v28 = vpop.eup %3902  ;;  %v2963_v39 = vadd.f32 %v2962_v2, %v2961_v18  ;;  %v3148_v8 = vadd.f32 %v3140_v47, %v6503_v19  ;;  %v2964_v22 = vsel %vm765_vm10, %v3901_v36, 0.0  ;;  %v3149_v35 = vadd.f32 %v3141_v55, %v6503_v19 }
 0x299   : > { %v3905_v41 = vpop.eup %3904  ;;  %v2966_v30 = vsel %vm765_vm10, %v3903_v28, 0.0  ;;  %v3150_v21 = vadd.f32 %v3142_v11, %v6503_v19  ;;  %v3154_v17 = vsel %vm765_vm10, %v3146_v52, -inf  ;;  %v3155_v45 = vsel %vm765_vm10, %v3147_v25, -inf }
 0x29a   : > { %v3907_v7 = vpop.eup %3906  ;;  %v2965_v34 = vadd.f32 %v2964_v22, %v2963_v39  ;;  %v3145_v10 = vadd.f32 %v3129_v43, %v6495_v37  ;;  %v3156_v6 = vsel %vm765_vm10, %v3148_v8, -inf  ;;  %v3151_v29 = vadd.f32 %v3143_v48, %v6503_v19 }
 0x29b   : > { %v3158_v32 = vsel %vm765_vm10, %v3150_v21, -inf  ;;  %v3152_v62 = vadd.f32 %v3144_v13, %v6503_v19  ;;  %v3909_v23 = vpop.eup %3908  ;;  %v2968_v53 = vsel %vm765_vm10, %v3905_v41, 0.0  ;;  %v3157_v26 = vsel %vm765_vm10, %v3149_v35, -inf }
 0x29c   : > { %v2967_v60 = vadd.f32 %v2966_v30, %v2965_v34  ;;  %v3159_v54 = vmax.f32 %v3154_v17, %v3158_v32  ;;  %v3153_v38 = vadd.f32 %v3145_v10, %v6503_v19  ;;  %v3160_v51 = vsel %vm765_vm10, %v3151_v29, -inf }
 0x29d   : > { %v3162_v37 = vsel %vm765_vm10, %v3152_v62, -inf  ;;  %v3911_v3 = vpop.eup %3910  ;;  %v3161_v31 = vmax.f32 %v3155_v45, %v3160_v51  ;;  %v2970_v63 = vsel %vm765_vm10, %v3907_v7, 0.0  ;;  %v2972_v24 = vsel %vm765_vm10, %v3909_v23, 0.0 }
 0x29e   : > { %v2969_v12 = vadd.f32 %v2968_v53, %v2967_v60  ;;  %v3163_v42 = vmax.f32 %v3156_v6, %v3162_v37  ;;  %v3164_v61 = vsel %vm765_vm10, %v3153_v38, -inf  ;;  %v2974_v47 = vsel %vm765_vm10, %v3911_v3, 0.0 }
 0x29f   : > { %v3165_v16 = vmax.f32 %v3157_v26, %v3164_v61  ;;  %v3166_v58 = vmax.f32 %v3159_v54, %v3161_v31 }
 0x2a0   : > { %v2971_v46 = vadd.f32 %v2970_v63, %v2969_v12 }
 0x2a1   : > { %v3167_v43 = vmax.f32 %v3163_v42, %v3165_v16 }
 0x2a2   : > { %v2973_v20 = vadd.f32 %v2972_v24, %v2971_v46 }
 0x2a3   : > { %v6166_v55 = vmax.f32 %v3166_v58, %v3167_v43 }
 0x2a4   : > { %v2975_v33 = vadd.f32 %v2974_v47, %v2973_v20  ;;  %v6504_v47 = vld [vmem:[#allocation42_spill] sm:$0xff] }
 0x2a5   : > { %v3169_v18 = vsub.f32 %v3146_v52, %v6166_v55  ;;  %v3170_v11 = vsub.f32 %v3147_v25, %v6166_v55  ;;  %v3171_v48 = vsub.f32 %v3148_v8, %v6166_v55  ;;  %v3172_v13 = vsub.f32 %v3149_v35, %v6166_v55 }
 0x2a6   : > { %3912 = vlog2.f32 %v2975_v33  ;;  %v3173_v19 = vsub.f32 %v3150_v21, %v6166_v55  ;;  %v3174_v41 = vsub.f32 %v3151_v29, %v6166_v55  ;;  %v3175_v22 = vsub.f32 %v3152_v62, %v6166_v55 }
 0x2a7   : > { %v3177_v36 = vmul.f32 1.442695, %v3169_v18  ;;  %v3179_v2 = vmul.f32 1.442695, %v3170_v11  ;;  %v3181_v28 = vmul.f32 1.442695, %v3171_v48  ;;  %v3176_v25 = vsub.f32 %v3153_v38, %v6166_v55 }
 0x2a8   : > { %v3183_v52 = vmul.f32 1.442695, %v3172_v13  ;;  %v3185_v7 = vmul.f32 1.442695, %v3173_v19  ;;  %v3187_v21 = vmul.f32 1.442695, %v3174_v41 }
 0x2a9   : > { %3914 = vpow2.f32 %v3177_v36  ;;  %v3189_v17 = vmul.f32 1.442695, %v3175_v22  ;;  %v3191_v10 = vmul.f32 1.442695, %v3176_v25 }
 0x2aa   : > { %3916 = vpow2.f32 %v3179_v2 }
 0x2ab   : > { %3918 = vpow2.f32 %v3181_v28 }
 0x2ac   : > { %v3913_v39 = vpop.eup %3912  ;;  %3920 = vpow2.f32 %v3183_v52 }
 0x2ad   : > { %v2977_v30 = vmul.f32 0.6931472, %v3913_v39  ;;  %3922 = vpow2.f32 %v3185_v7 }
 0x2ae   : > { %3924 = vpow2.f32 %v3187_v21 }
 0x2af   : > { %v3915_v8 = vpop.eup %3914  ;;  %v2978_v34 = vadd.f32 %v2977_v30, %v6106_v56  ;;  %3926 = vpow2.f32 %v3189_v17 }
 0x2b0   : > { %v3917_v35 = vpop.eup %3916  ;;  %v3193_v6 = vsel %vm765_vm10, %v3915_v8, 0.0  ;;  %3928 = vpow2.f32 %v3191_v10 }
 0x2b1   : > { %v6180_v45 = vsel %vm6108_vm4, %v2978_v34, %v6066_v40  ;;  %v3194_v40 = vsel %vm765_vm10, %v3917_v35, 0.0  ;;  %v3919_v51 = vpop.eup %3918 }
 0x2b2   : > { %v3212_v32 = vrot.slane %v6180_v45, 1  ;;  %v3213_v29 = vrot.slane %v6180_v45, 2  ;;  %v3214_v56 = vrot.slane %v6180_v45, 3  ;;  %v3215_v62 = vrot.slane %v6180_v45, 4  ;;  %v3921_v31 = vpop.eup %3920 }
 0x2b3   : > { %v3216_v23 = vrot.slane %v6180_v45, 5  ;;  %v3217_v60 = vrot.slane %v6180_v45, 6  ;;  %v3219_v27 = vperm.slane %v6180_v45, 0  ;;  %v3218_v42 = vrot.slane %v6180_v45, 7  ;;  %v3923_v46 = vpop.eup %3922 }
 0x2b4   : > { %v3220_v54 = vperm.slane %v3212_v32, 0  ;;  %v3221_v38 = vperm.slane %v3213_v29, 0  ;;  %v3222_v53 = vperm.slane %v3214_v56, 0  ;;  %v3223_v26 = vperm.slane %v3215_v62, 0 }
 0x2b5   : > { %v3224_v37 = vperm.slane %v3216_v23, 0  ;;  %v3225_v3 = vperm.slane %v3217_v60, 0  ;;  %v3235_v12 = vadd.f32 %v3219_v27, %v6464_v14  ;;  %v3195_v20 = vadd.f32 %v3194_v40, %v3193_v6  ;;  %v3953_v27 = vld [vmem:[%s4218_s24 + $0x7] sm:$0x1] }
 0x2b6   : > { %v3236_v61 = vadd.f32 %v3220_v54, %v6465_v57  ;;  %v3237_v63 = vadd.f32 %v3221_v38, %v6466_v0  ;;  %v3239_v16 = vadd.f32 %v3223_v26, %v6468_v44  ;;  %v3238_v58 = vadd.f32 %v3222_v53, %v6467_v50 }
 0x2b7   : > { %v3240_v24 = vadd.f32 %v3224_v37, %v6469_v15  ;;  %v3241_v43 = vadd.f32 %v3225_v3, %v6485_v5  ;;  %v3243_v18 = vadd.f32 %v3235_v12, %v6504_v47  ;;  %v3226_v0 = vperm.slane %v3218_v42, 0  ;;  %v3925_v5 = vpop.eup %3924 }
 0x2b8   : > { %v3244_v14 = vadd.f32 %v3236_v61, %v6504_v47  ;;  %v3247_v33 = vadd.f32 %v3239_v16, %v6504_v47  ;;  %v3245_v44 = vadd.f32 %v3237_v63, %v6504_v47  ;;  %v3196_v15 = vsel %vm765_vm10, %v3919_v51, 0.0  ;;  %v3927_v25 = vpop.eup %3926 }
 0x2b9   : > { %v6203_v57 = vadd.f32 %v3240_v24, %v6504_v47  ;;  %v6207_v50 = vadd.f32 %v3241_v43, %v6504_v47  ;;  %v3246_v11 = vadd.f32 %v3238_v58, %v6504_v47  ;;  %v3197_v48 = vadd.f32 %v3196_v15, %v3195_v20  ;;  %v3929_v10 = vpop.eup %3928 }
 0x2ba   : > { %v3252_v36 = vsel %vm765_vm10, %v3244_v14, -inf  ;;  %v3255_v2 = vsel %vm765_vm10, %v3247_v33, -inf  ;;  %v3198_v19 = vsel %vm765_vm10, %v3921_v31, 0.0  ;;  %v3251_v28 = vsel %vm765_vm10, %v3243_v18, -inf }
 0x2bb   : > { %v3257_v13 = vsel %vm765_vm10, %v6203_v57, -inf  ;;  %v3199_v39 = vadd.f32 %v3198_v19, %v3197_v48  ;;  %v3253_v41 = vsel %vm765_vm10, %v3245_v44, -inf  ;;  %v3259_v22 = vsel %vm765_vm10, %v6207_v50, -inf }
 0x2bc   : > { %v3200_v52 = vsel %vm765_vm10, %v3923_v46, 0.0  ;;  %v3242_v30 = vadd.f32 %v3226_v0, %v6486_v9  ;;  %v3256_v7 = vmax.f32 %v3251_v28, %v3255_v2  ;;  %v3258_v8 = vmax.f32 %v3252_v36, %v3257_v13 }
 0x2bd   : > { %v3201_v34 = vadd.f32 %v3200_v52, %v3199_v39  ;;  %v3254_v35 = vsel %vm765_vm10, %v3246_v11, -inf  ;;  %v3202_v21 = vsel %vm765_vm10, %v3925_v5, 0.0  ;;  %v3260_v6 = vmax.f32 %v3253_v41, %v3259_v22 }
 0x2be   : > { %v3250_v17 = vadd.f32 %v3242_v30, %v6504_v47  ;;  %v3204_v29 = vsel %vm765_vm10, %v3927_v25, 0.0  ;;  %v3263_v62 = vmax.f32 %v3256_v7, %v3258_v8  ;;  %v3206_v60 = vsel %vm765_vm10, %v3929_v10, 0.0 }
 0x2bf   : > { %v3203_v32 = vadd.f32 %v3202_v21, %v3201_v34  ;;  %vm3308_vm5 = vcmp.gt.f32.partialorder %v3953_v27, 0.0 }
 0x2c0   : > { %v3261_v56 = vsel %vm765_vm10, %v3250_v17, -inf  ;;  %v3309_v53 = vsel %vm3308_vm5, 1, %v6413_v1 }
 0x2c1   : > { %v3205_v9 = vadd.f32 %v3204_v29, %v3203_v32  ;;  %v3262_v23 = vmax.f32 %v3254_v35, %v3261_v56  ;;  %v3310_v31 = vperm.slane %v3309_v53, 0 }
 0x2c3   : > { %v3207_v40 = vadd.f32 %v3206_v60, %v3205_v9  ;;  %v3264_v54 = vmax.f32 %v3260_v6, %v3262_v23  ;;  %vm6232_vm6 = vcmp.eq.s32.totalorder %v3310_v31, 1 }
 0x2c5   : > { %3930 = vlog2.f32 %v3207_v40  ;;  %v3265_v38 = vmax.f32 %v3263_v62, %v3264_v54 }
 0x2c7   : > { %v3266_v26 = vsub.f32 %v3243_v18, %v3265_v38  ;;  %v3267_v51 = vsub.f32 %v3244_v14, %v3265_v38  ;;  %v3268_v37 = vsub.f32 %v3245_v44, %v3265_v38  ;;  %v3269_v3 = vsub.f32 %v3246_v11, %v3265_v38 }
 0x2c8   : > { %v3270_v12 = vsub.f32 %v3247_v33, %v3265_v38  ;;  %v3271_v16 = vsub.f32 %v6203_v57, %v3265_v38  ;;  %v3272_v43 = vsub.f32 %v6207_v50, %v3265_v38  ;;  %v3273_v14 = vsub.f32 %v3250_v17, %v3265_v38 }
 0x2c9   : > { %v3274_v42 = vmul.f32 1.442695, %v3266_v26  ;;  %v3276_v61 = vmul.f32 1.442695, %v3267_v51  ;;  %v3278_v63 = vmul.f32 1.442695, %v3268_v37 }
 0x2ca   : > { %v3280_v46 = vmul.f32 1.442695, %v3269_v3  ;;  %v3282_v20 = vmul.f32 1.442695, %v3270_v12  ;;  %v3284_v33 = vmul.f32 1.442695, %v3271_v16 }
 0x2cb   : > { %v3931_v58 = vpop.eup %3930  ;;  %3932 = vpow2.f32 %v3274_v42  ;;  %v3286_v18 = vmul.f32 1.442695, %v3272_v43  ;;  %v3288_v50 = vmul.f32 1.442695, %v3273_v14 }
 0x2cc   : > { %v3209_v24 = vmul.f32 0.6931472, %v3931_v58  ;;  %3934 = vpow2.f32 %v3276_v61 }
 0x2cd   : > { %3936 = vpow2.f32 %v3278_v63 }
 0x2ce   : > { %v3210_v47 = vadd.f32 %v3209_v24, %v6166_v55  ;;  %3938 = vpow2.f32 %v3280_v46 }
 0x2cf   : > { %3940 = vpow2.f32 %v3282_v20 }
 0x2d0   : > { %v3312_v57 = vsel %vm6232_vm6, %v3210_v47, %v6124_v49  ;;  %3942 = vpow2.f32 %v3284_v33 }
 0x2d1   : > { %v3933_v0 = vpop.eup %3932  ;;  %3314 = vst.msk [vmem:[#allocation2] sm:$0xff] %vm765_vm10, %v3312_v57  ;;  %3944 = vpow2.f32 %v3286_v18 }
 0x2d2   : > { %v3935_v44 = vpop.eup %3934  ;;  %v3290_v15 = vsel %vm765_vm10, %v3933_v0, 0.0  ;;  %3946 = vpow2.f32 %v3288_v50 }
 0x2d3   : > { %v3937_v5 = vpop.eup %3936  ;;  %v3291_v55 = vsel %vm765_vm10, %v3935_v44, 0.0 }
 0x2d4   : > { %v3939_v11 = vpop.eup %3938  ;;  %v3292_v48 = vadd.f32 %v3291_v55, %v3290_v15  ;;  %v3293_v36 = vsel %vm765_vm10, %v3937_v5, 0.0 }
 0x2d5   : > { %v3941_v2 = vpop.eup %3940  ;;  %v3295_v49 = vsel %vm765_vm10, %v3939_v11, 0.0 }
 0x2d6   : > { %v3294_v13 = vadd.f32 %v3293_v36, %v3292_v48  ;;  %v3943_v19 = vpop.eup %3942  ;;  %v3297_v39 = vsel %vm765_vm10, %v3941_v2, 0.0 }
 0x2d7   : > { %v3945_v41 = vpop.eup %3944  ;;  %v3299_v52 = vsel %vm765_vm10, %v3943_v19, 0.0 }
 0x2d8   : > { %v3296_v28 = vadd.f32 %v3295_v49, %v3294_v13  ;;  %v3947_v30 = vpop.eup %3946  ;;  %v3301_v7 = vsel %vm765_vm10, %v3945_v41, 0.0 }
 0x2d9   : > { %v3303_v34 = vsel %vm765_vm10, %v3947_v30, 0.0 }
 0x2da   : > { %v3298_v22 = vadd.f32 %v3297_v39, %v3296_v28 }
 0x2dc   : > { %v3300_v25 = vadd.f32 %v3299_v52, %v3298_v22 }
 0x2de   : > { %v3302_v8 = vadd.f32 %v3301_v7, %v3300_v25 }
 0x2e0   : > { %v3304_v35 = vadd.f32 %v3303_v34, %v3302_v8 }
 0x2e2   : > { %3948 = vlog2.f32 %v3304_v35 }
 0x2e8   : > { %v3949_v21 = vpop.eup %3948 }
 0x2e9   : > { %v3306_v17 = vmul.f32 0.6931472, %v3949_v21 }
 0x2ea   : > { %3324 = sbr.rel (%p3578_p3) target bundleno = 809 (0x329), region = 72 }
 0x2eb   : > { %v3307_v10 = vadd.f32 %v3306_v17, %v3265_v38 }
 0x2ed   : > { %v3313_v6 = vsel %vm6232_vm6, %v3307_v10, %v6180_v45 }
 0x2ee   : > { %3315 = vst.msk [vmem:[#allocation2 + $0x8] sm:$0xff] %vm765_vm10, %v3313_v6 }
 0x2ef   : > { %v6507_v32 = vld [vmem:[#allocation28_spill] sm:$0xff]  ;;  %v3326_v56 = vadd.f32 %v3313_v6, %v5282_v59  ;;  %v6508_v36 = vld [vmem:[#allocation26_spill] sm:$0xff] }
 0x2f0   : > { %v3325_v29 = vadd.f32 %v3312_v57, %v6507_v32  ;;  %v3369_v2 = vadd.f32 %v5697_v4, %v6508_v36 }
 0x2f1   : > { %v3348_v9 = vsel %vm765_vm10, %v3326_v56, -inf }
 0x2f2   : > { %v3327_v62 = vsel %vm765_vm10, %v3325_v29, -inf  ;;  %v3349_v60 = vrot.slane %v3348_v9, 4 }
 0x2f3   : > { %v3328_v23 = vrot.slane %v3327_v62, 4 }
 0x2f4   : > { %v3350_v40 = vmax.f32 %v3348_v9, %v3349_v60 }
 0x2f5   : > { %v3329_v27 = vmax.f32 %v3327_v62, %v3328_v23 }
 0x2f6   : > { %v3351_v38 = vrot.slane %v3350_v40, 2 }
 0x2f7   : > { %v3330_v54 = vrot.slane %v3329_v27, 2 }
 0x2f8   : > { %v3352_v53 = vmax.f32 %v3350_v40, %v3351_v38 }
 0x2f9   : > { %v3331_v45 = vmax.f32 %v3329_v27, %v3330_v54 }
 0x2fa   : > { %v3353_v51 = vrot.slane %v3352_v53, 1 }
 0x2fb   : > { %v3332_v26 = vrot.slane %v3331_v45, 1 }
 0x2fc   : > { %v3354_v3 = vmax.f32 %v3352_v53, %v3353_v51 }
 0x2fd   : > { %v3333_v37 = vmax.f32 %v3331_v45, %v3332_v26 }
 0x2fe   : > { %v3355_v31 = vsub.f32 %v3326_v56, %v3354_v3 }
 0x2ff   : > { %v3334_v12 = vsub.f32 %v3325_v29, %v3333_v37 }
 0x300   : > { %v3356_v59 = vmul.f32 1.442695, %v3355_v31 }
 0x301   : > { %v3335_v42 = vmul.f32 1.442695, %v3334_v12 }
 0x303   : > { %3954 = vpow2.f32 %v3335_v42 }
 0x304   : > { %3956 = vpow2.f32 %v3356_v59 }
 0x309   : > { %v3955_v61 = vpop.eup %3954 }
 0x30a   : > { %v3957_v63 = vpop.eup %3956  ;;  %v3337_v16 = vsel %vm765_vm10, %v3955_v61, 0.0 }
 0x30b   : > { %v3338_v46 = vrot.slane %v3337_v16, 4  ;;  %v3358_v58 = vsel %vm765_vm10, %v3957_v63, 0.0 }
 0x30c   : > { %v3359_v24 = vrot.slane %v3358_v58, 4 }
 0x30d   : > { %v3339_v43 = vadd.f32 %v3338_v46, %v3337_v16 }
 0x30e   : > { %v3360_v20 = vadd.f32 %v3359_v24, %v3358_v58 }
 0x30f   : > { %v3340_v1 = vrot.slane %v3339_v43, 2 }
 0x310   : > { %v3361_v47 = vrot.slane %v3360_v20, 2 }
 0x311   : > { %v3341_v14 = vadd.f32 %v3340_v1, %v3339_v43 }
 0x312   : > { %v3362_v33 = vadd.f32 %v3361_v47, %v3360_v20 }
 0x313   : > { %v3342_v18 = vrot.slane %v3341_v14, 1 }
 0x314   : > { %v3363_v57 = vrot.slane %v3362_v33, 1 }
 0x315   : > { %v3343_v0 = vadd.f32 %v3342_v18, %v3341_v14 }
 0x316   : > { %v3364_v44 = vadd.f32 %v3363_v57, %v3362_v33 }
 0x317   : > { %3958 = vlog2.f32 %v3343_v0 }
 0x318   : > { %3960 = vlog2.f32 %v3364_v44 }
 0x31d   : > { %v3959_v50 = vpop.eup %3958 }
 0x31e   : > { %v3961_v15 = vpop.eup %3960  ;;  %v3345_v5 = vmul.f32 0.6931472, %v3959_v50 }
 0x31f   : > { %v3366_v55 = vmul.f32 0.6931472, %v3961_v15 }
 0x320   : > { %v3347_v11 = vadd.f32 %v3345_v5, %v3333_v37 }
 0x322   : > { %v3367_v48 = vadd.f32 %v3366_v55, %v3347_v11 }
 0x324   : > { %v3368_v13 = vadd.f32 %v3367_v48, %v3354_v3 }
 0x326   : > { %v3370_v49 = vsub.f32 %v3368_v13, %v3369_v2 }
 0x328   : > { %3371 = vst.msk [vmem:[#allocation9] sm:$0x1] %vm3318_vm0, %v3370_v49 }
 0x329 PF: > { %s6509_s16 = sadd.s32 4294967295, %s4074_s18   ;;  %s3381_s12 = sshll.u32 %s6296_s10, 4  ;;  %s3382_s12 = int_to_ptr.hbm [resolvable:$true] %s3381_s12 }
 0x32a   : > { %p3594_p4 = scmp.eq.s32.totalorder %s6509_s16, 2  ;;  %s4082_s13 = smov [#allocation9]  }
 0x32b   : > { %s3379_s23 = sshll.u32 %s4082_s13, 4  ;;  %s3380_s23 = int_to_ptr.vmem [resolvable:$true] %s3379_s23 }
 0x32c   : > { %3586 = dma.vmem_to_hbm [thread:$0]  (%p3594_p4), %s3380_s23, 16, %s3382_s12, [#allocation8]  }
 0x32d   : > { %4049 = dma.done.wait (%p3594_p4), [#allocation8], 16  }
 0x32e   : > { %4051 = vsyncadd (%p3594_p4), [#allocation8], 4294967280 }
 0x32f PF: > { %s24_s18 = sadd.s32 1, %s4074_s18   ;;  %s6510_s29 = sld [smem:[#allocation13_spill]] }
 0x330   : > { %p21_p5 = scmp.ge.s32.totalorder %s24_s18, 5   ;;  %s6511_s27 = sld [smem:[#allocation12_spill]] }
 0x331   : > { %s6512_s13 = smov %s4058_s14  ;;  %s6513_s14 = smov %s4062_s15 }
 0x332   : > { %s6515_s16 = smov %s4070_s17  ;;  %23 = sbr.rel (!%p21_p5) target bundleno = 5 (0x5), region = 122 }
 0x335   : > { %s6514_s15 = smov %s6510_s29 }
 0x336   : > { %s6516_s17 = smov %s6511_s27 }
 0x337   :  { %3395 = vsyncpa [#allocation7], 1 }
 0x338   :  { %3397 = vsyncpa [#allocation7 + $0x1], 1 }
 0x339   :  { %3398 = vsyncpa [#allocation8], 1 }
 0x33a   :  { %3400 = vsyncpa [#allocation8 + $0x1], 1 }

</bundles_post_ra>
